<compile_context>
chip_gen: v5e
topology: v5e:2x2
jax: 0.10.0
libtpu: 0.0.40
codegen_flags: <defaults>
</compile_context>

<pallas_src>
import math

import jax
import jax.numpy as jnp
from jax.experimental import pallas as pl
from jax.experimental.pallas import tpu as pltpu

EPS = 1e-5

# Matmul operand dtype.  Set to jnp.bfloat16 on v6e/v7x for ~2x MXU throughput
# and half the weight/activation VMEM (accumulation stays f32 via
# preferred_element_type); kept float32 here to match PyTorch numerics.
MATMUL_DTYPE = jnp.float32


# ----------------------------- kernel helpers ------------------------------ #

def _mm(a, b):
    return jnp.dot(a.astype(MATMUL_DTYPE), b.astype(MATMUL_DTYPE),
                   preferred_element_type=jnp.float32)


def _shift_down(x):
    """y[l] = x[l-1], y[0] = 0.   x: (L, C)."""
    pad = jnp.zeros((1, x.shape[1]), x.dtype)
    return jnp.concatenate([pad, x[:-1, :]], axis=0)


def _shift_up(x):
    """y[l] = x[l+1], y[L-1] = 0."""
    pad = jnp.zeros((1, x.shape[1]), x.dtype)
    return jnp.concatenate([x[1:, :], pad], axis=0)


def _conv3(x, w_ref):
    """'same' Conv1d(k=3, pad=1): x (L, Cin), w_ref (3, Cin, Cout) -> (L, Cout)."""
    return (_mm(_shift_down(x), w_ref[0])
            + _mm(x, w_ref[1])
            + _mm(_shift_up(x), w_ref[2]))


def _bn_relu(y, s_ref, b_ref):
    """Folded (inference) BatchNorm + ReLU.  s/b: (1, C)."""
    return jnp.maximum(y * s_ref[...] + b_ref[...], 0.0)


def _block(x, w1, s1, b1, w2, s2, b2):
    h = _bn_relu(_conv3(x, w1), s1, b1)
    return _bn_relu(_conv3(h, w2), s2, b2)


def _block2(xa, xb, w1a, w1b, s1, b1, w2, s2, b2):
    """Decoder block: first conv consumes concat([xa, xb], channels) realised
    as two partial dots with a channel-split weight (no concat copy)."""
    h = _bn_relu(_conv3(xa, w1a) + _conv3(xb, w1b), s1, b1)
    return _bn_relu(_conv3(h, w2), s2, b2)


def _pool2(src_ref, lh):
    """MaxPool1d(kernel=2, stride=2) over rows of src_ref ((2*lh, C))."""
    even = src_ref[pl.ds(0, lh, stride=2), :]
    odd = src_ref[pl.ds(1, lh, stride=2), :]
    return jnp.maximum(even, odd)


def _upconv2(dst_ref, x, w_ref, b_ref):
    """ConvTranspose1d(k=2, s=2): x (Lh, Cin) -> dst_ref (2*Lh, Cout).
    Even/odd output rows are the two per-tap matmuls, interleaved with
    stride-2 stores into the VMEM scratch ref."""
    lh = x.shape[0]
    b = b_ref[...]
    dst_ref[pl.ds(0, lh, stride=2), :] = _mm(x, w_ref[0]) + b
    dst_ref[pl.ds(1, lh, stride=2), :] = _mm(x, w_ref[1]) + b
    return dst_ref[...]


# ------------------------------ fused kernel ------------------------------- #

def unet_kernel(*refs):
    (x_ref,
     e1w1, e1s1, e1b1, e1w2, e1s2, e1b2,
     e2w1, e2s1, e2b1, e2w2, e2s2, e2b2,
     bw1, bs1, bb1, bw2, bs2, bb2,
     u2w, u2b,
     d2w1a, d2w1b, d2s1, d2b1, d2w2, d2s2, d2b2,
     u1w, u1b,
     d1w1a, d1w1b, d1s1, d1b1, d1w2, d1s2, d1b2,
     fw, fb,
     o_ref,
     enc1_s, enc2_s, up2_s, up1_s) = refs

    L = x_ref.shape[0]
    Lh, Lq = L // 2, L // 4

    x = x_ref[...]                                                  # (L, 1)

    enc1 = _block(x, e1w1, e1s1, e1b1, e1w2, e1s2, e1b2)            # (L, C0)
    enc1_s[...] = enc1
    enc2 = _block(_pool2(enc1_s, Lh),
                  e2w1, e2s1, e2b1, e2w2, e2s2, e2b2)               # (L/2, C1)
    enc2_s[...] = enc2
    bott = _block(_pool2(enc2_s, Lq),
                  bw1, bs1, bb1, bw2, bs2, bb2)                     # (L/4, C2)

    up2 = _upconv2(up2_s, bott, u2w, u2b)                           # (L/2, C1)
    dec2 = _block2(up2, enc2,
                   d2w1a, d2w1b, d2s1, d2b1, d2w2, d2s2, d2b2)      # (L/2, C1)

    up1 = _upconv2(up1_s, dec2, u1w, u1b)                           # (L, C0)
    dec1 = _block2(up1, enc1,
                   d1w1a, d1w1b, d1s1, d1b1, d1w2, d1s2, d1b2)      # (L, C0)

    o_ref[...] = _mm(dec1, fw[...]) + fb[...]                       # (L, 1)


# --------------------------- pallas_call wrapper ---------------------------- #

def _rep_spec(shape):
    zeros = (0,) * len(shape)
    return pl.BlockSpec(shape, lambda b: zeros)


def _flops_per_sample(L, C0, C1, C2, cin=1, cout=1):
    Lh, Lq = L // 2, L // 4
    f = 2 * 3 * L * cin * C0 + 2 * 3 * L * C0 * C0            # encoder1
    f += 2 * 3 * Lh * C0 * C1 + 2 * 3 * Lh * C1 * C1          # encoder2
    f += 2 * 3 * Lq * C1 * C2 + 2 * 3 * Lq * C2 * C2          # bottleneck
    f += 2 * 2 * Lq * C2 * C1                                  # upconv2
    f += 2 * 3 * Lh * (2 * C1) * C1 + 2 * 3 * Lh * C1 * C1    # decoder2
    f += 2 * 2 * Lh * C1 * C0                                  # upconv1
    f += 2 * 3 * L * (2 * C0) * C0 + 2 * 3 * L * C0 * C0      # decoder1
    f += 2 * L * C0 * cout                                     # final 1x1 conv
    return f


def unet1d_forward(x, params, channels=(32, 64, 128)):
    """x: (B, L) -> (B, L), matching UNet1D.forward (unsqueeze/squeeze channel)."""
    B, L = x.shape
    assert L % 4 == 0, "sequence length must be divisible by 4"
    C0, C1, C2 = channels

    x3 = x[:, :, None].astype(jnp.float32)                    # (B, L, 1)

    flat_params = (*params["enc1"], *params["enc2"], *params["bott"],
                   *params["up2"], *params["dec2"], *params["up1"],
                   *params["dec1"], *params["final"])

    in_specs = [pl.BlockSpec((None, L, 1), lambda b: (b, 0, 0))]
    in_specs += [_rep_spec(p.shape) for p in flat_params]

    param_bytes = sum(int(p.size) * 4 for p in flat_params)
    cost = pl.CostEstimate(
        flops=B * _flops_per_sample(L, C0, C1, C2),
        transcendentals=0,
        bytes_accessed=2 * B * L * 4 + param_bytes)

    out = pl.pallas_call(
        unet_kernel,
        out_shape=jax.ShapeDtypeStruct((B, L, 1), jnp.float32),
        grid=(B,),
        in_specs=in_specs,
        out_specs=pl.BlockSpec((None, L, 1), lambda b: (b, 0, 0)),
        scratch_shapes=[
            pltpu.VMEM((L, C0), jnp.float32),        # enc1 (skip + pool source)
            pltpu.VMEM((L // 2, C1), jnp.float32),   # enc2 (skip + pool source)
            pltpu.VMEM((L // 2, C1), jnp.float32),   # upconv2 interleave buffer
            pltpu.VMEM((L, C0), jnp.float32),        # upconv1 interleave buffer
        ],
        compiler_params=pltpu.CompilerParams(
            dimension_semantics=("parallel",)),
        cost_estimate=cost,
    )(x3, *flat_params)
    return out[:, :, 0]


# ------------------------------ parameters --------------------------------- #

def _fold_bn(key, cout):
    kg, kb, km, kv = jax.random.split(key, 4)
    gamma = 1.0 + 0.1 * jax.random.normal(kg, (cout,), jnp.float32)
    beta = 0.1 * jax.random.normal(kb, (cout,), jnp.float32)
    mean = 0.1 * jax.random.normal(km, (cout,), jnp.float32)
    var = 1.0 + 0.5 * jax.random.uniform(kv, (cout,), jnp.float32)
    scale = gamma / jnp.sqrt(var + EPS)
    bias = beta - mean * scale
    return scale.reshape(1, cout), bias.reshape(1, cout)


def make_block_params(key, cin, cout):
    k1, k2, k3, k4 = jax.random.split(key, 4)
    w1 = jax.random.normal(k1, (3, cin, cout), jnp.float32) / math.sqrt(3 * cin)
    s1, b1 = _fold_bn(k2, cout)
    w2 = jax.random.normal(k3, (3, cout, cout), jnp.float32) / math.sqrt(3 * cout)
    s2, b2 = _fold_bn(k4, cout)
    return (w1, s1, b1, w2, s2, b2)


def make_dec_block_params(key, c_up, c_skip, cout):
    """Decoder block whose first conv input is concat([upconv_out, skip]).
    The weight is stored split along Cin so the kernel avoids the concat."""
    k1, k2, k3, k4 = jax.random.split(key, 4)
    cin = c_up + c_skip
    w1 = jax.random.normal(k1, (3, cin, cout), jnp.float32) / math.sqrt(3 * cin)
    w1a, w1b = w1[:, :c_up, :], w1[:, c_up:, :]
    s1, b1 = _fold_bn(k2, cout)
    w2 = jax.random.normal(k3, (3, cout, cout), jnp.float32) / math.sqrt(3 * cout)
    s2, b2 = _fold_bn(k4, cout)
    return (w1a, w1b, s1, b1, w2, s2, b2)


def make_upconv_params(key, cin, cout):
    k1, k2 = jax.random.split(key)
    w = jax.random.normal(k1, (2, cin, cout), jnp.float32) / math.sqrt(2 * cin)
    b = 0.1 * jax.random.normal(k2, (1, cout), jnp.float32)
    return (w, b)


def make_final_params(key, cin, cout):
    k1, k2 = jax.random.split(key)
    w = jax.random.normal(k1, (cin, cout), jnp.float32) / math.sqrt(cin)
    b = 0.1 * jax.random.normal(k2, (1, cout), jnp.float32)
    return (w, b)


def init_params(key, in_channels=1, out_channels=1, channels=(32, 64, 128)):
    c0, c1, c2 = channels
    ks = jax.random.split(key, 8)
    return {
        "enc1": make_block_params(ks[0], in_channels, c0),
        "enc2": make_block_params(ks[1], c0, c1),
        "bott": make_block_params(ks[2], c1, c2),
        "up2": make_upconv_params(ks[3], c2, c1),
        "dec2": make_dec_block_params(ks[4], c1, c1, c1),
        "up1": make_upconv_params(ks[5], c1, c0),
        "dec1": make_dec_block_params(ks[6], c0, c0, c0),
        "final": make_final_params(ks[7], c0, out_channels),
    }


if __name__ == "__main__":
    key = jax.random.PRNGKey(0)
    kx, kp = jax.random.split(key)
    B, L = 2, 16
    x = jax.random.normal(kx, (B, L), jnp.float32)
    params = init_params(kp)

    out = jax.jit(unet1d_forward)(x, params)
    out = jax.block_until_ready(out)

    assert out.shape == (B, L), out.shape
    assert bool(jnp.all(jnp.isfinite(out)))
    print("KERNEL_OK")
</pallas_src>

<mosaic_0001>
module attributes {stable_mosaic.version = 11 : i64} {
  func.func @unet_kernel(%arg0: i32, %arg1: memref<1x16x1xf32, #tpu.memory_space<vmem>>, %arg2: memref<3x1x32xf32, #tpu.memory_space<vmem>>, %arg3: memref<1x32xf32, #tpu.memory_space<vmem>>, %arg4: memref<1x32xf32, #tpu.memory_space<vmem>>, %arg5: memref<3x32x32xf32, #tpu.memory_space<vmem>>, %arg6: memref<1x32xf32, #tpu.memory_space<vmem>>, %arg7: memref<1x32xf32, #tpu.memory_space<vmem>>, %arg8: memref<3x32x64xf32, #tpu.memory_space<vmem>>, %arg9: memref<1x64xf32, #tpu.memory_space<vmem>>, %arg10: memref<1x64xf32, #tpu.memory_space<vmem>>, %arg11: memref<3x64x64xf32, #tpu.memory_space<vmem>>, %arg12: memref<1x64xf32, #tpu.memory_space<vmem>>, %arg13: memref<1x64xf32, #tpu.memory_space<vmem>>, %arg14: memref<3x64x128xf32, #tpu.memory_space<vmem>>, %arg15: memref<1x128xf32, #tpu.memory_space<vmem>>, %arg16: memref<1x128xf32, #tpu.memory_space<vmem>>, %arg17: memref<3x128x128xf32, #tpu.memory_space<vmem>>, %arg18: memref<1x128xf32, #tpu.memory_space<vmem>>, %arg19: memref<1x128xf32, #tpu.memory_space<vmem>>, %arg20: memref<2x128x64xf32, #tpu.memory_space<vmem>>, %arg21: memref<1x64xf32, #tpu.memory_space<vmem>>, %arg22: memref<3x64x64xf32, #tpu.memory_space<vmem>>, %arg23: memref<3x64x64xf32, #tpu.memory_space<vmem>>, %arg24: memref<1x64xf32, #tpu.memory_space<vmem>>, %arg25: memref<1x64xf32, #tpu.memory_space<vmem>>, %arg26: memref<3x64x64xf32, #tpu.memory_space<vmem>>, %arg27: memref<1x64xf32, #tpu.memory_space<vmem>>, %arg28: memref<1x64xf32, #tpu.memory_space<vmem>>, %arg29: memref<2x64x32xf32, #tpu.memory_space<vmem>>, %arg30: memref<1x32xf32, #tpu.memory_space<vmem>>, %arg31: memref<3x32x32xf32, #tpu.memory_space<vmem>>, %arg32: memref<3x32x32xf32, #tpu.memory_space<vmem>>, %arg33: memref<1x32xf32, #tpu.memory_space<vmem>>, %arg34: memref<1x32xf32, #tpu.memory_space<vmem>>, %arg35: memref<3x32x32xf32, #tpu.memory_space<vmem>>, %arg36: memref<1x32xf32, #tpu.memory_space<vmem>>, %arg37: memref<1x32xf32, #tpu.memory_space<vmem>>, %arg38: memref<32x1xf32, #tpu.memory_space<vmem>>, %arg39: memref<1x1xf32, #tpu.memory_space<vmem>>, %arg40: memref<1x16x1xf32, #tpu.memory_space<vmem>>, %arg41: memref<16x32xf32, #tpu.memory_space<vmem>>, %arg42: memref<8x64xf32, #tpu.memory_space<vmem>>, %arg43: memref<8x64xf32, #tpu.memory_space<vmem>>, %arg44: memref<16x32xf32, #tpu.memory_space<vmem>>) attributes {dimension_semantics = [#tpu.dimension_semantics<parallel>], iteration_bounds = array<i64: 2>, scalar_prefetch = 0 : i64, scratch_operands = 4 : i64, tpu.core_type = #tpu.core_type<tc>, window_params = [{transform_indices = @transform_0, window_bounds = array<i64: 1, 16, 1>}, {pipeline_mode = #tpu.pipeline_mode<synchronous>, transform_indices = @transform_1, window_bounds = array<i64: 3, 1, 32>}, {pipeline_mode = #tpu.pipeline_mode<synchronous>, transform_indices = @transform_2, window_bounds = array<i64: 1, 32>}, {pipeline_mode = #tpu.pipeline_mode<synchronous>, transform_indices = @transform_3, window_bounds = array<i64: 1, 32>}, {pipeline_mode = #tpu.pipeline_mode<synchronous>, transform_indices = @transform_4, window_bounds = array<i64: 3, 32, 32>}, {pipeline_mode = #tpu.pipeline_mode<synchronous>, transform_indices = @transform_5, window_bounds = array<i64: 1, 32>}, {pipeline_mode = #tpu.pipeline_mode<synchronous>, transform_indices = @transform_6, window_bounds = array<i64: 1, 32>}, {pipeline_mode = #tpu.pipeline_mode<synchronous>, transform_indices = @transform_7, window_bounds = array<i64: 3, 32, 64>}, {pipeline_mode = #tpu.pipeline_mode<synchronous>, transform_indices = @transform_8, window_bounds = array<i64: 1, 64>}, {pipeline_mode = #tpu.pipeline_mode<synchronous>, transform_indices = @transform_9, window_bounds = array<i64: 1, 64>}, {pipeline_mode = #tpu.pipeline_mode<synchronous>, transform_indices = @transform_10, window_bounds = array<i64: 3, 64, 64>}, {pipeline_mode = #tpu.pipeline_mode<synchronous>, transform_indices = @transform_11, window_bounds = array<i64: 1, 64>}, {pipeline_mode = #tpu.pipeline_mode<synchronous>, transform_indices = @transform_12, window_bounds = array<i64: 1, 64>}, {pipeline_mode = #tpu.pipeline_mode<synchronous>, transform_indices = @transform_13, window_bounds = array<i64: 3, 64, 128>}, {pipeline_mode = #tpu.pipeline_mode<synchronous>, transform_indices = @transform_14, window_bounds = array<i64: 1, 128>}, {pipeline_mode = #tpu.pipeline_mode<synchronous>, transform_indices = @transform_15, window_bounds = array<i64: 1, 128>}, {pipeline_mode = #tpu.pipeline_mode<synchronous>, transform_indices = @transform_16, window_bounds = array<i64: 3, 128, 128>}, {pipeline_mode = #tpu.pipeline_mode<synchronous>, transform_indices = @transform_17, window_bounds = array<i64: 1, 128>}, {pipeline_mode = #tpu.pipeline_mode<synchronous>, transform_indices = @transform_18, window_bounds = array<i64: 1, 128>}, {pipeline_mode = #tpu.pipeline_mode<synchronous>, transform_indices = @transform_19, window_bounds = array<i64: 2, 128, 64>}, {pipeline_mode = #tpu.pipeline_mode<synchronous>, transform_indices = @transform_20, window_bounds = array<i64: 1, 64>}, {pipeline_mode = #tpu.pipeline_mode<synchronous>, transform_indices = @transform_21, window_bounds = array<i64: 3, 64, 64>}, {pipeline_mode = #tpu.pipeline_mode<synchronous>, transform_indices = @transform_22, window_bounds = array<i64: 3, 64, 64>}, {pipeline_mode = #tpu.pipeline_mode<synchronous>, transform_indices = @transform_23, window_bounds = array<i64: 1, 64>}, {pipeline_mode = #tpu.pipeline_mode<synchronous>, transform_indices = @transform_24, window_bounds = array<i64: 1, 64>}, {pipeline_mode = #tpu.pipeline_mode<synchronous>, transform_indices = @transform_25, window_bounds = array<i64: 3, 64, 64>}, {pipeline_mode = #tpu.pipeline_mode<synchronous>, transform_indices = @transform_26, window_bounds = array<i64: 1, 64>}, {pipeline_mode = #tpu.pipeline_mode<synchronous>, transform_indices = @transform_27, window_bounds = array<i64: 1, 64>}, {pipeline_mode = #tpu.pipeline_mode<synchronous>, transform_indices = @transform_28, window_bounds = array<i64: 2, 64, 32>}, {pipeline_mode = #tpu.pipeline_mode<synchronous>, transform_indices = @transform_29, window_bounds = array<i64: 1, 32>}, {pipeline_mode = #tpu.pipeline_mode<synchronous>, transform_indices = @transform_30, window_bounds = array<i64: 3, 32, 32>}, {pipeline_mode = #tpu.pipeline_mode<synchronous>, transform_indices = @transform_31, window_bounds = array<i64: 3, 32, 32>}, {pipeline_mode = #tpu.pipeline_mode<synchronous>, transform_indices = @transform_32, window_bounds = array<i64: 1, 32>}, {pipeline_mode = #tpu.pipeline_mode<synchronous>, transform_indices = @transform_33, window_bounds = array<i64: 1, 32>}, {pipeline_mode = #tpu.pipeline_mode<synchronous>, transform_indices = @transform_34, window_bounds = array<i64: 3, 32, 32>}, {pipeline_mode = #tpu.pipeline_mode<synchronous>, transform_indices = @transform_35, window_bounds = array<i64: 1, 32>}, {pipeline_mode = #tpu.pipeline_mode<synchronous>, transform_indices = @transform_36, window_bounds = array<i64: 1, 32>}, {pipeline_mode = #tpu.pipeline_mode<synchronous>, transform_indices = @transform_37, window_bounds = array<i64: 32, 1>}, {pipeline_mode = #tpu.pipeline_mode<synchronous>, transform_indices = @transform_38, window_bounds = array<i64: 1, 1>}, {transform_indices = @transform_39, window_bounds = array<i64: 1, 16, 1>}]} {
    %c0 = arith.constant 0 : index
    %c0_0 = arith.constant 0 : index
    %c0_1 = arith.constant 0 : index
    %0 = vector.load %arg1[%c0, %c0_0, %c0_1] : memref<1x16x1xf32, #tpu.memory_space<vmem>>, vector<1x16x1xf32>
    %1 = vector.shape_cast %0 : vector<1x16x1xf32> to vector<16x1xf32>
    %cst = arith.constant 0.000000e+00 : f32
    %2 = vector.broadcast %cst : f32 to vector<1x1xf32>
    %3 = vector.extract_strided_slice %1 {offsets = [0, 0], sizes = [15, 1], strides = [1, 1]} : vector<16x1xf32> to vector<15x1xf32>
    %4 = tpu.concatenate %2, %3 in 0 : vector<1x1xf32>, vector<15x1xf32> -> vector<16x1xf32>
    %c0_2 = arith.constant 0 : index
    %c0_3 = arith.constant 0 : index
    %c0_4 = arith.constant 0 : index
    %5 = vector.load %arg2[%c0_2, %c0_3, %c0_4] : memref<3x1x32xf32, #tpu.memory_space<vmem>>, vector<1x1x32xf32>
    %6 = vector.shape_cast %5 : vector<1x1x32xf32> to vector<1x32xf32>
    %cst_5 = arith.constant dense<0.000000e+00> : vector<16x32xf32>
    %7 = tpu.matmul %4, %6, %cst_5 {dimension_numbers = #tpu.dot_dimension_numbers<[1], [0], [0], [1], [0, 0, 1, 1], [], []>} : vector<16x1xf32>, vector<1x32xf32>, vector<16x32xf32> -> vector<16x32xf32>
    %c1 = arith.constant 1 : index
    %c0_6 = arith.constant 0 : index
    %c0_7 = arith.constant 0 : index
    %8 = vector.load %arg2[%c1, %c0_6, %c0_7] : memref<3x1x32xf32, #tpu.memory_space<vmem>>, vector<1x1x32xf32>
    %9 = vector.shape_cast %8 : vector<1x1x32xf32> to vector<1x32xf32>
    %cst_8 = arith.constant dense<0.000000e+00> : vector<16x32xf32>
    %10 = tpu.matmul %1, %9, %cst_8 {dimension_numbers = #tpu.dot_dimension_numbers<[1], [0], [0], [1], [0, 0, 1, 1], [], []>} : vector<16x1xf32>, vector<1x32xf32>, vector<16x32xf32> -> vector<16x32xf32>
    %11 = arith.addf %7, %10 : vector<16x32xf32>
    %cst_9 = arith.constant 0.000000e+00 : f32
    %12 = vector.broadcast %cst_9 : f32 to vector<1x1xf32>
    %13 = vector.extract_strided_slice %1 {offsets = [1, 0], sizes = [15, 1], strides = [1, 1]} : vector<16x1xf32> to vector<15x1xf32>
    %14 = tpu.concatenate %13, %12 in 0 : vector<15x1xf32>, vector<1x1xf32> -> vector<16x1xf32>
    %c2 = arith.constant 2 : index
    %c0_10 = arith.constant 0 : index
    %c0_11 = arith.constant 0 : index
    %15 = vector.load %arg2[%c2, %c0_10, %c0_11] : memref<3x1x32xf32, #tpu.memory_space<vmem>>, vector<1x1x32xf32>
    %16 = vector.shape_cast %15 : vector<1x1x32xf32> to vector<1x32xf32>
    %cst_12 = arith.constant dense<0.000000e+00> : vector<16x32xf32>
    %17 = tpu.matmul %14, %16, %cst_12 {dimension_numbers = #tpu.dot_dimension_numbers<[1], [0], [0], [1], [0, 0, 1, 1], [], []>} : vector<16x1xf32>, vector<1x32xf32>, vector<16x32xf32> -> vector<16x32xf32>
    %18 = arith.addf %11, %17 : vector<16x32xf32>
    %c0_13 = arith.constant 0 : index
    %c0_14 = arith.constant 0 : index
    %19 = vector.load %arg3[%c0_13, %c0_14] : memref<1x32xf32, #tpu.memory_space<vmem>>, vector<1x32xf32>
    %20 = vector.broadcast %19 : vector<1x32xf32> to vector<16x32xf32>
    %21 = arith.mulf %18, %20 : vector<16x32xf32>
    %c0_15 = arith.constant 0 : index
    %c0_16 = arith.constant 0 : index
    %22 = vector.load %arg4[%c0_15, %c0_16] : memref<1x32xf32, #tpu.memory_space<vmem>>, vector<1x32xf32>
    %23 = vector.broadcast %22 : vector<1x32xf32> to vector<16x32xf32>
    %24 = arith.addf %21, %23 : vector<16x32xf32>
    %cst_17 = arith.constant 0.000000e+00 : f32
    %25 = vector.broadcast %cst_17 : f32 to vector<16x32xf32>
    %26 = arith.maximumf %24, %25 : vector<16x32xf32>
    %cst_18 = arith.constant 0.000000e+00 : f32
    %27 = vector.broadcast %cst_18 : f32 to vector<1x32xf32>
    %28 = vector.extract_strided_slice %26 {offsets = [0, 0], sizes = [15, 32], strides = [1, 1]} : vector<16x32xf32> to vector<15x32xf32>
    %29 = tpu.concatenate %27, %28 in 0 : vector<1x32xf32>, vector<15x32xf32> -> vector<16x32xf32>
    %c0_19 = arith.constant 0 : index
    %c0_20 = arith.constant 0 : index
    %c0_21 = arith.constant 0 : index
    %30 = vector.load %arg5[%c0_19, %c0_20, %c0_21] : memref<3x32x32xf32, #tpu.memory_space<vmem>>, vector<1x32x32xf32>
    %31 = vector.shape_cast %30 : vector<1x32x32xf32> to vector<32x32xf32>
    %cst_22 = arith.constant dense<0.000000e+00> : vector<16x32xf32>
    %32 = tpu.matmul %29, %31, %cst_22 {dimension_numbers = #tpu.dot_dimension_numbers<[1], [0], [0], [1], [0, 0, 1, 1], [], []>} : vector<16x32xf32>, vector<32x32xf32>, vector<16x32xf32> -> vector<16x32xf32>
    %c1_23 = arith.constant 1 : index
    %c0_24 = arith.constant 0 : index
    %c0_25 = arith.constant 0 : index
    %33 = vector.load %arg5[%c1_23, %c0_24, %c0_25] : memref<3x32x32xf32, #tpu.memory_space<vmem>>, vector<1x32x32xf32>
    %34 = vector.shape_cast %33 : vector<1x32x32xf32> to vector<32x32xf32>
    %cst_26 = arith.constant dense<0.000000e+00> : vector<16x32xf32>
    %35 = tpu.matmul %26, %34, %cst_26 {dimension_numbers = #tpu.dot_dimension_numbers<[1], [0], [0], [1], [0, 0, 1, 1], [], []>} : vector<16x32xf32>, vector<32x32xf32>, vector<16x32xf32> -> vector<16x32xf32>
    %36 = arith.addf %32, %35 : vector<16x32xf32>
    %cst_27 = arith.constant 0.000000e+00 : f32
    %37 = vector.broadcast %cst_27 : f32 to vector<1x32xf32>
    %38 = vector.extract_strided_slice %26 {offsets = [1, 0], sizes = [15, 32], strides = [1, 1]} : vector<16x32xf32> to vector<15x32xf32>
    %39 = tpu.concatenate %38, %37 in 0 : vector<15x32xf32>, vector<1x32xf32> -> vector<16x32xf32>
    %c2_28 = arith.constant 2 : index
    %c0_29 = arith.constant 0 : index
    %c0_30 = arith.constant 0 : index
    %40 = vector.load %arg5[%c2_28, %c0_29, %c0_30] : memref<3x32x32xf32, #tpu.memory_space<vmem>>, vector<1x32x32xf32>
    %41 = vector.shape_cast %40 : vector<1x32x32xf32> to vector<32x32xf32>
    %cst_31 = arith.constant dense<0.000000e+00> : vector<16x32xf32>
    %42 = tpu.matmul %39, %41, %cst_31 {dimension_numbers = #tpu.dot_dimension_numbers<[1], [0], [0], [1], [0, 0, 1, 1], [], []>} : vector<16x32xf32>, vector<32x32xf32>, vector<16x32xf32> -> vector<16x32xf32>
    %43 = arith.addf %36, %42 : vector<16x32xf32>
    %c0_32 = arith.constant 0 : index
    %c0_33 = arith.constant 0 : index
    %44 = vector.load %arg6[%c0_32, %c0_33] : memref<1x32xf32, #tpu.memory_space<vmem>>, vector<1x32xf32>
    %45 = vector.broadcast %44 : vector<1x32xf32> to vector<16x32xf32>
    %46 = arith.mulf %43, %45 : vector<16x32xf32>
    %c0_34 = arith.constant 0 : index
    %c0_35 = arith.constant 0 : index
    %47 = vector.load %arg7[%c0_34, %c0_35] : memref<1x32xf32, #tpu.memory_space<vmem>>, vector<1x32xf32>
    %48 = vector.broadcast %47 : vector<1x32xf32> to vector<16x32xf32>
    %49 = arith.addf %46, %48 : vector<16x32xf32>
    %cst_36 = arith.constant 0.000000e+00 : f32
    %50 = vector.broadcast %cst_36 : f32 to vector<16x32xf32>
    %51 = arith.maximumf %49, %50 : vector<16x32xf32>
    %c0_37 = arith.constant 0 : index
    %c0_38 = arith.constant 0 : index
    %52 = vector.load %arg41[%c0_37, %c0_38] : memref<16x32xf32, #tpu.memory_space<vmem>>, vector<16x32xf32>
    tpu.vector_store %arg41[%c0_37, %c0_38], %51 {strides = array<i32>} : memref<16x32xf32, #tpu.memory_space<vmem>>, vector<16x32xf32>,
    %c0_39 = arith.constant 0 : index
    %c0_40 = arith.constant 0 : index
    %53 = tpu.strided_load %arg41[%c0_39, %c0_40] {strides = array<i32: 2, 1>} : memref<16x32xf32, #tpu.memory_space<vmem>>, vector<8x32xf32>
    %c1_41 = arith.constant 1 : index
    %c0_42 = arith.constant 0 : index
    %54 = tpu.strided_load %arg41[%c1_41, %c0_42] {strides = array<i32: 2, 1>} : memref<16x32xf32, #tpu.memory_space<vmem>>, vector<8x32xf32>
    %55 = arith.maximumf %53, %54 : vector<8x32xf32>
    %cst_43 = arith.constant 0.000000e+00 : f32
    %56 = vector.broadcast %cst_43 : f32 to vector<1x32xf32>
    %57 = vector.extract_strided_slice %55 {offsets = [0, 0], sizes = [7, 32], strides = [1, 1]} : vector<8x32xf32> to vector<7x32xf32>
    %58 = tpu.concatenate %56, %57 in 0 : vector<1x32xf32>, vector<7x32xf32> -> vector<8x32xf32>
    %c0_44 = arith.constant 0 : index
    %c0_45 = arith.constant 0 : index
    %c0_46 = arith.constant 0 : index
    %59 = vector.load %arg8[%c0_44, %c0_45, %c0_46] : memref<3x32x64xf32, #tpu.memory_space<vmem>>, vector<1x32x64xf32>
    %60 = vector.shape_cast %59 : vector<1x32x64xf32> to vector<32x64xf32>
    %cst_47 = arith.constant dense<0.000000e+00> : vector<8x64xf32>
    %61 = tpu.matmul %58, %60, %cst_47 {dimension_numbers = #tpu.dot_dimension_numbers<[1], [0], [0], [1], [0, 0, 1, 1], [], []>} : vector<8x32xf32>, vector<32x64xf32>, vector<8x64xf32> -> vector<8x64xf32>
    %c1_48 = arith.constant 1 : index
    %c0_49 = arith.constant 0 : index
    %c0_50 = arith.constant 0 : index
    %62 = vector.load %arg8[%c1_48, %c0_49, %c0_50] : memref<3x32x64xf32, #tpu.memory_space<vmem>>, vector<1x32x64xf32>
    %63 = vector.shape_cast %62 : vector<1x32x64xf32> to vector<32x64xf32>
    %cst_51 = arith.constant dense<0.000000e+00> : vector<8x64xf32>
    %64 = tpu.matmul %55, %63, %cst_51 {dimension_numbers = #tpu.dot_dimension_numbers<[1], [0], [0], [1], [0, 0, 1, 1], [], []>} : vector<8x32xf32>, vector<32x64xf32>, vector<8x64xf32> -> vector<8x64xf32>
    %65 = arith.addf %61, %64 : vector<8x64xf32>
    %cst_52 = arith.constant 0.000000e+00 : f32
    %66 = vector.broadcast %cst_52 : f32 to vector<1x32xf32>
    %67 = vector.extract_strided_slice %55 {offsets = [1, 0], sizes = [7, 32], strides = [1, 1]} : vector<8x32xf32> to vector<7x32xf32>
    %68 = tpu.concatenate %67, %66 in 0 : vector<7x32xf32>, vector<1x32xf32> -> vector<8x32xf32>
    %c2_53 = arith.constant 2 : index
    %c0_54 = arith.constant 0 : index
    %c0_55 = arith.constant 0 : index
    %69 = vector.load %arg8[%c2_53, %c0_54, %c0_55] : memref<3x32x64xf32, #tpu.memory_space<vmem>>, vector<1x32x64xf32>
    %70 = vector.shape_cast %69 : vector<1x32x64xf32> to vector<32x64xf32>
    %cst_56 = arith.constant dense<0.000000e+00> : vector<8x64xf32>
    %71 = tpu.matmul %68, %70, %cst_56 {dimension_numbers = #tpu.dot_dimension_numbers<[1], [0], [0], [1], [0, 0, 1, 1], [], []>} : vector<8x32xf32>, vector<32x64xf32>, vector<8x64xf32> -> vector<8x64xf32>
    %72 = arith.addf %65, %71 : vector<8x64xf32>
    %c0_57 = arith.constant 0 : index
    %c0_58 = arith.constant 0 : index
    %73 = vector.load %arg9[%c0_57, %c0_58] : memref<1x64xf32, #tpu.memory_space<vmem>>, vector<1x64xf32>
    %74 = vector.broadcast %73 : vector<1x64xf32> to vector<8x64xf32>
    %75 = arith.mulf %72, %74 : vector<8x64xf32>
    %c0_59 = arith.constant 0 : index
    %c0_60 = arith.constant 0 : index
    %76 = vector.load %arg10[%c0_59, %c0_60] : memref<1x64xf32, #tpu.memory_space<vmem>>, vector<1x64xf32>
    %77 = vector.broadcast %76 : vector<1x64xf32> to vector<8x64xf32>
    %78 = arith.addf %75, %77 : vector<8x64xf32>
    %cst_61 = arith.constant 0.000000e+00 : f32
    %79 = vector.broadcast %cst_61 : f32 to vector<8x64xf32>
    %80 = arith.maximumf %78, %79 : vector<8x64xf32>
    %cst_62 = arith.constant 0.000000e+00 : f32
    %81 = vector.broadcast %cst_62 : f32 to vector<1x64xf32>
    %82 = vector.extract_strided_slice %80 {offsets = [0, 0], sizes = [7, 64], strides = [1, 1]} : vector<8x64xf32> to vector<7x64xf32>
    %83 = tpu.concatenate %81, %82 in 0 : vector<1x64xf32>, vector<7x64xf32> -> vector<8x64xf32>
    %c0_63 = arith.constant 0 : index
    %c0_64 = arith.constant 0 : index
    %c0_65 = arith.constant 0 : index
    %84 = vector.load %arg11[%c0_63, %c0_64, %c0_65] : memref<3x64x64xf32, #tpu.memory_space<vmem>>, vector<1x64x64xf32>
    %85 = vector.shape_cast %84 : vector<1x64x64xf32> to vector<64x64xf32>
    %cst_66 = arith.constant dense<0.000000e+00> : vector<8x64xf32>
    %86 = tpu.matmul %83, %85, %cst_66 {dimension_numbers = #tpu.dot_dimension_numbers<[1], [0], [0], [1], [0, 0, 1, 1], [], []>} : vector<8x64xf32>, vector<64x64xf32>, vector<8x64xf32> -> vector<8x64xf32>
    %c1_67 = arith.constant 1 : index
    %c0_68 = arith.constant 0 : index
    %c0_69 = arith.constant 0 : index
    %87 = vector.load %arg11[%c1_67, %c0_68, %c0_69] : memref<3x64x64xf32, #tpu.memory_space<vmem>>, vector<1x64x64xf32>
    %88 = vector.shape_cast %87 : vector<1x64x64xf32> to vector<64x64xf32>
    %cst_70 = arith.constant dense<0.000000e+00> : vector<8x64xf32>
    %89 = tpu.matmul %80, %88, %cst_70 {dimension_numbers = #tpu.dot_dimension_numbers<[1], [0], [0], [1], [0, 0, 1, 1], [], []>} : vector<8x64xf32>, vector<64x64xf32>, vector<8x64xf32> -> vector<8x64xf32>
    %90 = arith.addf %86, %89 : vector<8x64xf32>
    %cst_71 = arith.constant 0.000000e+00 : f32
    %91 = vector.broadcast %cst_71 : f32 to vector<1x64xf32>
    %92 = vector.extract_strided_slice %80 {offsets = [1, 0], sizes = [7, 64], strides = [1, 1]} : vector<8x64xf32> to vector<7x64xf32>
    %93 = tpu.concatenate %92, %91 in 0 : vector<7x64xf32>, vector<1x64xf32> -> vector<8x64xf32>
    %c2_72 = arith.constant 2 : index
    %c0_73 = arith.constant 0 : index
    %c0_74 = arith.constant 0 : index
    %94 = vector.load %arg11[%c2_72, %c0_73, %c0_74] : memref<3x64x64xf32, #tpu.memory_space<vmem>>, vector<1x64x64xf32>
    %95 = vector.shape_cast %94 : vector<1x64x64xf32> to vector<64x64xf32>
    %cst_75 = arith.constant dense<0.000000e+00> : vector<8x64xf32>
    %96 = tpu.matmul %93, %95, %cst_75 {dimension_numbers = #tpu.dot_dimension_numbers<[1], [0], [0], [1], [0, 0, 1, 1], [], []>} : vector<8x64xf32>, vector<64x64xf32>, vector<8x64xf32> -> vector<8x64xf32>
    %97 = arith.addf %90, %96 : vector<8x64xf32>
    %c0_76 = arith.constant 0 : index
    %c0_77 = arith.constant 0 : index
    %98 = vector.load %arg12[%c0_76, %c0_77] : memref<1x64xf32, #tpu.memory_space<vmem>>, vector<1x64xf32>
    %99 = vector.broadcast %98 : vector<1x64xf32> to vector<8x64xf32>
    %100 = arith.mulf %97, %99 : vector<8x64xf32>
    %c0_78 = arith.constant 0 : index
    %c0_79 = arith.constant 0 : index
    %101 = vector.load %arg13[%c0_78, %c0_79] : memref<1x64xf32, #tpu.memory_space<vmem>>, vector<1x64xf32>
    %102 = vector.broadcast %101 : vector<1x64xf32> to vector<8x64xf32>
    %103 = arith.addf %100, %102 : vector<8x64xf32>
    %cst_80 = arith.constant 0.000000e+00 : f32
    %104 = vector.broadcast %cst_80 : f32 to vector<8x64xf32>
    %105 = arith.maximumf %103, %104 : vector<8x64xf32>
    %c0_81 = arith.constant 0 : index
    %c0_82 = arith.constant 0 : index
    %106 = vector.load %arg42[%c0_81, %c0_82] : memref<8x64xf32, #tpu.memory_space<vmem>>, vector<8x64xf32>
    tpu.vector_store %arg42[%c0_81, %c0_82], %105 {strides = array<i32>} : memref<8x64xf32, #tpu.memory_space<vmem>>, vector<8x64xf32>,
    %c0_83 = arith.constant 0 : index
    %c0_84 = arith.constant 0 : index
    %107 = tpu.strided_load %arg42[%c0_83, %c0_84] {strides = array<i32: 2, 1>} : memref<8x64xf32, #tpu.memory_space<vmem>>, vector<4x64xf32>
    %c1_85 = arith.constant 1 : index
    %c0_86 = arith.constant 0 : index
    %108 = tpu.strided_load %arg42[%c1_85, %c0_86] {strides = array<i32: 2, 1>} : memref<8x64xf32, #tpu.memory_space<vmem>>, vector<4x64xf32>
    %109 = arith.maximumf %107, %108 : vector<4x64xf32>
    %cst_87 = arith.constant 0.000000e+00 : f32
    %110 = vector.broadcast %cst_87 : f32 to vector<1x64xf32>
    %111 = vector.extract_strided_slice %109 {offsets = [0, 0], sizes = [3, 64], strides = [1, 1]} : vector<4x64xf32> to vector<3x64xf32>
    %112 = tpu.concatenate %110, %111 in 0 : vector<1x64xf32>, vector<3x64xf32> -> vector<4x64xf32>
    %c0_88 = arith.constant 0 : index
    %c0_89 = arith.constant 0 : index
    %c0_90 = arith.constant 0 : index
    %113 = vector.load %arg14[%c0_88, %c0_89, %c0_90] : memref<3x64x128xf32, #tpu.memory_space<vmem>>, vector<1x64x128xf32>
    %114 = vector.shape_cast %113 : vector<1x64x128xf32> to vector<64x128xf32>
    %cst_91 = arith.constant dense<0.000000e+00> : vector<4x128xf32>
    %115 = tpu.matmul %112, %114, %cst_91 {dimension_numbers = #tpu.dot_dimension_numbers<[1], [0], [0], [1], [0, 0, 1, 1], [], []>} : vector<4x64xf32>, vector<64x128xf32>, vector<4x128xf32> -> vector<4x128xf32>
    %c1_92 = arith.constant 1 : index
    %c0_93 = arith.constant 0 : index
    %c0_94 = arith.constant 0 : index
    %116 = vector.load %arg14[%c1_92, %c0_93, %c0_94] : memref<3x64x128xf32, #tpu.memory_space<vmem>>, vector<1x64x128xf32>
    %117 = vector.shape_cast %116 : vector<1x64x128xf32> to vector<64x128xf32>
    %cst_95 = arith.constant dense<0.000000e+00> : vector<4x128xf32>
    %118 = tpu.matmul %109, %117, %cst_95 {dimension_numbers = #tpu.dot_dimension_numbers<[1], [0], [0], [1], [0, 0, 1, 1], [], []>} : vector<4x64xf32>, vector<64x128xf32>, vector<4x128xf32> -> vector<4x128xf32>
    %119 = arith.addf %115, %118 : vector<4x128xf32>
    %cst_96 = arith.constant 0.000000e+00 : f32
    %120 = vector.broadcast %cst_96 : f32 to vector<1x64xf32>
    %121 = vector.extract_strided_slice %109 {offsets = [1, 0], sizes = [3, 64], strides = [1, 1]} : vector<4x64xf32> to vector<3x64xf32>
    %122 = tpu.concatenate %121, %120 in 0 : vector<3x64xf32>, vector<1x64xf32> -> vector<4x64xf32>
    %c2_97 = arith.constant 2 : index
    %c0_98 = arith.constant 0 : index
    %c0_99 = arith.constant 0 : index
    %123 = vector.load %arg14[%c2_97, %c0_98, %c0_99] : memref<3x64x128xf32, #tpu.memory_space<vmem>>, vector<1x64x128xf32>
    %124 = vector.shape_cast %123 : vector<1x64x128xf32> to vector<64x128xf32>
    %cst_100 = arith.constant dense<0.000000e+00> : vector<4x128xf32>
    %125 = tpu.matmul %122, %124, %cst_100 {dimension_numbers = #tpu.dot_dimension_numbers<[1], [0], [0], [1], [0, 0, 1, 1], [], []>} : vector<4x64xf32>, vector<64x128xf32>, vector<4x128xf32> -> vector<4x128xf32>
    %126 = arith.addf %119, %125 : vector<4x128xf32>
    %c0_101 = arith.constant 0 : index
    %c0_102 = arith.constant 0 : index
    %127 = vector.load %arg15[%c0_101, %c0_102] : memref<1x128xf32, #tpu.memory_space<vmem>>, vector<1x128xf32>
    %128 = vector.broadcast %127 : vector<1x128xf32> to vector<4x128xf32>
    %129 = arith.mulf %126, %128 : vector<4x128xf32>
    %c0_103 = arith.constant 0 : index
    %c0_104 = arith.constant 0 : index
    %130 = vector.load %arg16[%c0_103, %c0_104] : memref<1x128xf32, #tpu.memory_space<vmem>>, vector<1x128xf32>
    %131 = vector.broadcast %130 : vector<1x128xf32> to vector<4x128xf32>
    %132 = arith.addf %129, %131 : vector<4x128xf32>
    %cst_105 = arith.constant 0.000000e+00 : f32
    %133 = vector.broadcast %cst_105 : f32 to vector<4x128xf32>
    %134 = arith.maximumf %132, %133 : vector<4x128xf32>
    %cst_106 = arith.constant 0.000000e+00 : f32
    %135 = vector.broadcast %cst_106 : f32 to vector<1x128xf32>
    %136 = vector.extract_strided_slice %134 {offsets = [0, 0], sizes = [3, 128], strides = [1, 1]} : vector<4x128xf32> to vector<3x128xf32>
    %137 = tpu.concatenate %135, %136 in 0 : vector<1x128xf32>, vector<3x128xf32> -> vector<4x128xf32>
    %c0_107 = arith.constant 0 : index
    %c0_108 = arith.constant 0 : index
    %c0_109 = arith.constant 0 : index
    %138 = vector.load %arg17[%c0_107, %c0_108, %c0_109] : memref<3x128x128xf32, #tpu.memory_space<vmem>>, vector<1x128x128xf32>
    %139 = vector.shape_cast %138 : vector<1x128x128xf32> to vector<128x128xf32>
    %cst_110 = arith.constant dense<0.000000e+00> : vector<4x128xf32>
    %140 = tpu.matmul %137, %139, %cst_110 {dimension_numbers = #tpu.dot_dimension_numbers<[1], [0], [0], [1], [0, 0, 1, 1], [], []>} : vector<4x128xf32>, vector<128x128xf32>, vector<4x128xf32> -> vector<4x128xf32>
    %c1_111 = arith.constant 1 : index
    %c0_112 = arith.constant 0 : index
    %c0_113 = arith.constant 0 : index
    %141 = vector.load %arg17[%c1_111, %c0_112, %c0_113] : memref<3x128x128xf32, #tpu.memory_space<vmem>>, vector<1x128x128xf32>
    %142 = vector.shape_cast %141 : vector<1x128x128xf32> to vector<128x128xf32>
    %cst_114 = arith.constant dense<0.000000e+00> : vector<4x128xf32>
    %143 = tpu.matmul %134, %142, %cst_114 {dimension_numbers = #tpu.dot_dimension_numbers<[1], [0], [0], [1], [0, 0, 1, 1], [], []>} : vector<4x128xf32>, vector<128x128xf32>, vector<4x128xf32> -> vector<4x128xf32>
    %144 = arith.addf %140, %143 : vector<4x128xf32>
    %cst_115 = arith.constant 0.000000e+00 : f32
    %145 = vector.broadcast %cst_115 : f32 to vector<1x128xf32>
    %146 = vector.extract_strided_slice %134 {offsets = [1, 0], sizes = [3, 128], strides = [1, 1]} : vector<4x128xf32> to vector<3x128xf32>
    %147 = tpu.concatenate %146, %145 in 0 : vector<3x128xf32>, vector<1x128xf32> -> vector<4x128xf32>
    %c2_116 = arith.constant 2 : index
    %c0_117 = arith.constant 0 : index
    %c0_118 = arith.constant 0 : index
    %148 = vector.load %arg17[%c2_116, %c0_117, %c0_118] : memref<3x128x128xf32, #tpu.memory_space<vmem>>, vector<1x128x128xf32>
    %149 = vector.shape_cast %148 : vector<1x128x128xf32> to vector<128x128xf32>
    %cst_119 = arith.constant dense<0.000000e+00> : vector<4x128xf32>
    %150 = tpu.matmul %147, %149, %cst_119 {dimension_numbers = #tpu.dot_dimension_numbers<[1], [0], [0], [1], [0, 0, 1, 1], [], []>} : vector<4x128xf32>, vector<128x128xf32>, vector<4x128xf32> -> vector<4x128xf32>
    %151 = arith.addf %144, %150 : vector<4x128xf32>
    %c0_120 = arith.constant 0 : index
    %c0_121 = arith.constant 0 : index
    %152 = vector.load %arg18[%c0_120, %c0_121] : memref<1x128xf32, #tpu.memory_space<vmem>>, vector<1x128xf32>
    %153 = vector.broadcast %152 : vector<1x128xf32> to vector<4x128xf32>
    %154 = arith.mulf %151, %153 : vector<4x128xf32>
    %c0_122 = arith.constant 0 : index
    %c0_123 = arith.constant 0 : index
    %155 = vector.load %arg19[%c0_122, %c0_123] : memref<1x128xf32, #tpu.memory_space<vmem>>, vector<1x128xf32>
    %156 = vector.broadcast %155 : vector<1x128xf32> to vector<4x128xf32>
    %157 = arith.addf %154, %156 : vector<4x128xf32>
    %cst_124 = arith.constant 0.000000e+00 : f32
    %158 = vector.broadcast %cst_124 : f32 to vector<4x128xf32>
    %159 = arith.maximumf %157, %158 : vector<4x128xf32>
    %c0_125 = arith.constant 0 : index
    %c0_126 = arith.constant 0 : index
    %160 = vector.load %arg21[%c0_125, %c0_126] : memref<1x64xf32, #tpu.memory_space<vmem>>, vector<1x64xf32>
    %c0_127 = arith.constant 0 : index
    %c0_128 = arith.constant 0 : index
    %c0_129 = arith.constant 0 : index
    %161 = vector.load %arg20[%c0_127, %c0_128, %c0_129] : memref<2x128x64xf32, #tpu.memory_space<vmem>>, vector<1x128x64xf32>
    %162 = vector.shape_cast %161 : vector<1x128x64xf32> to vector<128x64xf32>
    %cst_130 = arith.constant dense<0.000000e+00> : vector<4x64xf32>
    %163 = tpu.matmul %159, %162, %cst_130 {dimension_numbers = #tpu.dot_dimension_numbers<[1], [0], [0], [1], [0, 0, 1, 1], [], []>} : vector<4x128xf32>, vector<128x64xf32>, vector<4x64xf32> -> vector<4x64xf32>
    %164 = vector.broadcast %160 : vector<1x64xf32> to vector<4x64xf32>
    %165 = arith.addf %163, %164 : vector<4x64xf32>
    %c0_131 = arith.constant 0 : index
    %c0_132 = arith.constant 0 : index
    %166 = tpu.strided_load %arg43[%c0_131, %c0_132] {strides = array<i32: 2, 1>} : memref<8x64xf32, #tpu.memory_space<vmem>>, vector<4x64xf32>
    tpu.strided_store %arg43[%c0_131, %c0_132], %165 {strides = array<i32: 2, 1>} : memref<8x64xf32, #tpu.memory_space<vmem>>, vector<4x64xf32>
    %c1_133 = arith.constant 1 : index
    %c0_134 = arith.constant 0 : index
    %c0_135 = arith.constant 0 : index
    %167 = vector.load %arg20[%c1_133, %c0_134, %c0_135] : memref<2x128x64xf32, #tpu.memory_space<vmem>>, vector<1x128x64xf32>
    %168 = vector.shape_cast %167 : vector<1x128x64xf32> to vector<128x64xf32>
    %cst_136 = arith.constant dense<0.000000e+00> : vector<4x64xf32>
    %169 = tpu.matmul %159, %168, %cst_136 {dimension_numbers = #tpu.dot_dimension_numbers<[1], [0], [0], [1], [0, 0, 1, 1], [], []>} : vector<4x128xf32>, vector<128x64xf32>, vector<4x64xf32> -> vector<4x64xf32>
    %170 = vector.broadcast %160 : vector<1x64xf32> to vector<4x64xf32>
    %171 = arith.addf %169, %170 : vector<4x64xf32>
    %c1_137 = arith.constant 1 : index
    %c0_138 = arith.constant 0 : index
    %172 = tpu.strided_load %arg43[%c1_137, %c0_138] {strides = array<i32: 2, 1>} : memref<8x64xf32, #tpu.memory_space<vmem>>, vector<4x64xf32>
    tpu.strided_store %arg43[%c1_137, %c0_138], %171 {strides = array<i32: 2, 1>} : memref<8x64xf32, #tpu.memory_space<vmem>>, vector<4x64xf32>
    %c0_139 = arith.constant 0 : index
    %c0_140 = arith.constant 0 : index
    %173 = vector.load %arg43[%c0_139, %c0_140] : memref<8x64xf32, #tpu.memory_space<vmem>>, vector<8x64xf32>
    %cst_141 = arith.constant 0.000000e+00 : f32
    %174 = vector.broadcast %cst_141 : f32 to vector<1x64xf32>
    %175 = vector.extract_strided_slice %173 {offsets = [0, 0], sizes = [7, 64], strides = [1, 1]} : vector<8x64xf32> to vector<7x64xf32>
    %176 = tpu.concatenate %174, %175 in 0 : vector<1x64xf32>, vector<7x64xf32> -> vector<8x64xf32>
    %c0_142 = arith.constant 0 : index
    %c0_143 = arith.constant 0 : index
    %c0_144 = arith.constant 0 : index
    %177 = vector.load %arg22[%c0_142, %c0_143, %c0_144] : memref<3x64x64xf32, #tpu.memory_space<vmem>>, vector<1x64x64xf32>
    %178 = vector.shape_cast %177 : vector<1x64x64xf32> to vector<64x64xf32>
    %cst_145 = arith.constant dense<0.000000e+00> : vector<8x64xf32>
    %179 = tpu.matmul %176, %178, %cst_145 {dimension_numbers = #tpu.dot_dimension_numbers<[1], [0], [0], [1], [0, 0, 1, 1], [], []>} : vector<8x64xf32>, vector<64x64xf32>, vector<8x64xf32> -> vector<8x64xf32>
    %c1_146 = arith.constant 1 : index
    %c0_147 = arith.constant 0 : index
    %c0_148 = arith.constant 0 : index
    %180 = vector.load %arg22[%c1_146, %c0_147, %c0_148] : memref<3x64x64xf32, #tpu.memory_space<vmem>>, vector<1x64x64xf32>
    %181 = vector.shape_cast %180 : vector<1x64x64xf32> to vector<64x64xf32>
    %cst_149 = arith.constant dense<0.000000e+00> : vector<8x64xf32>
    %182 = tpu.matmul %173, %181, %cst_149 {dimension_numbers = #tpu.dot_dimension_numbers<[1], [0], [0], [1], [0, 0, 1, 1], [], []>} : vector<8x64xf32>, vector<64x64xf32>, vector<8x64xf32> -> vector<8x64xf32>
    %183 = arith.addf %179, %182 : vector<8x64xf32>
    %cst_150 = arith.constant 0.000000e+00 : f32
    %184 = vector.broadcast %cst_150 : f32 to vector<1x64xf32>
    %185 = vector.extract_strided_slice %173 {offsets = [1, 0], sizes = [7, 64], strides = [1, 1]} : vector<8x64xf32> to vector<7x64xf32>
    %186 = tpu.concatenate %185, %184 in 0 : vector<7x64xf32>, vector<1x64xf32> -> vector<8x64xf32>
    %c2_151 = arith.constant 2 : index
    %c0_152 = arith.constant 0 : index
    %c0_153 = arith.constant 0 : index
    %187 = vector.load %arg22[%c2_151, %c0_152, %c0_153] : memref<3x64x64xf32, #tpu.memory_space<vmem>>, vector<1x64x64xf32>
    %188 = vector.shape_cast %187 : vector<1x64x64xf32> to vector<64x64xf32>
    %cst_154 = arith.constant dense<0.000000e+00> : vector<8x64xf32>
    %189 = tpu.matmul %186, %188, %cst_154 {dimension_numbers = #tpu.dot_dimension_numbers<[1], [0], [0], [1], [0, 0, 1, 1], [], []>} : vector<8x64xf32>, vector<64x64xf32>, vector<8x64xf32> -> vector<8x64xf32>
    %190 = arith.addf %183, %189 : vector<8x64xf32>
    %cst_155 = arith.constant 0.000000e+00 : f32
    %191 = vector.broadcast %cst_155 : f32 to vector<1x64xf32>
    %192 = vector.extract_strided_slice %105 {offsets = [0, 0], sizes = [7, 64], strides = [1, 1]} : vector<8x64xf32> to vector<7x64xf32>
    %193 = tpu.concatenate %191, %192 in 0 : vector<1x64xf32>, vector<7x64xf32> -> vector<8x64xf32>
    %c0_156 = arith.constant 0 : index
    %c0_157 = arith.constant 0 : index
    %c0_158 = arith.constant 0 : index
    %194 = vector.load %arg23[%c0_156, %c0_157, %c0_158] : memref<3x64x64xf32, #tpu.memory_space<vmem>>, vector<1x64x64xf32>
    %195 = vector.shape_cast %194 : vector<1x64x64xf32> to vector<64x64xf32>
    %cst_159 = arith.constant dense<0.000000e+00> : vector<8x64xf32>
    %196 = tpu.matmul %193, %195, %cst_159 {dimension_numbers = #tpu.dot_dimension_numbers<[1], [0], [0], [1], [0, 0, 1, 1], [], []>} : vector<8x64xf32>, vector<64x64xf32>, vector<8x64xf32> -> vector<8x64xf32>
    %c1_160 = arith.constant 1 : index
    %c0_161 = arith.constant 0 : index
    %c0_162 = arith.constant 0 : index
    %197 = vector.load %arg23[%c1_160, %c0_161, %c0_162] : memref<3x64x64xf32, #tpu.memory_space<vmem>>, vector<1x64x64xf32>
    %198 = vector.shape_cast %197 : vector<1x64x64xf32> to vector<64x64xf32>
    %cst_163 = arith.constant dense<0.000000e+00> : vector<8x64xf32>
    %199 = tpu.matmul %105, %198, %cst_163 {dimension_numbers = #tpu.dot_dimension_numbers<[1], [0], [0], [1], [0, 0, 1, 1], [], []>} : vector<8x64xf32>, vector<64x64xf32>, vector<8x64xf32> -> vector<8x64xf32>
    %200 = arith.addf %196, %199 : vector<8x64xf32>
    %cst_164 = arith.constant 0.000000e+00 : f32
    %201 = vector.broadcast %cst_164 : f32 to vector<1x64xf32>
    %202 = vector.extract_strided_slice %105 {offsets = [1, 0], sizes = [7, 64], strides = [1, 1]} : vector<8x64xf32> to vector<7x64xf32>
    %203 = tpu.concatenate %202, %201 in 0 : vector<7x64xf32>, vector<1x64xf32> -> vector<8x64xf32>
    %c2_165 = arith.constant 2 : index
    %c0_166 = arith.constant 0 : index
    %c0_167 = arith.constant 0 : index
    %204 = vector.load %arg23[%c2_165, %c0_166, %c0_167] : memref<3x64x64xf32, #tpu.memory_space<vmem>>, vector<1x64x64xf32>
    %205 = vector.shape_cast %204 : vector<1x64x64xf32> to vector<64x64xf32>
    %cst_168 = arith.constant dense<0.000000e+00> : vector<8x64xf32>
    %206 = tpu.matmul %203, %205, %cst_168 {dimension_numbers = #tpu.dot_dimension_numbers<[1], [0], [0], [1], [0, 0, 1, 1], [], []>} : vector<8x64xf32>, vector<64x64xf32>, vector<8x64xf32> -> vector<8x64xf32>
    %207 = arith.addf %200, %206 : vector<8x64xf32>
    %208 = arith.addf %190, %207 : vector<8x64xf32>
    %c0_169 = arith.constant 0 : index
    %c0_170 = arith.constant 0 : index
    %209 = vector.load %arg24[%c0_169, %c0_170] : memref<1x64xf32, #tpu.memory_space<vmem>>, vector<1x64xf32>
    %210 = vector.broadcast %209 : vector<1x64xf32> to vector<8x64xf32>
    %211 = arith.mulf %208, %210 : vector<8x64xf32>
    %c0_171 = arith.constant 0 : index
    %c0_172 = arith.constant 0 : index
    %212 = vector.load %arg25[%c0_171, %c0_172] : memref<1x64xf32, #tpu.memory_space<vmem>>, vector<1x64xf32>
    %213 = vector.broadcast %212 : vector<1x64xf32> to vector<8x64xf32>
    %214 = arith.addf %211, %213 : vector<8x64xf32>
    %cst_173 = arith.constant 0.000000e+00 : f32
    %215 = vector.broadcast %cst_173 : f32 to vector<8x64xf32>
    %216 = arith.maximumf %214, %215 : vector<8x64xf32>
    %cst_174 = arith.constant 0.000000e+00 : f32
    %217 = vector.broadcast %cst_174 : f32 to vector<1x64xf32>
    %218 = vector.extract_strided_slice %216 {offsets = [0, 0], sizes = [7, 64], strides = [1, 1]} : vector<8x64xf32> to vector<7x64xf32>
    %219 = tpu.concatenate %217, %218 in 0 : vector<1x64xf32>, vector<7x64xf32> -> vector<8x64xf32>
    %c0_175 = arith.constant 0 : index
    %c0_176 = arith.constant 0 : index
    %c0_177 = arith.constant 0 : index
    %220 = vector.load %arg26[%c0_175, %c0_176, %c0_177] : memref<3x64x64xf32, #tpu.memory_space<vmem>>, vector<1x64x64xf32>
    %221 = vector.shape_cast %220 : vector<1x64x64xf32> to vector<64x64xf32>
    %cst_178 = arith.constant dense<0.000000e+00> : vector<8x64xf32>
    %222 = tpu.matmul %219, %221, %cst_178 {dimension_numbers = #tpu.dot_dimension_numbers<[1], [0], [0], [1], [0, 0, 1, 1], [], []>} : vector<8x64xf32>, vector<64x64xf32>, vector<8x64xf32> -> vector<8x64xf32>
    %c1_179 = arith.constant 1 : index
    %c0_180 = arith.constant 0 : index
    %c0_181 = arith.constant 0 : index
    %223 = vector.load %arg26[%c1_179, %c0_180, %c0_181] : memref<3x64x64xf32, #tpu.memory_space<vmem>>, vector<1x64x64xf32>
    %224 = vector.shape_cast %223 : vector<1x64x64xf32> to vector<64x64xf32>
    %cst_182 = arith.constant dense<0.000000e+00> : vector<8x64xf32>
    %225 = tpu.matmul %216, %224, %cst_182 {dimension_numbers = #tpu.dot_dimension_numbers<[1], [0], [0], [1], [0, 0, 1, 1], [], []>} : vector<8x64xf32>, vector<64x64xf32>, vector<8x64xf32> -> vector<8x64xf32>
    %226 = arith.addf %222, %225 : vector<8x64xf32>
    %cst_183 = arith.constant 0.000000e+00 : f32
    %227 = vector.broadcast %cst_183 : f32 to vector<1x64xf32>
    %228 = vector.extract_strided_slice %216 {offsets = [1, 0], sizes = [7, 64], strides = [1, 1]} : vector<8x64xf32> to vector<7x64xf32>
    %229 = tpu.concatenate %228, %227 in 0 : vector<7x64xf32>, vector<1x64xf32> -> vector<8x64xf32>
    %c2_184 = arith.constant 2 : index
    %c0_185 = arith.constant 0 : index
    %c0_186 = arith.constant 0 : index
    %230 = vector.load %arg26[%c2_184, %c0_185, %c0_186] : memref<3x64x64xf32, #tpu.memory_space<vmem>>, vector<1x64x64xf32>
    %231 = vector.shape_cast %230 : vector<1x64x64xf32> to vector<64x64xf32>
    %cst_187 = arith.constant dense<0.000000e+00> : vector<8x64xf32>
    %232 = tpu.matmul %229, %231, %cst_187 {dimension_numbers = #tpu.dot_dimension_numbers<[1], [0], [0], [1], [0, 0, 1, 1], [], []>} : vector<8x64xf32>, vector<64x64xf32>, vector<8x64xf32> -> vector<8x64xf32>
    %233 = arith.addf %226, %232 : vector<8x64xf32>
    %c0_188 = arith.constant 0 : index
    %c0_189 = arith.constant 0 : index
    %234 = vector.load %arg27[%c0_188, %c0_189] : memref<1x64xf32, #tpu.memory_space<vmem>>, vector<1x64xf32>
    %235 = vector.broadcast %234 : vector<1x64xf32> to vector<8x64xf32>
    %236 = arith.mulf %233, %235 : vector<8x64xf32>
    %c0_190 = arith.constant 0 : index
    %c0_191 = arith.constant 0 : index
    %237 = vector.load %arg28[%c0_190, %c0_191] : memref<1x64xf32, #tpu.memory_space<vmem>>, vector<1x64xf32>
    %238 = vector.broadcast %237 : vector<1x64xf32> to vector<8x64xf32>
    %239 = arith.addf %236, %238 : vector<8x64xf32>
    %cst_192 = arith.constant 0.000000e+00 : f32
    %240 = vector.broadcast %cst_192 : f32 to vector<8x64xf32>
    %241 = arith.maximumf %239, %240 : vector<8x64xf32>
    %c0_193 = arith.constant 0 : index
    %c0_194 = arith.constant 0 : index
    %242 = vector.load %arg30[%c0_193, %c0_194] : memref<1x32xf32, #tpu.memory_space<vmem>>, vector<1x32xf32>
    %c0_195 = arith.constant 0 : index
    %c0_196 = arith.constant 0 : index
    %c0_197 = arith.constant 0 : index
    %243 = vector.load %arg29[%c0_195, %c0_196, %c0_197] : memref<2x64x32xf32, #tpu.memory_space<vmem>>, vector<1x64x32xf32>
    %244 = vector.shape_cast %243 : vector<1x64x32xf32> to vector<64x32xf32>
    %cst_198 = arith.constant dense<0.000000e+00> : vector<8x32xf32>
    %245 = tpu.matmul %241, %244, %cst_198 {dimension_numbers = #tpu.dot_dimension_numbers<[1], [0], [0], [1], [0, 0, 1, 1], [], []>} : vector<8x64xf32>, vector<64x32xf32>, vector<8x32xf32> -> vector<8x32xf32>
    %246 = vector.broadcast %242 : vector<1x32xf32> to vector<8x32xf32>
    %247 = arith.addf %245, %246 : vector<8x32xf32>
    %c0_199 = arith.constant 0 : index
    %c0_200 = arith.constant 0 : index
    %248 = tpu.strided_load %arg44[%c0_199, %c0_200] {strides = array<i32: 2, 1>} : memref<16x32xf32, #tpu.memory_space<vmem>>, vector<8x32xf32>
    tpu.strided_store %arg44[%c0_199, %c0_200], %247 {strides = array<i32: 2, 1>} : memref<16x32xf32, #tpu.memory_space<vmem>>, vector<8x32xf32>
    %c1_201 = arith.constant 1 : index
    %c0_202 = arith.constant 0 : index
    %c0_203 = arith.constant 0 : index
    %249 = vector.load %arg29[%c1_201, %c0_202, %c0_203] : memref<2x64x32xf32, #tpu.memory_space<vmem>>, vector<1x64x32xf32>
    %250 = vector.shape_cast %249 : vector<1x64x32xf32> to vector<64x32xf32>
    %cst_204 = arith.constant dense<0.000000e+00> : vector<8x32xf32>
    %251 = tpu.matmul %241, %250, %cst_204 {dimension_numbers = #tpu.dot_dimension_numbers<[1], [0], [0], [1], [0, 0, 1, 1], [], []>} : vector<8x64xf32>, vector<64x32xf32>, vector<8x32xf32> -> vector<8x32xf32>
    %252 = vector.broadcast %242 : vector<1x32xf32> to vector<8x32xf32>
    %253 = arith.addf %251, %252 : vector<8x32xf32>
    %c1_205 = arith.constant 1 : index
    %c0_206 = arith.constant 0 : index
    %254 = tpu.strided_load %arg44[%c1_205, %c0_206] {strides = array<i32: 2, 1>} : memref<16x32xf32, #tpu.memory_space<vmem>>, vector<8x32xf32>
    tpu.strided_store %arg44[%c1_205, %c0_206], %253 {strides = array<i32: 2, 1>} : memref<16x32xf32, #tpu.memory_space<vmem>>, vector<8x32xf32>
    %c0_207 = arith.constant 0 : index
    %c0_208 = arith.constant 0 : index
    %255 = vector.load %arg44[%c0_207, %c0_208] : memref<16x32xf32, #tpu.memory_space<vmem>>, vector<16x32xf32>
    %cst_209 = arith.constant 0.000000e+00 : f32
    %256 = vector.broadcast %cst_209 : f32 to vector<1x32xf32>
    %257 = vector.extract_strided_slice %255 {offsets = [0, 0], sizes = [15, 32], strides = [1, 1]} : vector<16x32xf32> to vector<15x32xf32>
    %258 = tpu.concatenate %256, %257 in 0 : vector<1x32xf32>, vector<15x32xf32> -> vector<16x32xf32>
    %c0_210 = arith.constant 0 : index
    %c0_211 = arith.constant 0 : index
    %c0_212 = arith.constant 0 : index
    %259 = vector.load %arg31[%c0_210, %c0_211, %c0_212] : memref<3x32x32xf32, #tpu.memory_space<vmem>>, vector<1x32x32xf32>
    %260 = vector.shape_cast %259 : vector<1x32x32xf32> to vector<32x32xf32>
    %cst_213 = arith.constant dense<0.000000e+00> : vector<16x32xf32>
    %261 = tpu.matmul %258, %260, %cst_213 {dimension_numbers = #tpu.dot_dimension_numbers<[1], [0], [0], [1], [0, 0, 1, 1], [], []>} : vector<16x32xf32>, vector<32x32xf32>, vector<16x32xf32> -> vector<16x32xf32>
    %c1_214 = arith.constant 1 : index
    %c0_215 = arith.constant 0 : index
    %c0_216 = arith.constant 0 : index
    %262 = vector.load %arg31[%c1_214, %c0_215, %c0_216] : memref<3x32x32xf32, #tpu.memory_space<vmem>>, vector<1x32x32xf32>
    %263 = vector.shape_cast %262 : vector<1x32x32xf32> to vector<32x32xf32>
    %cst_217 = arith.constant dense<0.000000e+00> : vector<16x32xf32>
    %264 = tpu.matmul %255, %263, %cst_217 {dimension_numbers = #tpu.dot_dimension_numbers<[1], [0], [0], [1], [0, 0, 1, 1], [], []>} : vector<16x32xf32>, vector<32x32xf32>, vector<16x32xf32> -> vector<16x32xf32>
    %265 = arith.addf %261, %264 : vector<16x32xf32>
    %cst_218 = arith.constant 0.000000e+00 : f32
    %266 = vector.broadcast %cst_218 : f32 to vector<1x32xf32>
    %267 = vector.extract_strided_slice %255 {offsets = [1, 0], sizes = [15, 32], strides = [1, 1]} : vector<16x32xf32> to vector<15x32xf32>
    %268 = tpu.concatenate %267, %266 in 0 : vector<15x32xf32>, vector<1x32xf32> -> vector<16x32xf32>
    %c2_219 = arith.constant 2 : index
    %c0_220 = arith.constant 0 : index
    %c0_221 = arith.constant 0 : index
    %269 = vector.load %arg31[%c2_219, %c0_220, %c0_221] : memref<3x32x32xf32, #tpu.memory_space<vmem>>, vector<1x32x32xf32>
    %270 = vector.shape_cast %269 : vector<1x32x32xf32> to vector<32x32xf32>
    %cst_222 = arith.constant dense<0.000000e+00> : vector<16x32xf32>
    %271 = tpu.matmul %268, %270, %cst_222 {dimension_numbers = #tpu.dot_dimension_numbers<[1], [0], [0], [1], [0, 0, 1, 1], [], []>} : vector<16x32xf32>, vector<32x32xf32>, vector<16x32xf32> -> vector<16x32xf32>
    %272 = arith.addf %265, %271 : vector<16x32xf32>
    %cst_223 = arith.constant 0.000000e+00 : f32
    %273 = vector.broadcast %cst_223 : f32 to vector<1x32xf32>
    %274 = vector.extract_strided_slice %51 {offsets = [0, 0], sizes = [15, 32], strides = [1, 1]} : vector<16x32xf32> to vector<15x32xf32>
    %275 = tpu.concatenate %273, %274 in 0 : vector<1x32xf32>, vector<15x32xf32> -> vector<16x32xf32>
    %c0_224 = arith.constant 0 : index
    %c0_225 = arith.constant 0 : index
    %c0_226 = arith.constant 0 : index
    %276 = vector.load %arg32[%c0_224, %c0_225, %c0_226] : memref<3x32x32xf32, #tpu.memory_space<vmem>>, vector<1x32x32xf32>
    %277 = vector.shape_cast %276 : vector<1x32x32xf32> to vector<32x32xf32>
    %cst_227 = arith.constant dense<0.000000e+00> : vector<16x32xf32>
    %278 = tpu.matmul %275, %277, %cst_227 {dimension_numbers = #tpu.dot_dimension_numbers<[1], [0], [0], [1], [0, 0, 1, 1], [], []>} : vector<16x32xf32>, vector<32x32xf32>, vector<16x32xf32> -> vector<16x32xf32>
    %c1_228 = arith.constant 1 : index
    %c0_229 = arith.constant 0 : index
    %c0_230 = arith.constant 0 : index
    %279 = vector.load %arg32[%c1_228, %c0_229, %c0_230] : memref<3x32x32xf32, #tpu.memory_space<vmem>>, vector<1x32x32xf32>
    %280 = vector.shape_cast %279 : vector<1x32x32xf32> to vector<32x32xf32>
    %cst_231 = arith.constant dense<0.000000e+00> : vector<16x32xf32>
    %281 = tpu.matmul %51, %280, %cst_231 {dimension_numbers = #tpu.dot_dimension_numbers<[1], [0], [0], [1], [0, 0, 1, 1], [], []>} : vector<16x32xf32>, vector<32x32xf32>, vector<16x32xf32> -> vector<16x32xf32>
    %282 = arith.addf %278, %281 : vector<16x32xf32>
    %cst_232 = arith.constant 0.000000e+00 : f32
    %283 = vector.broadcast %cst_232 : f32 to vector<1x32xf32>
    %284 = vector.extract_strided_slice %51 {offsets = [1, 0], sizes = [15, 32], strides = [1, 1]} : vector<16x32xf32> to vector<15x32xf32>
    %285 = tpu.concatenate %284, %283 in 0 : vector<15x32xf32>, vector<1x32xf32> -> vector<16x32xf32>
    %c2_233 = arith.constant 2 : index
    %c0_234 = arith.constant 0 : index
    %c0_235 = arith.constant 0 : index
    %286 = vector.load %arg32[%c2_233, %c0_234, %c0_235] : memref<3x32x32xf32, #tpu.memory_space<vmem>>, vector<1x32x32xf32>
    %287 = vector.shape_cast %286 : vector<1x32x32xf32> to vector<32x32xf32>
    %cst_236 = arith.constant dense<0.000000e+00> : vector<16x32xf32>
    %288 = tpu.matmul %285, %287, %cst_236 {dimension_numbers = #tpu.dot_dimension_numbers<[1], [0], [0], [1], [0, 0, 1, 1], [], []>} : vector<16x32xf32>, vector<32x32xf32>, vector<16x32xf32> -> vector<16x32xf32>
    %289 = arith.addf %282, %288 : vector<16x32xf32>
    %290 = arith.addf %272, %289 : vector<16x32xf32>
    %c0_237 = arith.constant 0 : index
    %c0_238 = arith.constant 0 : index
    %291 = vector.load %arg33[%c0_237, %c0_238] : memref<1x32xf32, #tpu.memory_space<vmem>>, vector<1x32xf32>
    %292 = vector.broadcast %291 : vector<1x32xf32> to vector<16x32xf32>
    %293 = arith.mulf %290, %292 : vector<16x32xf32>
    %c0_239 = arith.constant 0 : index
    %c0_240 = arith.constant 0 : index
    %294 = vector.load %arg34[%c0_239, %c0_240] : memref<1x32xf32, #tpu.memory_space<vmem>>, vector<1x32xf32>
    %295 = vector.broadcast %294 : vector<1x32xf32> to vector<16x32xf32>
    %296 = arith.addf %293, %295 : vector<16x32xf32>
    %cst_241 = arith.constant 0.000000e+00 : f32
    %297 = vector.broadcast %cst_241 : f32 to vector<16x32xf32>
    %298 = arith.maximumf %296, %297 : vector<16x32xf32>
    %cst_242 = arith.constant 0.000000e+00 : f32
    %299 = vector.broadcast %cst_242 : f32 to vector<1x32xf32>
    %300 = vector.extract_strided_slice %298 {offsets = [0, 0], sizes = [15, 32], strides = [1, 1]} : vector<16x32xf32> to vector<15x32xf32>
    %301 = tpu.concatenate %299, %300 in 0 : vector<1x32xf32>, vector<15x32xf32> -> vector<16x32xf32>
    %c0_243 = arith.constant 0 : index
    %c0_244 = arith.constant 0 : index
    %c0_245 = arith.constant 0 : index
    %302 = vector.load %arg35[%c0_243, %c0_244, %c0_245] : memref<3x32x32xf32, #tpu.memory_space<vmem>>, vector<1x32x32xf32>
    %303 = vector.shape_cast %302 : vector<1x32x32xf32> to vector<32x32xf32>
    %cst_246 = arith.constant dense<0.000000e+00> : vector<16x32xf32>
    %304 = tpu.matmul %301, %303, %cst_246 {dimension_numbers = #tpu.dot_dimension_numbers<[1], [0], [0], [1], [0, 0, 1, 1], [], []>} : vector<16x32xf32>, vector<32x32xf32>, vector<16x32xf32> -> vector<16x32xf32>
    %c1_247 = arith.constant 1 : index
    %c0_248 = arith.constant 0 : index
    %c0_249 = arith.constant 0 : index
    %305 = vector.load %arg35[%c1_247, %c0_248, %c0_249] : memref<3x32x32xf32, #tpu.memory_space<vmem>>, vector<1x32x32xf32>
    %306 = vector.shape_cast %305 : vector<1x32x32xf32> to vector<32x32xf32>
    %cst_250 = arith.constant dense<0.000000e+00> : vector<16x32xf32>
    %307 = tpu.matmul %298, %306, %cst_250 {dimension_numbers = #tpu.dot_dimension_numbers<[1], [0], [0], [1], [0, 0, 1, 1], [], []>} : vector<16x32xf32>, vector<32x32xf32>, vector<16x32xf32> -> vector<16x32xf32>
    %308 = arith.addf %304, %307 : vector<16x32xf32>
    %cst_251 = arith.constant 0.000000e+00 : f32
    %309 = vector.broadcast %cst_251 : f32 to vector<1x32xf32>
    %310 = vector.extract_strided_slice %298 {offsets = [1, 0], sizes = [15, 32], strides = [1, 1]} : vector<16x32xf32> to vector<15x32xf32>
    %311 = tpu.concatenate %310, %309 in 0 : vector<15x32xf32>, vector<1x32xf32> -> vector<16x32xf32>
    %c2_252 = arith.constant 2 : index
    %c0_253 = arith.constant 0 : index
    %c0_254 = arith.constant 0 : index
    %312 = vector.load %arg35[%c2_252, %c0_253, %c0_254] : memref<3x32x32xf32, #tpu.memory_space<vmem>>, vector<1x32x32xf32>
    %313 = vector.shape_cast %312 : vector<1x32x32xf32> to vector<32x32xf32>
    %cst_255 = arith.constant dense<0.000000e+00> : vector<16x32xf32>
    %314 = tpu.matmul %311, %313, %cst_255 {dimension_numbers = #tpu.dot_dimension_numbers<[1], [0], [0], [1], [0, 0, 1, 1], [], []>} : vector<16x32xf32>, vector<32x32xf32>, vector<16x32xf32> -> vector<16x32xf32>
    %315 = arith.addf %308, %314 : vector<16x32xf32>
    %c0_256 = arith.constant 0 : index
    %c0_257 = arith.constant 0 : index
    %316 = vector.load %arg36[%c0_256, %c0_257] : memref<1x32xf32, #tpu.memory_space<vmem>>, vector<1x32xf32>
    %317 = vector.broadcast %316 : vector<1x32xf32> to vector<16x32xf32>
    %318 = arith.mulf %315, %317 : vector<16x32xf32>
    %c0_258 = arith.constant 0 : index
    %c0_259 = arith.constant 0 : index
    %319 = vector.load %arg37[%c0_258, %c0_259] : memref<1x32xf32, #tpu.memory_space<vmem>>, vector<1x32xf32>
    %320 = vector.broadcast %319 : vector<1x32xf32> to vector<16x32xf32>
    %321 = arith.addf %318, %320 : vector<16x32xf32>
    %cst_260 = arith.constant 0.000000e+00 : f32
    %322 = vector.broadcast %cst_260 : f32 to vector<16x32xf32>
    %323 = arith.maximumf %321, %322 : vector<16x32xf32>
    %c0_261 = arith.constant 0 : index
    %c0_262 = arith.constant 0 : index
    %324 = vector.load %arg38[%c0_261, %c0_262] : memref<32x1xf32, #tpu.memory_space<vmem>>, vector<32x1xf32>
    %cst_263 = arith.constant dense<0.000000e+00> : vector<16x1xf32>
    %325 = tpu.matmul %323, %324, %cst_263 {dimension_numbers = #tpu.dot_dimension_numbers<[1], [0], [0], [1], [0, 0, 1, 1], [], []>} : vector<16x32xf32>, vector<32x1xf32>, vector<16x1xf32> -> vector<16x1xf32>
    %c0_264 = arith.constant 0 : index
    %c0_265 = arith.constant 0 : index
    %326 = vector.load %arg39[%c0_264, %c0_265] : memref<1x1xf32, #tpu.memory_space<vmem>>, vector<1x1xf32>
    %327 = vector.broadcast %326 : vector<1x1xf32> to vector<16x1xf32>
    %328 = arith.addf %325, %327 : vector<16x1xf32>
    %c0_266 = arith.constant 0 : index
    %c0_267 = arith.constant 0 : index
    %c0_268 = arith.constant 0 : index
    %329 = vector.load %arg40[%c0_266, %c0_267, %c0_268] : memref<1x16x1xf32, #tpu.memory_space<vmem>>, vector<1x16x1xf32>
    %330 = vector.shape_cast %329 : vector<1x16x1xf32> to vector<16x1xf32>
    %331 = vector.shape_cast %328 : vector<16x1xf32> to vector<1x16x1xf32>
    tpu.vector_store %arg40[%c0_266, %c0_267, %c0_268], %331 {strides = array<i32>} : memref<1x16x1xf32, #tpu.memory_space<vmem>>, vector<1x16x1xf32>,
    return
  }
  func.func @transform_0(%arg0: i32) -> (i32, i32, i32) {
    %c0_i32 = arith.constant 0 : i32
    %c0_i32_0 = arith.constant 0 : i32
    %c0_i32_1 = arith.constant 0 : i32
    return %arg0, %c0_i32, %c0_i32_0 : i32, i32, i32
  }
  func.func @transform_1(%arg0: i32) -> (i32, i32, i32) {
    %c0_i32 = arith.constant 0 : i32
    %c0_i32_0 = arith.constant 0 : i32
    %c0_i32_1 = arith.constant 0 : i32
    %c0_i32_2 = arith.constant 0 : i32
    return %c0_i32, %c0_i32_0, %c0_i32_1 : i32, i32, i32
  }
  func.func @transform_2(%arg0: i32) -> (i32, i32) {
    %c0_i32 = arith.constant 0 : i32
    %c0_i32_0 = arith.constant 0 : i32
    %c0_i32_1 = arith.constant 0 : i32
    return %c0_i32, %c0_i32_0 : i32, i32
  }
  func.func @transform_3(%arg0: i32) -> (i32, i32) {
    %c0_i32 = arith.constant 0 : i32
    %c0_i32_0 = arith.constant 0 : i32
    %c0_i32_1 = arith.constant 0 : i32
    return %c0_i32, %c0_i32_0 : i32, i32
  }
  func.func @transform_4(%arg0: i32) -> (i32, i32, i32) {
    %c0_i32 = arith.constant 0 : i32
    %c0_i32_0 = arith.constant 0 : i32
    %c0_i32_1 = arith.constant 0 : i32
    %c0_i32_2 = arith.constant 0 : i32
    return %c0_i32, %c0_i32_0, %c0_i32_1 : i32, i32, i32
  }
  func.func @transform_5(%arg0: i32) -> (i32, i32) {
    %c0_i32 = arith.constant 0 : i32
    %c0_i32_0 = arith.constant 0 : i32
    %c0_i32_1 = arith.constant 0 : i32
    return %c0_i32, %c0_i32_0 : i32, i32
  }
  func.func @transform_6(%arg0: i32) -> (i32, i32) {
    %c0_i32 = arith.constant 0 : i32
    %c0_i32_0 = arith.constant 0 : i32
    %c0_i32_1 = arith.constant 0 : i32
    return %c0_i32, %c0_i32_0 : i32, i32
  }
  func.func @transform_7(%arg0: i32) -> (i32, i32, i32) {
    %c0_i32 = arith.constant 0 : i32
    %c0_i32_0 = arith.constant 0 : i32
    %c0_i32_1 = arith.constant 0 : i32
    %c0_i32_2 = arith.constant 0 : i32
    return %c0_i32, %c0_i32_0, %c0_i32_1 : i32, i32, i32
  }
  func.func @transform_8(%arg0: i32) -> (i32, i32) {
    %c0_i32 = arith.constant 0 : i32
    %c0_i32_0 = arith.constant 0 : i32
    %c0_i32_1 = arith.constant 0 : i32
    return %c0_i32, %c0_i32_0 : i32, i32
  }
  func.func @transform_9(%arg0: i32) -> (i32, i32) {
    %c0_i32 = arith.constant 0 : i32
    %c0_i32_0 = arith.constant 0 : i32
    %c0_i32_1 = arith.constant 0 : i32
    return %c0_i32, %c0_i32_0 : i32, i32
  }
  func.func @transform_10(%arg0: i32) -> (i32, i32, i32) {
    %c0_i32 = arith.constant 0 : i32
    %c0_i32_0 = arith.constant 0 : i32
    %c0_i32_1 = arith.constant 0 : i32
    %c0_i32_2 = arith.constant 0 : i32
    return %c0_i32, %c0_i32_0, %c0_i32_1 : i32, i32, i32
  }
  func.func @transform_11(%arg0: i32) -> (i32, i32) {
    %c0_i32 = arith.constant 0 : i32
    %c0_i32_0 = arith.constant 0 : i32
    %c0_i32_1 = arith.constant 0 : i32
    return %c0_i32, %c0_i32_0 : i32, i32
  }
  func.func @transform_12(%arg0: i32) -> (i32, i32) {
    %c0_i32 = arith.constant 0 : i32
    %c0_i32_0 = arith.constant 0 : i32
    %c0_i32_1 = arith.constant 0 : i32
    return %c0_i32, %c0_i32_0 : i32, i32
  }
  func.func @transform_13(%arg0: i32) -> (i32, i32, i32) {
    %c0_i32 = arith.constant 0 : i32
    %c0_i32_0 = arith.constant 0 : i32
    %c0_i32_1 = arith.constant 0 : i32
    %c0_i32_2 = arith.constant 0 : i32
    return %c0_i32, %c0_i32_0, %c0_i32_1 : i32, i32, i32
  }
  func.func @transform_14(%arg0: i32) -> (i32, i32) {
    %c0_i32 = arith.constant 0 : i32
    %c0_i32_0 = arith.constant 0 : i32
    %c0_i32_1 = arith.constant 0 : i32
    return %c0_i32, %c0_i32_0 : i32, i32
  }
  func.func @transform_15(%arg0: i32) -> (i32, i32) {
    %c0_i32 = arith.constant 0 : i32
    %c0_i32_0 = arith.constant 0 : i32
    %c0_i32_1 = arith.constant 0 : i32
    return %c0_i32, %c0_i32_0 : i32, i32
  }
  func.func @transform_16(%arg0: i32) -> (i32, i32, i32) {
    %c0_i32 = arith.constant 0 : i32
    %c0_i32_0 = arith.constant 0 : i32
    %c0_i32_1 = arith.constant 0 : i32
    %c0_i32_2 = arith.constant 0 : i32
    return %c0_i32, %c0_i32_0, %c0_i32_1 : i32, i32, i32
  }
  func.func @transform_17(%arg0: i32) -> (i32, i32) {
    %c0_i32 = arith.constant 0 : i32
    %c0_i32_0 = arith.constant 0 : i32
    %c0_i32_1 = arith.constant 0 : i32
    return %c0_i32, %c0_i32_0 : i32, i32
  }
  func.func @transform_18(%arg0: i32) -> (i32, i32) {
    %c0_i32 = arith.constant 0 : i32
    %c0_i32_0 = arith.constant 0 : i32
    %c0_i32_1 = arith.constant 0 : i32
    return %c0_i32, %c0_i32_0 : i32, i32
  }
  func.func @transform_19(%arg0: i32) -> (i32, i32, i32) {
    %c0_i32 = arith.constant 0 : i32
    %c0_i32_0 = arith.constant 0 : i32
    %c0_i32_1 = arith.constant 0 : i32
    %c0_i32_2 = arith.constant 0 : i32
    return %c0_i32, %c0_i32_0, %c0_i32_1 : i32, i32, i32
  }
  func.func @transform_20(%arg0: i32) -> (i32, i32) {
    %c0_i32 = arith.constant 0 : i32
    %c0_i32_0 = arith.constant 0 : i32
    %c0_i32_1 = arith.constant 0 : i32
    return %c0_i32, %c0_i32_0 : i32, i32
  }
  func.func @transform_21(%arg0: i32) -> (i32, i32, i32) {
    %c0_i32 = arith.constant 0 : i32
    %c0_i32_0 = arith.constant 0 : i32
    %c0_i32_1 = arith.constant 0 : i32
    %c0_i32_2 = arith.constant 0 : i32
    return %c0_i32, %c0_i32_0, %c0_i32_1 : i32, i32, i32
  }
  func.func @transform_22(%arg0: i32) -> (i32, i32, i32) {
    %c0_i32 = arith.constant 0 : i32
    %c0_i32_0 = arith.constant 0 : i32
    %c0_i32_1 = arith.constant 0 : i32
    %c0_i32_2 = arith.constant 0 : i32
    return %c0_i32, %c0_i32_0, %c0_i32_1 : i32, i32, i32
  }
  func.func @transform_23(%arg0: i32) -> (i32, i32) {
    %c0_i32 = arith.constant 0 : i32
    %c0_i32_0 = arith.constant 0 : i32
    %c0_i32_1 = arith.constant 0 : i32
    return %c0_i32, %c0_i32_0 : i32, i32
  }
  func.func @transform_24(%arg0: i32) -> (i32, i32) {
    %c0_i32 = arith.constant 0 : i32
    %c0_i32_0 = arith.constant 0 : i32
    %c0_i32_1 = arith.constant 0 : i32
    return %c0_i32, %c0_i32_0 : i32, i32
  }
  func.func @transform_25(%arg0: i32) -> (i32, i32, i32) {
    %c0_i32 = arith.constant 0 : i32
    %c0_i32_0 = arith.constant 0 : i32
    %c0_i32_1 = arith.constant 0 : i32
    %c0_i32_2 = arith.constant 0 : i32
    return %c0_i32, %c0_i32_0, %c0_i32_1 : i32, i32, i32
  }
  func.func @transform_26(%arg0: i32) -> (i32, i32) {
    %c0_i32 = arith.constant 0 : i32
    %c0_i32_0 = arith.constant 0 : i32
    %c0_i32_1 = arith.constant 0 : i32
    return %c0_i32, %c0_i32_0 : i32, i32
  }
  func.func @transform_27(%arg0: i32) -> (i32, i32) {
    %c0_i32 = arith.constant 0 : i32
    %c0_i32_0 = arith.constant 0 : i32
    %c0_i32_1 = arith.constant 0 : i32
    return %c0_i32, %c0_i32_0 : i32, i32
  }
  func.func @transform_28(%arg0: i32) -> (i32, i32, i32) {
    %c0_i32 = arith.constant 0 : i32
    %c0_i32_0 = arith.constant 0 : i32
    %c0_i32_1 = arith.constant 0 : i32
    %c0_i32_2 = arith.constant 0 : i32
    return %c0_i32, %c0_i32_0, %c0_i32_1 : i32, i32, i32
  }
  func.func @transform_29(%arg0: i32) -> (i32, i32) {
    %c0_i32 = arith.constant 0 : i32
    %c0_i32_0 = arith.constant 0 : i32
    %c0_i32_1 = arith.constant 0 : i32
    return %c0_i32, %c0_i32_0 : i32, i32
  }
  func.func @transform_30(%arg0: i32) -> (i32, i32, i32) {
    %c0_i32 = arith.constant 0 : i32
    %c0_i32_0 = arith.constant 0 : i32
    %c0_i32_1 = arith.constant 0 : i32
    %c0_i32_2 = arith.constant 0 : i32
    return %c0_i32, %c0_i32_0, %c0_i32_1 : i32, i32, i32
  }
  func.func @transform_31(%arg0: i32) -> (i32, i32, i32) {
    %c0_i32 = arith.constant 0 : i32
    %c0_i32_0 = arith.constant 0 : i32
    %c0_i32_1 = arith.constant 0 : i32
    %c0_i32_2 = arith.constant 0 : i32
    return %c0_i32, %c0_i32_0, %c0_i32_1 : i32, i32, i32
  }
  func.func @transform_32(%arg0: i32) -> (i32, i32) {
    %c0_i32 = arith.constant 0 : i32
    %c0_i32_0 = arith.constant 0 : i32
    %c0_i32_1 = arith.constant 0 : i32
    return %c0_i32, %c0_i32_0 : i32, i32
  }
  func.func @transform_33(%arg0: i32) -> (i32, i32) {
    %c0_i32 = arith.constant 0 : i32
    %c0_i32_0 = arith.constant 0 : i32
    %c0_i32_1 = arith.constant 0 : i32
    return %c0_i32, %c0_i32_0 : i32, i32
  }
  func.func @transform_34(%arg0: i32) -> (i32, i32, i32) {
    %c0_i32 = arith.constant 0 : i32
    %c0_i32_0 = arith.constant 0 : i32
    %c0_i32_1 = arith.constant 0 : i32
    %c0_i32_2 = arith.constant 0 : i32
    return %c0_i32, %c0_i32_0, %c0_i32_1 : i32, i32, i32
  }
  func.func @transform_35(%arg0: i32) -> (i32, i32) {
    %c0_i32 = arith.constant 0 : i32
    %c0_i32_0 = arith.constant 0 : i32
    %c0_i32_1 = arith.constant 0 : i32
    return %c0_i32, %c0_i32_0 : i32, i32
  }
  func.func @transform_36(%arg0: i32) -> (i32, i32) {
    %c0_i32 = arith.constant 0 : i32
    %c0_i32_0 = arith.constant 0 : i32
    %c0_i32_1 = arith.constant 0 : i32
    return %c0_i32, %c0_i32_0 : i32, i32
  }
  func.func @transform_37(%arg0: i32) -> (i32, i32) {
    %c0_i32 = arith.constant 0 : i32
    %c0_i32_0 = arith.constant 0 : i32
    %c0_i32_1 = arith.constant 0 : i32
    return %c0_i32, %c0_i32_0 : i32, i32
  }
  func.func @transform_38(%arg0: i32) -> (i32, i32) {
    %c0_i32 = arith.constant 0 : i32
    %c0_i32_0 = arith.constant 0 : i32
    %c0_i32_1 = arith.constant 0 : i32
    return %c0_i32, %c0_i32_0 : i32, i32
  }
  func.func @transform_39(%arg0: i32) -> (i32, i32, i32) {
    %c0_i32 = arith.constant 0 : i32
    %c0_i32_0 = arith.constant 0 : i32
    %c0_i32_1 = arith.constant 0 : i32
    return %arg0, %c0_i32, %c0_i32_0 : i32, i32, i32
  }
}

</mosaic_0001>

<bundles_post_ra>
// kernel: unet1d_forward.1
= control target key start
LH: loop header
LB: loop body
LE: loop exit
PB: predicated region body
PF: predicated region fallthrough
CT: control target
= control target key end

     0   :  { %s3747_s6 = smov 1   ;;  %s3748_s10 = smov 2   ;;  %s4456_s0 = inlined_call_operand.smem [shape: u32[40], index: -1, kind: input, shape index: {}] }
   0x1   :  { %s3805_s5 = sld [smem:[%s4456_s0]]   ;;  %s3749_s14 = smov 3  }
   0x2   :  { %s3810_s9 = sld [smem:[%s4456_s0 + %s3747_s6]]   ;;  %s3750_s18 = smov 4  }
   0x3   :  { %s3815_s13 = sld [smem:[%s4456_s0 + %s3748_s10]]   ;;  %s3751_s22 = smov 5  }
   0x4   :  { %s3820_s17 = sld [smem:[%s4456_s0 + %s3749_s14]]   ;;  %s3752_s26 = smov 6  }
   0x5   :  { %s3825_s21 = sld [smem:[%s4456_s0 + %s3750_s18]]   ;;  %s3753_s30 = smov 7  }
   0x6   :  { %s3830_s25 = sld [smem:[%s4456_s0 + %s3751_s22]]   ;;  %s3754_s4 = smov 8  }
   0x7   :  { %s3835_s29 = sld [smem:[%s4456_s0 + %s3752_s26]]   ;;  %s3755_s10 = smov 9  }
   0x8   :  { %s3840_s3 = sld [smem:[%s4456_s0 + %s3753_s30]]   ;;  %s3756_s15 = smov 10  }
   0x9   :  { %s3845_s8 = sld [smem:[%s4456_s0 + %s3754_s4]]   ;;  %s3757_s20 = smov 11  }
   0xa   :  { %s3850_s14 = sld [smem:[%s4456_s0 + %s3755_s10]]   ;;  %s3758_s26 = smov 12  }
   0xb   :  { %s3855_s19 = sld [smem:[%s4456_s0 + %s3756_s15]]   ;;  %s3759_s1 = smov 13  }
   0xc   :  { %s3860_s24 = sld [smem:[%s4456_s0 + %s3757_s20]]   ;;  %s3760_s7 = smov 14  }
   0xd   :  { %4464 = sst [smem:[#allocation26_spill]] %s3835_s29  ;;  %s3761_s15 = smov 15  }
   0xe   :  { %4465 = sst [smem:[#allocation27_spill]] %s3840_s3  ;;  %s3762_s22 = smov 16  }
   0xf   :  { %4466 = sst [smem:[#allocation28_spill]] %s3845_s8  ;;  %s3763_s28 = smov 17  }
  0x10   :  { %4467 = sst [smem:[#allocation29_spill]] %s3850_s14  ;;  %s3785_s16 = smov 39  }
  0x11   :  { %4468 = sst [smem:[#allocation30_spill]] %s3855_s19 }
  0x12   :  { %4469 = sst [smem:[#allocation31_spill]] %s3860_s24 }
  0x13   :  { %s3865_s30 = sld [smem:[%s4456_s0 + %s3758_s26]]  }
  0x14   :  { %s3870_s6 = sld [smem:[%s4456_s0 + %s3759_s1]]  }
  0x15   :  { %s3875_s12 = sld [smem:[%s4456_s0 + %s3760_s7]]   ;;  %s3764_s7 = smov 18  }
  0x16   :  { %s3880_s20 = sld [smem:[%s4456_s0 + %s3761_s15]]   ;;  %s3765_s15 = smov 19  }
  0x17   :  { %s3885_s27 = sld [smem:[%s4456_s0 + %s3762_s22]]   ;;  %s3766_s22 = smov 20  }
  0x18   :  { %s3890_s4 = sld [smem:[%s4456_s0 + %s3763_s28]]   ;;  %s3767_s28 = smov 21  }
  0x19   :  { %4470 = sst [smem:[#allocation32_spill]] %s3865_s30 }
  0x1a   :  { %s3905_s30 = sld [smem:[%s4456_s0 + %s3766_s22]]   ;;  %s3770_s22 = smov 24  }
  0x1b   :  { %4471 = sst [smem:[#allocation33_spill]] %s3875_s12 }
  0x1c   :  { %4472 = sst [smem:[#allocation34_spill]] %s3880_s20 }
  0x1d   :  { %4473 = sst [smem:[#allocation35_spill]] %s3885_s27 }
  0x1e   :  { %4474 = sst [smem:[#allocation36_spill]] %s3890_s4 }
  0x1f   :  { %s3895_s12 = sld [smem:[%s4456_s0 + %s3764_s7]]   ;;  %s3768_s7 = smov 22  }
  0x20   :  { %s3900_s20 = sld [smem:[%s4456_s0 + %s3765_s15]]   ;;  %s3769_s15 = smov 23  }
  0x21   :  { %4477 = sst [smem:[#allocation39_spill]] %s3905_s30 }
  0x22   :  { %s3910_s4 = sld [smem:[%s4456_s0 + %s3767_s28]]   ;;  %s3771_s28 = smov 25  }
  0x23   :  { %s3925_s30 = sld [smem:[%s4456_s0 + %s3770_s22]]   ;;  %s3774_s22 = smov 28  }
  0x24   :  { %s3930_s24 = sld [smem:[%s4456_s0 + %s3771_s28]]   ;;  %s3775_s28 = smov 29  }
  0x25   :  { %4475 = sst [smem:[#allocation37_spill]] %s3895_s12 }
  0x26   :  { %4476 = sst [smem:[#allocation38_spill]] %s3900_s20 }
  0x27   :  { %s3915_s12 = sld [smem:[%s4456_s0 + %s3768_s7]]   ;;  %s3772_s7 = smov 26  }
  0x28   :  { %4478 = sst [smem:[#allocation40_spill]] %s3910_s4 }
  0x29   :  { %s3920_s20 = sld [smem:[%s4456_s0 + %s3769_s15]]   ;;  %s3773_s15 = smov 27  }
  0x2a   :  { %4480 = sst [smem:[#allocation42_spill]] %s3925_s30 }
  0x2b   :  { %s3935_s27 = sld [smem:[%s4456_s0 + %s3772_s7]]   ;;  %s3776_s7 = smov 30  }
  0x2c   :  { %s3945_s30 = sld [smem:[%s4456_s0 + %s3774_s22]]   ;;  %s3778_s22 = smov 32  }
  0x2d   :  { %s3950_s14 = sld [smem:[%s4456_s0 + %s3775_s28]]   ;;  %s3779_s28 = smov 33  }
  0x2f   :  { %4479 = sst [smem:[#allocation41_spill]] %s3920_s20 }
  0x30   :  { %s3940_s20 = sld [smem:[%s4456_s0 + %s3773_s15]]   ;;  %s3777_s15 = smov 31  }
  0x31   :  { %4481 = sst [smem:[#allocation43_spill]] %s3935_s27 }
  0x32   :  { %4483 = sst [smem:[#allocation45_spill]] %s3945_s30 }
  0x33   :  { %4484 = sst [smem:[#allocation46_spill]] %s3950_s14 }
  0x34   :  { %s3955_s27 = sld [smem:[%s4456_s0 + %s3776_s7]]   ;;  %s3780_s7 = smov 34  }
  0x35   :  { %s3965_s30 = sld [smem:[%s4456_s0 + %s3778_s22]]   ;;  %s3782_s22 = smov 36  }
  0x36   :  { %4482 = sst [smem:[#allocation44_spill]] %s3940_s20 }
  0x37   :  { %s3960_s20 = sld [smem:[%s4456_s0 + %s3777_s15]]   ;;  %s3781_s15 = smov 35  }
  0x38   :  { %s3970_s14 = sld [smem:[%s4456_s0 + %s3779_s28]]   ;;  %s3783_s28 = smov 37  }
  0x39   :  { %s3975_s8 = sld [smem:[%s4456_s0 + %s3780_s7]]   ;;  %s3784_s7 = smov 38  }
  0x3a   :  { %s3980_s19 = sld [smem:[%s4456_s0 + %s3781_s15]]  }
  0x3b   :  { %4485 = sst [smem:[#allocation47_spill]] %s3965_s30 }
  0x3c   :  { %s3985_s30 = sld [smem:[%s4456_s0 + %s3782_s22]]  }
  0x3d   :  { %s3120_s29 = sld [smem:[%s4456_s0 + %s3784_s7]]  }
  0x3e   :  { %4486 = sst [smem:[#allocation48_spill]] %s3970_s14 }
  0x3f   :  { %s3990_s14 = sld [smem:[%s4456_s0 + %s3783_s28]]  }
  0x40   :  { %4487 = sst [smem:[#allocation49_spill]] %s3980_s19 }
  0x41   :  { %s3998_s19 = sld [smem:[%s4456_s0 + %s3785_s16]]  }
  0x43   :  { %v84_v0 = vstv %s3120_s29 }
  0x44   :  { %85 = vst [vmem:[#allocation6] sm:$0x1] %v84_v0 }
  0x45   :  { %86 = vsyncpa [#allocation8], 0 }
  0x46   :  { %87 = vsyncpa [#allocation10], 0 }
  0x47   :  { %88 = vsyncpa [#allocation13], 0 }
  0x48   :  { %89 = vsyncpa [#allocation16], 0 }
  0x49   :  { %90 = vsyncpa [#allocation19], 0  ;;  %s4000_s22 = smov 0  }
  0x4a LB: > { %s4488_s4 = sld [smem:[#allocation40_spill]]  ;;  %s4006_s0 = sadd.s32 4294967295, %s3745_s22   ;;  %s3745_s22 = sphi %s4000_s22, %s96_s22  }
  0x4b   : > { %s4489_s3 = sld [smem:[#allocation27_spill]]  ;;  %p3124_p0 = scmp.ge.s32.totalorder %s3745_s22, 1 }
  0x4c   : > { %p951_p1 = scmp.lt.s32.totalorder %s3745_s22, 3  ;;  %p3350_p2 = scmp.eq.s32.totalorder %s4006_s0, 0 }
  0x4d   : > { %s3786_s28 = smov [#allocation9]   ;;  %s3787_s7 = smov [#allocation12]  }
  0x4e   : > { %p4012_p3 = pnand %p3124_p0, %p951_p1  ;;  %s993_s1 = sshll.u32 %s3786_s28, 4  ;;  %s994_s1 = int_to_ptr.vmem [resolvable:$true] %s993_s1 }
  0x4f   : > { %s4029_s10 = sshll.u32 %s3787_s7, 4 }
  0x50   : > { %s1055_s26 = sshll.u32 %s4488_s4, 4  ;;  %p3322_p4 = pneg %p4012_p3  ;;  %s4021_s26 = int_to_ptr.hbm [resolvable:$true] %s1055_s26 }
  0x51   : > { %s991_s29 = sshll.u32 %s4489_s3, 4  ;;  %4492 = sst [smem:[#allocation50_spill]] %s4029_s10  ;;  %s4016_s29 = int_to_ptr.hbm [resolvable:$true] %s991_s29 }
  0x52   : > { %p4025_p5 = pnand %p3350_p2, %p3322_p4  ;;  %s3449_s16 = sshra.s32 %s4016_s29, 4  ;;  %s3450_s16 = int_to_ptr.hbm [resolvable:$true] %s3449_s16 }
  0x53   : > { %s3451_s15 = scalar_lea.hbm %s3450_s16, 96  ;;  %s3456_s28 = scalar_lea.hbm %s4489_s3, 96 }
  0x54   : > { %p3452_p6 = scmp.ne.s32.totalorder %s3450_s16, %s3451_s15  ;;  %p4036_p7 = pneg %p4025_p5 }
  0x55   : > { %p3457_p10 = scmp.lt.s32.totalorder %s3450_s16, %s4489_s3  ;;  %p3458_p11 = scmp.lt.s32.totalorder %s3456_s28, %s3451_s15 }
  0x56   : > { %p3454_p8 = pnand %p4036_p7, %p3452_p6 }
  0x57   : > { %p3459_p12 = por %p3458_p11, %p3457_p10 }
  0x58   : > { %p3455_p9 = pneg %p3454_p8 }
  0x5a   : > { %p3460_p13 = pnand %p3459_p12, %p3455_p9 }
  0x5c   : > { %3463 = shalt.err (!%p3460_p13)
}
  0x5d   : > { %s3788_s7 = smov 128   ;;  %s3789_s11 = smov 8  }
  0x5e   : > { %3328 = dma.hbm_to_vmem [thread:$0]  (!%p4025_p5), %s4016_s29, 1536, %s994_s1, [#allocation10], %s3788_s7, %s3788_s7, %s3789_s11  }
  0x5f   : > { %s3479_s10 = sshra.s32 %s4021_s26, 4  ;;  %s3486_s15 = scalar_lea.hbm %s4488_s4, 192  ;;  %s3480_s10 = int_to_ptr.hbm [resolvable:$true] %s3479_s10 }
  0x60   : > { %s3481_s16 = scalar_lea.hbm %s3480_s10, 192  ;;  %p3487_p6 = scmp.lt.s32.totalorder %s3480_s10, %s4488_s4 }
  0x61   : > { %p3482_p0 = scmp.ne.s32.totalorder %s3480_s10, %s3481_s16  ;;  %p3488_p8 = scmp.lt.s32.totalorder %s3486_s15, %s3481_s16 }
  0x63   : > { %p3484_p1 = pnand %p3482_p0, %p4036_p7  ;;  %p3489_p9 = por %p3488_p8, %p3487_p6 }
  0x65   : > { %p3485_p4 = pneg %p3484_p1 }
  0x67   : > { %p3490_p10 = pnand %p3489_p9, %p3485_p4 }
  0x69   : > { %3493 = shalt.err (!%p3490_p10)
}
  0x6a   : > { %s4494_s28 = sld [smem:[#allocation50_spill]]  ;;  %s4496_s1 = sshll.u32 %s3930_s24, 4  ;;  %s1090_s1 = int_to_ptr.hbm [resolvable:$true] %s4496_s1 }
  0x6b   : > { %s3790_s10 = smov [#allocation15]   ;;  %s1129_s15 = sshll.u32 %s3960_s20, 4  ;;  %s4066_s15 = int_to_ptr.hbm [resolvable:$true] %s1129_s15 }
  0x6c   : > { %s1091_s16 = sshll.u32 %s3790_s10, 4  ;;  %s3509_s3 = sshra.s32 %s1090_s1, 4  ;;  %s1092_s16 = int_to_ptr.vmem [resolvable:$true] %s1091_s16  ;;  %s3510_s3 = int_to_ptr.hbm [resolvable:$true] %s3509_s3 }
  0x6d   : > { %s3511_s4 = scalar_lea.hbm %s3510_s3, 192  ;;  %p3517_p0 = scmp.lt.s32.totalorder %s3510_s3, %s3930_s24 }
  0x6e   : > { %p3512_p11 = scmp.ne.s32.totalorder %s3510_s3, %s3511_s4 }
  0x70   : > { %s4495_s29 = int_to_ptr.vmem [resolvable:$true] %s4494_s28  ;;  %p3514_p12 = pnand %p3512_p11, %p4036_p7 }
  0x71   : > { %3334 = dma.hbm_to_vmem [thread:$0]  (!%p4025_p5), %s4021_s26, 3072, %s4495_s29, [#allocation13], %s3788_s7, %s3788_s7, %s3789_s11  }
  0x72   : > { %p3515_p13 = pneg %p3514_p12  ;;  %s3516_s28 = scalar_lea.hbm %s3930_s24, 192 }
  0x73   : > { %p3518_p1 = scmp.lt.s32.totalorder %s3516_s28, %s3511_s4 }
  0x75   : > { %p3519_p4 = por %p3518_p1, %p3517_p0 }
  0x77   : > { %p3520_p6 = pnand %p3519_p4, %p3515_p13 }
  0x79   : > { %3523 = shalt.err (!%p3520_p6)
}
  0x7a   : > { %3340 = dma.hbm_to_vmem [thread:$0]  (!%p4025_p5), %s1090_s1, 3072, %s1092_s16, [#allocation16], %s3788_s7, %s3788_s7, %s3789_s11  }
  0x7b   : > { %s971_s26 = sshll.u32 %s3825_s21, 4  ;;  %s3791_s29 = smov [#allocation18]   ;;  %s4078_s26 = int_to_ptr.hbm [resolvable:$true] %s971_s26 }
  0x7c   : > { %s1131_s10 = sshll.u32 %s3791_s29, 4  ;;  %s3539_s3 = sshra.s32 %s4066_s15, 4  ;;  %s1132_s10 = int_to_ptr.vmem [resolvable:$true] %s1131_s10  ;;  %s3540_s3 = int_to_ptr.hbm [resolvable:$true] %s3539_s3 }
  0x7d   : > { %s3541_s4 = scalar_lea.hbm %s3540_s3, 96  ;;  %s3546_s28 = scalar_lea.hbm %s3960_s20, 96 }
  0x7e   : > { %p3542_p8 = scmp.ne.s32.totalorder %s3540_s3, %s3541_s4  ;;  %p3547_p11 = scmp.lt.s32.totalorder %s3540_s3, %s3960_s20 }
  0x7f   : > { %p3548_p12 = scmp.lt.s32.totalorder %s3546_s28, %s3541_s4 }
  0x80   : > { %p3544_p9 = pnand %p3542_p8, %p4036_p7 }
  0x81   : > { %p3549_p13 = por %p3548_p12, %p3547_p11 }
  0x82   : > { %p3545_p10 = pneg %p3544_p9 }
  0x84   : > { %p3550_p0 = pnand %p3549_p13, %p3545_p10 }
  0x86   : > { %3553 = shalt.err (!%p3550_p0)
}
  0x87   : > { %3346 = dma.hbm_to_vmem [thread:$0]  (!%p4025_p5), %s4066_s15, 1536, %s1132_s10, [#allocation19], %s3788_s7, %s3788_s7, %s3789_s11  }
  0x88   : > { %s3792_s1 = smov [#allocation7]   ;;  %s1020_s29 = sshll.u32 %s3870_s6, 4  ;;  %s4092_s29 = int_to_ptr.hbm [resolvable:$true] %s1020_s29 }
  0x89   : > { %s973_s16 = sshll.u32 %s3792_s1, 4  ;;  %s3569_s3 = sshra.s32 %s4078_s26, 4  ;;  %s974_s16 = int_to_ptr.vmem [resolvable:$true] %s973_s16  ;;  %s3570_s3 = int_to_ptr.hbm [resolvable:$true] %s3569_s3 }
  0x8a   : > { %s3571_s4 = scalar_lea.hbm %s3570_s3, 96  ;;  %s3576_s28 = scalar_lea.hbm %s3825_s21, 96 }
  0x8b   : > { %p3572_p1 = scmp.ne.s32.totalorder %s3570_s3, %s3571_s4  ;;  %p3577_p8 = scmp.lt.s32.totalorder %s3570_s3, %s3825_s21 }
  0x8c   : > { %p3578_p9 = scmp.lt.s32.totalorder %s3576_s28, %s3571_s4 }
  0x8d   : > { %p3574_p4 = pnand %p3572_p1, %p4036_p7 }
  0x8e   : > { %p3579_p10 = por %p3578_p9, %p3577_p8 }
  0x8f   : > { %p3575_p6 = pneg %p3574_p4 }
  0x91   : > { %p3580_p11 = pnand %p3579_p10, %p3575_p6 }
  0x93   : > { %3583 = shalt.err (!%p3580_p11)
}
  0x94   : > { %3325 = dma.hbm_to_vmem [thread:$0]  (!%p4025_p5), %s4078_s26, 1536, %s974_s16, [#allocation8], %s3788_s7, %s3788_s7, %s3789_s11  }
  0x95   : > { %s1069_s15 = sshll.u32 %s3915_s12, 4  ;;  %s3793_s10 = smov [#allocation11]   ;;  %s4106_s15 = int_to_ptr.hbm [resolvable:$true] %s1069_s15 }
  0x96   : > { %s1022_s1 = sshll.u32 %s3793_s10, 4  ;;  %s3599_s3 = sshra.s32 %s4092_s29, 4  ;;  %s1023_s1 = int_to_ptr.vmem [resolvable:$true] %s1022_s1  ;;  %s3600_s3 = int_to_ptr.hbm [resolvable:$true] %s3599_s3 }
  0x97   : > { %s3601_s4 = scalar_lea.hbm %s3600_s3, 192  ;;  %s3606_s28 = scalar_lea.hbm %s3870_s6, 192 }
  0x98   : > { %p3602_p12 = scmp.ne.s32.totalorder %s3600_s3, %s3601_s4  ;;  %p3607_p1 = scmp.lt.s32.totalorder %s3600_s3, %s3870_s6 }
  0x99   : > { %p3608_p4 = scmp.lt.s32.totalorder %s3606_s28, %s3601_s4 }
  0x9a   : > { %p3604_p13 = pnand %p3602_p12, %p4036_p7 }
  0x9b   : > { %p3609_p6 = por %p3608_p4, %p3607_p1 }
  0x9c   : > { %p3605_p0 = pneg %p3604_p13 }
  0x9e   : > { %p3610_p8 = pnand %p3609_p6, %p3605_p0 }
  0xa0   : > { %3613 = shalt.err (!%p3610_p8)
}
  0xa1   : > { %3331 = dma.hbm_to_vmem [thread:$0]  (!%p4025_p5), %s4092_s29, 3072, %s1023_s1, [#allocation10], %s3788_s7, %s3788_s7, %s3789_s11  }
  0xa2   : > { %s3794_s26 = smov [#allocation14]   ;;  %s1115_s10 = sshll.u32 %s3955_s27, 4  ;;  %s4120_s10 = int_to_ptr.hbm [resolvable:$true] %s1115_s10 }
  0xa3   : > { %s1071_s16 = sshll.u32 %s3794_s26, 4  ;;  %s3629_s3 = sshra.s32 %s4106_s15, 4  ;;  %s1072_s16 = int_to_ptr.vmem [resolvable:$true] %s1071_s16  ;;  %s3630_s3 = int_to_ptr.hbm [resolvable:$true] %s3629_s3 }
  0xa4   : > { %s3631_s4 = scalar_lea.hbm %s3630_s3, 192  ;;  %s3636_s28 = scalar_lea.hbm %s3915_s12, 192 }
  0xa5   : > { %p3632_p9 = scmp.ne.s32.totalorder %s3630_s3, %s3631_s4  ;;  %p3637_p12 = scmp.lt.s32.totalorder %s3630_s3, %s3915_s12 }
  0xa6   : > { %p3638_p13 = scmp.lt.s32.totalorder %s3636_s28, %s3631_s4 }
  0xa7   : > { %p3634_p10 = pnand %p3632_p9, %p4036_p7 }
  0xa8   : > { %p3639_p0 = por %p3638_p13, %p3637_p12 }
  0xa9   : > { %p3635_p11 = pneg %p3634_p10 }
  0xab   : > { %p3640_p1 = pnand %p3639_p0, %p3635_p11 }
  0xad   : > { %3643 = shalt.err (!%p3640_p1)
}
  0xae   : > { %3337 = dma.hbm_to_vmem [thread:$0]  (!%p4025_p5), %s4106_s15, 3072, %s1072_s16, [#allocation13], %s3788_s7, %s3788_s7, %s3789_s11  }
  0xaf   : > { %s1149_s29 = sshll.u32 %s3975_s8, 4  ;;  %s3795_s1 = smov [#allocation17]   ;;  %s4134_s29 = int_to_ptr.hbm [resolvable:$true] %s1149_s29 }
  0xb0   : > { %s1117_s26 = sshll.u32 %s3795_s1, 4  ;;  %s3659_s3 = sshra.s32 %s4120_s10, 4  ;;  %s1118_s26 = int_to_ptr.vmem [resolvable:$true] %s1117_s26  ;;  %s3660_s3 = int_to_ptr.hbm [resolvable:$true] %s3659_s3 }
  0xb1   : > { %s3661_s4 = scalar_lea.hbm %s3660_s3, 96  ;;  %s3666_s28 = scalar_lea.hbm %s3955_s27, 96 }
  0xb2   : > { %p3662_p4 = scmp.ne.s32.totalorder %s3660_s3, %s3661_s4  ;;  %p3667_p9 = scmp.lt.s32.totalorder %s3660_s3, %s3955_s27 }
  0xb3   : > { %p3668_p10 = scmp.lt.s32.totalorder %s3666_s28, %s3661_s4 }
  0xb4   : > { %p3664_p6 = pnand %p3662_p4, %p4036_p7 }
  0xb5   : > { %p3669_p11 = por %p3668_p10, %p3667_p9 }
  0xb6   : > { %p3665_p8 = pneg %p3664_p6 }
  0xb8   : > { %p3670_p12 = pnand %p3669_p11, %p3665_p8 }
  0xba   : > { %3673 = shalt.err (!%p3670_p12)
}
  0xbb   : > { %3343 = dma.hbm_to_vmem [thread:$0]  (!%p4025_p5), %s4120_s10, 1536, %s1118_s26, [#allocation16], %s3788_s7, %s3788_s7, %s3789_s11  }
  0xbc   : > { %s3796_s15 = smov [#allocation20]   ;;  %s3689_s1 = sshra.s32 %s4134_s29, 4  ;;  %s3690_s1 = int_to_ptr.hbm [resolvable:$true] %s3689_s1 }
  0xbd   : > { %s1151_s16 = sshll.u32 %s3796_s15, 4  ;;  %s3691_s3 = scalar_lea.hbm %s3690_s1, 96  ;;  %s1152_s16 = int_to_ptr.vmem [resolvable:$true] %s1151_s16 }
  0xbe   : > { %p3692_p13 = scmp.ne.s32.totalorder %s3690_s1, %s3691_s3  ;;  %s3696_s4 = scalar_lea.hbm %s3975_s8, 96 }
  0xbf   : > { %p3697_p4 = scmp.lt.s32.totalorder %s3690_s1, %s3975_s8  ;;  %p3698_p6 = scmp.lt.s32.totalorder %s3696_s4, %s3691_s3 }
  0xc0   : > { %p3694_p0 = pnand %p3692_p13, %p4036_p7 }
  0xc1   : > { %p3699_p8 = por %p3698_p6, %p3697_p4 }
  0xc2   : > { %p3695_p1 = pneg %p3694_p0 }
  0xc4   : > { %p3700_p9 = pnand %p3699_p8, %p3695_p1 }
  0xc6   : > { %3703 = shalt.err (!%p3700_p9)
}
  0xc7   : > { %3349 = dma.hbm_to_vmem [thread:$0]  (!%p4025_p5), %s4134_s29, 1536, %s1152_s16, [#allocation19], %s3788_s7, %s3788_s7, %s3789_s11  }
  0xc8   : > { %1187 = sbr.rel (%p4012_p3) target bundleno = 2143 (0x85f), region = 176 }
  0xcd   : > { %3724 = dma.done.wait (%p3350_p2), [#allocation8], 1536  }
  0xce   : > { %3726 = vsyncadd (%p3350_p2), [#allocation8], 4294965760 }
  0xcf   : > { %3728 = dma.done.wait (%p3350_p2), [#allocation10], 4608  }
  0xd0   : > { %3730 = vsyncadd (%p3350_p2), [#allocation10], 4294962688 }
  0xd1   : > { %3732 = dma.done.wait (%p3350_p2), [#allocation13], 6144  }
  0xd2   : > { %3734 = vsyncadd (%p3350_p2), [#allocation13], 4294961152 }
  0xd3   : > { %3736 = dma.done.wait (%p3350_p2), [#allocation16], 4608  }
  0xd4   : > { %3738 = vsyncadd (%p3350_p2), [#allocation16], 4294962688 }
  0xd5   : > { %3740 = dma.done.wait (%p3350_p2), [#allocation19], 3072  }
  0xd6   : > { %3742 = vsyncadd (%p3350_p2), [#allocation19], 4294964224  ;;  %p1324_p3 = scmp.lt.s32.totalorder %s4006_s0, 1  ;;  %vm1338_vm0 = vcmask 1040384   ;;  %vm1347_vm1 = vcmask 7168   ;;  %vm1409_vm2 = vcmask 1046528  }
  0xd7   : > { %v3149_v1 = vld [vmem:[%s3810_s9 + $0x1] sm:$0x1]  ;;  %v1344_v6 = vld [vmem:[%s3810_s9] sm:$0x1]  ;;  %v3156_v8 = vld [vmem:[%s3810_s9 + $0x2] sm:$0x1] }
  0xd8   : > { %s4520_s0 = smov (!%p1324_p3, %s4006_s0), 1  ;;  %3285 = vmatpush.msk.msra.mxu1 %vm1338_vm0, %v3149_v1  ;;  %3150 = vmatpush.msk.msra.mxu0 %vm1338_vm0, %v3149_v1  ;;  %v1479_v14 = vld [vmem:[#allocation7 + $0x38] sm:$0xff]  ;;  %v1478_v15 = vld [vmem:[#allocation7 + $0x30] sm:$0xff]  ;;  %v1477_v18 = vld [vmem:[#allocation7 + $0x28] sm:$0xff]  ;;  %vm1480_vm3 = vcmask 261120   ;;  %s4497_s11 = sld [smem:[#allocation26_spill]] }
  0xd9   : > { %s3283_s23 = sshll.u32 %s4520_s0, 4  ;;  %3157 = vmatpush.msk.msra.mxu2 %vm1338_vm0, %v3156_v8  ;;  %1497 = vmatpush.msra.mxu3 %v1479_v14  ;;  %v1545_v16 = vld [vmem:[#allocation7 + $0x58] sm:$0xff]  ;;  %v1473_v19 = vld [vmem:[#allocation7 + $0x10] sm:$0xff]  ;;  %v1476_v20 = vld [vmem:[#allocation7 + $0x20] sm:$0xff]  ;;  %s4498_s18 = sld [smem:[#allocation30_spill]]  ;;  %vm1718_vm4 = vcmask 523264  }
  0xda   : > { %s1328_s2 = scalar_lea.vmem %s3805_s5, %s3283_s23  ;;  %3153 = vmatpush.msk.msrb.mxu1 %vm1338_vm0, %v1344_v6  ;;  %v1474_v17 = vld [vmem:[#allocation7 + $0x18] sm:$0xff]  ;;  %v1472_v21 = vld [vmem:[#allocation7 + $0x8] sm:$0xff]  ;;  %v1471_v22 = vld [vmem:[#allocation7] sm:$0xff]  ;;  %s4499_s7 = sld [smem:[#allocation28_spill]]  ;;  %vm1884_vm5 = vcmask 1042432  }
  0xdb   : > { %v1334_v2 = vld [vmem:[%s1328_s2] sm:$0xff]  ;;  %v1335_v3 = vld [vmem:[%s1328_s2 + $0x8] sm:$0xff]  ;;  %1498 = vmatpush.msra.mxu3 %v1478_v15  ;;  %1525 = vmatpush.msrb.mxu0 %v1474_v17  ;;  %v1542_v25 = vld [vmem:[#allocation7 + $0x40] sm:$0xff]  ;;  %s4500_s10 = sld [smem:[#allocation29_spill]] }
  0xdc   : > { %v1410_v4 = vrot.slane %v1334_v2, 1  ;;  %v1411_v5 = vrot.slane %v1335_v3, 1  ;;  %v1339_v7 = vrot.slane %v1334_v2, 7  ;;  %3152 = vmatmul.msk.f32.vlgmr.msra.gmra.mxu1 %vm1347_vm1, %v1335_v3  ;;  %3151 = vmatmul.msk.f32.vlgmr.msra.gmra.mxu0 %vm1347_vm1, %v1334_v2  ;;  %v1340_v12 = vrot.slane %v1335_v3, 7  ;;  %v1544_v23 = vld [vmem:[#allocation7 + $0x50] sm:$0xff]  ;;  %v1543_v24 = vld [vmem:[#allocation7 + $0x48] sm:$0xff]  ;;  %vm3207_vm6 = vmneg %vm1338_vm0 }
  0xdd   : > { %1563 = vmatpush.msra.mxu1 %v1545_v16  ;;  %1499 = vmatpush.msra.mxu3 %v1477_v18  ;;  %v3426_v31 = vld [vmem:[%s3815_s13] ss:$0 sm:$0xff]  ;;  %v1608_v52 = vld [vmem:[#allocation9 + $0x38] sm:$0xff]  ;;  %v1607_v53 = vld [vmem:[#allocation9 + $0x30] sm:$0xff]  ;;  %s4501_s29 = sld [smem:[#allocation35_spill]] }
  0xde   : > { %v1412_v9 = vsel %vm1409_vm2, %v1410_v4, %v1411_v5  ;;  %v1343_v10 = vsel %vm1338_vm0, 0.0, %v1339_v7  ;;  %v1414_v11 = vsel %vm1409_vm2, %v1411_v5, 0.0  ;;  %v1341_v13 = vsel %vm1338_vm0, %v1339_v7, %v1340_v12  ;;  %1526 = vmatpush.msrb.mxu0 %v1473_v19  ;;  %v3427_v33 = vld [vmem:[%s3820_s17] ss:$0 sm:$0xff]  ;;  %v1603_v54 = vld [vmem:[#allocation9 + $0x18] sm:$0xff]  ;;  %1623 = vmatpush.msrb.mxu2 %v1608_v52  ;;  %v1602_v55 = vld [vmem:[#allocation9 + $0x10] sm:$0xff] }
  0xdf   : > { %3158 = vmatmul.msk.f32.vlgmr.msra.gmra.mxu2 %vm1347_vm1, %v1412_v9  ;;  %1500 = vmatpush.msra.mxu3 %v1476_v20  ;;  %v1606_v56 = vld [vmem:[#allocation9 + $0x28] sm:$0xff]  ;;  %v1605_v58 = vld [vmem:[#allocation9 + $0x20] sm:$0xff]  ;;  %v1661_v60 = vld [vmem:[#allocation9 + $0x58] sm:$0xff]  ;;  %s4502_s26 = sld [smem:[#allocation31_spill]] }
  0xe0   : > { %1527 = vmatpush.msrb.mxu0 %v1472_v21  ;;  %1564 = vmatpush.msra.mxu1 %v1544_v23  ;;  %v1601_v57 = vld [vmem:[#allocation9 + $0x8] sm:$0xff]  ;;  %v1600_v61 = vld [vmem:[#allocation9] sm:$0xff]  ;;  %v1660_v62 = vld [vmem:[#allocation9 + $0x50] sm:$0xff]  ;;  %s4503_s28 = sld [smem:[#allocation32_spill]] }
  0xe1   : > { %1646 = vmatpush.msrb.mxu3 %v1603_v54  ;;  %1624 = vmatpush.msrb.mxu2 %v1607_v53  ;;  %v1659_v0 = vld [vmem:[#allocation9 + $0x48] sm:$0xff]  ;;  %v1658_v3 = vld [vmem:[#allocation9 + $0x40] sm:$0xff]  ;;  %s4504_s15 = sld [smem:[#allocation38_spill]] }
  0xe2   : > { %1528 = vmatpush.msrb.mxu0 %v1471_v22  ;;  %1565 = vmatpush.msra.mxu1 %v1543_v24  ;;  %v3428_v2 = vld [vmem:[%s3830_s25] ss:$0 sm:$0xff]  ;;  %s4505_s16 = sld [smem:[#allocation33_spill]] }
  0xe3   : > { %1647 = vmatpush.msrb.mxu3 %v1602_v55  ;;  %1625 = vmatpush.msrb.mxu2 %v1606_v56  ;;  %v3429_v6 = vld [vmem:[%s4497_s11] ss:$0 sm:$0xff]  ;;  %s4506_s1 = sld [smem:[#allocation34_spill]] }
  0xe4   : > { %3154 = vmatmul.msk.f32.vlgmr.msrb.gmra.mxu1 %vm1347_vm1, %v1343_v10  ;;  %v3430_v52 = vld [vmem:[%s4499_s7] ss:$0 sm:$0xff]  ;;  %s4507_s3 = sld [smem:[#allocation36_spill]] }
  0xe5   : > { %1566 = vmatpush.msra.mxu1 %v1542_v25  ;;  %1648 = vmatpush.msrb.mxu3 %v1601_v57  ;;  %v3176_v25 = vld [vmem:[%s4498_s18 + $0x78] sm:$0xff]  ;;  %v3431_v55 = vld [vmem:[%s4500_s10] ss:$0 sm:$0xff]  ;;  %s4508_s4 = sld [smem:[#allocation37_spill]] }
  0xe6   : > { %1626 = vmatpush.msrb.mxu2 %v1605_v58  ;;  %1729 = vmatpush.msra.mxu0 %v3176_v25  ;;  %v3206_v25 = vld [vmem:[%s4501_s29 + $0xf8] sm:$0xff]  ;;  %s4509_s2 = sld [smem:[#allocation39_spill]] }
  0xe7   : > { %3159 = vmatmul.msk.f32.gmra.mxu2 %vm1347_vm1, %v1414_v11  ;;  %1649 = vmatpush.msrb.mxu3 %v1600_v61  ;;  %s4510_s11 = sld [smem:[#allocation41_spill]] }
  0xe8   : > { %1677 = vmatpush.msra.mxu2 %v1661_v60  ;;  %s4511_s7 = sld [smem:[#allocation42_spill]] }
  0xe9   : > { %s4512_s10 = sld [smem:[#allocation45_spill]] }
  0xea   : > { %1678 = vmatpush.msra.mxu2 %v1660_v62 }
  0xec   : > { %3155 = vmatmul.msk.f32.gmra.mxu1 %vm1347_vm1, %v1341_v13  ;;  %1679 = vmatpush.msra.mxu2 %v1659_v0  ;;  %v1835_v0 = vld [vmem:[#allocation11 + $0x70] sm:$0xff] }
  0xee   : > { %1680 = vmatpush.msra.mxu2 %v1658_v3  ;;  %v1834_v3 = vld [vmem:[#allocation11 + $0x68] sm:$0xff] }
 0x159   : > { %v1375_v26 = vpop.f32.mrf.mxu1  ;;  %v1372_v27 = vpop.f32.mrf.mxu0 }
 0x161   : > { %v1403_v28 = vpop.f32.mrf.mxu1 }
 0x162   : > { %v1442_v29 = vpop.f32.mrf.mxu2  ;;  %v1404_v30 = vadd.f32 %v1403_v28, %v1372_v27  ;;  %v1708_v27 = vld [vmem:[%s4498_s18 + $0x38] sm:$0xff] }
 0x163   : > { %v3186_v28 = vld [vmem:[%s4498_s18 + $0xb8] sm:$0xff]  ;;  %1752 = vmatpush.msrb.mxu1 %v1708_v27 }
 0x164   : > { %v1448_v32 = vadd.f32 %v1442_v29, %v1404_v30  ;;  %v3174_v29 = vld [vmem:[%s4498_s18 + $0x68] sm:$0xff]  ;;  %v1707_v30 = vld [vmem:[%s4498_s18 + $0x30] sm:$0xff]  ;;  %v1949_v27 = vld [vmem:[%s4501_s29 + $0x78] sm:$0xff] }
 0x165   : > { %1753 = vmatpush.msrb.mxu1 %v1707_v30  ;;  %v3204_v30 = vld [vmem:[%s4501_s29 + $0xe8] sm:$0xff] }
 0x166   : > { %v1454_v34 = vmul.f32 %v3426_v31, %v1448_v32  ;;  %v3173_v32 = vld [vmem:[%s4498_s18 + $0x60] sm:$0xff] }
 0x168   : > { %v1460_v35 = vadd.f32 %v3427_v33, %v1454_v34  ;;  %v3184_v34 = vld [vmem:[%s4498_s18 + $0xa8] sm:$0xff] }
 0x169   : > { %v1406_v36 = vpop.f32.mrf.mxu1 }
 0x16a   : > { %v1445_v37 = vpop.f32.mrf.mxu2  ;;  %v1407_v38 = vadd.f32 %v1406_v36, %v1375_v26  ;;  %v1462_v39 = vmax.f32 %v1460_v35, 0.0  ;;  %v3175_v26 = vld [vmem:[%s4498_s18 + $0x70] sm:$0xff]  ;;  %v3172_v35 = vld [vmem:[%s4498_s18 + $0x58] sm:$0xff]  ;;  %v1705_v36 = vld [vmem:[%s4498_s18 + $0x20] sm:$0xff] }
 0x16b   : > { %1730 = vmatpush.msra.mxu0 %v3175_v26  ;;  %v3205_v26 = vld [vmem:[%s4501_s29 + $0xf0] sm:$0xff] }
 0x16c   : > { %v1449_v40 = vadd.f32 %v1445_v37, %v1407_v38  ;;  %3160 = vmatmul.msk.f32.vlgmr.msra.gmra.mxu3 %vm1480_vm3, %v1462_v39  ;;  %v1466_v41 = vrot.slane %v1462_v39, 7  ;;  %v1536_v46 = vrot.slane %v1462_v39, 1  ;;  %v3183_v37 = vld [vmem:[%s4498_s18 + $0xa0] sm:$0xff]  ;;  %v3171_v38 = vld [vmem:[%s4498_s18 + $0x50] sm:$0xff]  ;;  %v1704_v39 = vld [vmem:[%s4498_s18 + $0x18] sm:$0xff] }
 0x16d   : > { %1787 = vmatpush.msra.mxu3 %v3186_v28  ;;  %1731 = vmatpush.msra.mxu0 %v3174_v29  ;;  %v3224_v28 = vld [vmem:[%s4501_s29 + $0x178] sm:$0xff]  ;;  %v1948_v29 = vld [vmem:[%s4501_s29 + $0x70] sm:$0xff] }
 0x16e   : > { %v1455_v42 = vmul.f32 %v3426_v31, %v1449_v40  ;;  %v1470_v43 = vsel %vm1338_vm0, 0.0, %v1466_v41  ;;  %v3185_v31 = vld [vmem:[%s4498_s18 + $0xb0] sm:$0xff]  ;;  %v3182_v40 = vld [vmem:[%s4498_s18 + $0x98] sm:$0xff] }
 0x16f   : > { %3162 = vmatmul.msk.f32.vlgmr.msrb.gmra.mxu0 %vm1480_vm3, %v1470_v43  ;;  %1788 = vmatpush.msra.mxu3 %v3185_v31  ;;  %v3181_v43 = vld [vmem:[%s4498_s18 + $0x90] sm:$0xff] }
 0x170   : > { %v1461_v44 = vadd.f32 %v3427_v33, %v1455_v42  ;;  %1732 = vmatpush.msra.mxu0 %v3173_v32  ;;  %v1706_v33 = vld [vmem:[%s4498_s18 + $0x28] sm:$0xff]  ;;  %v1703_v42 = vld [vmem:[%s4498_s18 + $0x10] sm:$0xff] }
 0x171   : > { %1754 = vmatpush.msrb.mxu1 %v1706_v33  ;;  %1789 = vmatpush.msra.mxu3 %v3184_v34  ;;  %v3223_v31 = vld [vmem:[%s4501_s29 + $0x170] sm:$0xff]  ;;  %v1947_v32 = vld [vmem:[%s4501_s29 + $0x68] sm:$0xff]  ;;  %v3203_v34 = vld [vmem:[%s4501_s29 + $0xe0] sm:$0xff] }
 0x172   : > { %v1463_v45 = vmax.f32 %v1461_v44, 0.0  ;;  %1733 = vmatpush.msra.mxu0 %v3172_v35  ;;  %v3169_v44 = vld [vmem:[%s4498_s18 + $0x40] sm:$0xff]  ;;  %v3222_v33 = vld [vmem:[%s4501_s29 + $0x168] sm:$0xff] }
 0x173   : > { %1755 = vmatpush.msrb.mxu1 %v1705_v36  ;;  %1790 = vmatpush.msra.mxu3 %v3183_v37  ;;  %v1946_v35 = vld [vmem:[%s4501_s29 + $0x60] sm:$0xff] }
 0x174   : > { %3161 = vmatmul.msk.f32.gmra.mxu3 %vm1480_vm3, %v1463_v45  ;;  %v1537_v47 = vrot.slane %v1463_v45, 1  ;;  %v1467_v48 = vrot.slane %v1463_v45, 7  ;;  %1734 = vmatpush.msra.mxu0 %v3171_v38  ;;  %v1702_v45 = vld [vmem:[%s4498_s18 + $0x8] sm:$0xff]  ;;  %v3221_v36 = vld [vmem:[%s4501_s29 + $0x160] sm:$0xff]  ;;  %v3202_v38 = vld [vmem:[%s4501_s29 + $0xd8] sm:$0xff] }
 0x175   : > { %1756 = vmatpush.msrb.mxu1 %v1704_v39  ;;  %1791 = vmatpush.msra.mxu3 %v3182_v40  ;;  %v1945_v39 = vld [vmem:[%s4501_s29 + $0x58] sm:$0xff] }
 0x176   : > { %v1468_v49 = vsel %vm1338_vm0, %v1466_v41, %v1467_v48  ;;  %v1538_v50 = vsel %vm1409_vm2, %v1536_v46, %v1537_v47  ;;  %v1540_v51 = vsel %vm1409_vm2, %v1537_v47, 0.0  ;;  %v3170_v41 = vld [vmem:[%s4498_s18 + $0x48] sm:$0xff]  ;;  %v1701_v47 = vld [vmem:[%s4498_s18] sm:$0xff]  ;;  %v3220_v40 = vld [vmem:[%s4501_s29 + $0x158] sm:$0xff] }
 0x177   : > { %3163 = vmatmul.msk.f32.gmra.mxu0 %vm1480_vm3, %v1468_v49  ;;  %3164 = vmatmul.msk.f32.vlgmr.msra.gmra.mxu1 %vm1480_vm3, %v1538_v50  ;;  %v3180_v46 = vld [vmem:[%s4498_s18 + $0x88] sm:$0xff]  ;;  %v3179_v48 = vld [vmem:[%s4498_s18 + $0x80] sm:$0xff] }
 0x178   : > { %1735 = vmatpush.msra.mxu0 %v3170_v41  ;;  %1757 = vmatpush.msrb.mxu1 %v1703_v42  ;;  %v3201_v42 = vld [vmem:[%s4501_s29 + $0xd0] sm:$0xff] }
 0x179   : > { %1792 = vmatpush.msra.mxu3 %v3181_v43  ;;  %v1944_v43 = vld [vmem:[%s4501_s29 + $0x50] sm:$0xff] }
 0x17a   : > { %1736 = vmatpush.msra.mxu0 %v3169_v44  ;;  %1758 = vmatpush.msrb.mxu1 %v1702_v45  ;;  %v3432_v45 = vld [vmem:[%s4502_s26] ss:$0 sm:$0xff]  ;;  %s4513_s26 = sld [smem:[#allocation43_spill]] }
 0x17b   : > { %1793 = vmatpush.msra.mxu3 %v3180_v46  ;;  %v3219_v46 = vld [vmem:[%s4501_s29 + $0x150] sm:$0xff] }
 0x17c   : > { %1759 = vmatpush.msrb.mxu1 %v1701_v47 }
 0x17d   : > { %1794 = vmatpush.msra.mxu3 %v3179_v48  ;;  %v3200_v48 = vld [vmem:[%s4501_s29 + $0xc8] sm:$0xff] }
 0x17f   : > { %3165 = vmatmul.msk.f32.gmra.mxu1 %vm1480_vm3, %v1540_v51 }
 0x1ec   : > { %v1530_v63 = vpop.f32.mrf.mxu0 }
 0x1ef   : > { %v1502_v59 = vpop.f32.mrf.mxu3 }
 0x1f0   : > { %v1531_v1 = vadd.f32 %v1530_v63, %v1502_v59  ;;  %v1836_v63 = vld [vmem:[#allocation11 + $0x78] sm:$0xff] }
 0x1f4   : > { %v1568_v4 = vpop.f32.mrf.mxu1  ;;  %v1533_v10 = vpop.f32.mrf.mxu0 }
 0x1f5   : > { %v1574_v5 = vadd.f32 %v1568_v4, %v1531_v1  ;;  %v1827_v1 = vld [vmem:[#allocation11 + $0x38] sm:$0xff]  ;;  %v1826_v4 = vld [vmem:[#allocation11 + $0x30] sm:$0xff] }
 0x1f6   : > { %1870 = vmatpush.msrb.mxu0 %v1827_v1 }
 0x1f7   : > { %v1580_v7 = vmul.f32 %v3428_v2, %v1574_v5  ;;  %v1505_v8 = vpop.f32.mrf.mxu3  ;;  %v1893_v5 = vld [vmem:[#allocation11 + $0xb0] sm:$0xff] }
 0x1f8   : > { %v1534_v12 = vadd.f32 %v1533_v10, %v1505_v8  ;;  %1871 = vmatpush.msrb.mxu0 %v1826_v4  ;;  %v1892_v8 = vld [vmem:[#allocation11 + $0xa8] sm:$0xff]  ;;  %v1824_v10 = vld [vmem:[#allocation11 + $0x20] sm:$0xff] }
 0x1f9   : > { %v1586_v9 = vadd.f32 %v3429_v6, %v1580_v7  ;;  %v1825_v7 = vld [vmem:[#allocation11 + $0x28] sm:$0xff] }
 0x1fa   : > { %1872 = vmatpush.msrb.mxu0 %v1825_v7  ;;  %v1941_v4 = vld [vmem:[%s4501_s29 + $0x38] sm:$0xff]  ;;  %v1940_v7 = vld [vmem:[%s4501_s29 + $0x30] sm:$0xff] }
 0x1fb   : > { %v4219_v11 = vmax.f32 %v1586_v9, 0.0  ;;  %v1832_v9 = vld [vmem:[#allocation11 + $0x58] sm:$0xff] }
 0x1fc   : > { %v1571_v13 = vpop.f32.mrf.mxu1  ;;  %1873 = vmatpush.msrb.mxu0 %v1824_v10  ;;  %v1939_v10 = vld [vmem:[%s4501_s29 + $0x28] sm:$0xff] }
 0x1fd   : > { %1590 = vst.msk [vmem:[#allocation2] sm:$0xff] %vm1480_vm3, %v4219_v11  ;;  %v1575_v14 = vadd.f32 %v1571_v13, %v1534_v12  ;;  %v1891_v12 = vld [vmem:[#allocation11 + $0xa0] sm:$0xff]  ;;  %v1831_v13 = vld [vmem:[#allocation11 + $0x50] sm:$0xff] }
 0x1ff   : > { %v1581_v15 = vmul.f32 %v3428_v2, %v1575_v14  ;;  %v1894_v2 = vld [vmem:[#allocation11 + $0xb8] sm:$0xff] }
 0x200   : > { %1906 = vmatpush.msra.mxu1 %v1894_v2  ;;  %v1823_v14 = vld [vmem:[#allocation11 + $0x18] sm:$0xff] }
 0x201   : > { %v1587_v16 = vadd.f32 %v3429_v6, %v1581_v15  ;;  %v1833_v6 = vld [vmem:[#allocation11 + $0x60] sm:$0xff]  ;;  %v1890_v15 = vld [vmem:[#allocation11 + $0x98] sm:$0xff]  ;;  %1874 = vmatpush.msrb.mxu0 %v1823_v14  ;;  %v1938_v14 = vld [vmem:[%s4501_s29 + $0x20] sm:$0xff] }
 0x202   : > { %1907 = vmatpush.msra.mxu1 %v1893_v5  ;;  %v3216_v5 = vld [vmem:[%s4501_s29 + $0x138] sm:$0xff] }
 0x203   : > { %v4223_v17 = vmax.f32 %v1587_v16, 0.0  ;;  %v1830_v16 = vld [vmem:[#allocation11 + $0x48] sm:$0xff] }
 0x204   : > { %1908 = vmatpush.msra.mxu1 %v1892_v8  ;;  %v3215_v8 = vld [vmem:[%s4501_s29 + $0x130] sm:$0xff] }
 0x205   : > { %1591 = vst.msk [vmem:[#allocation2 + $0x8] sm:$0xff] %vm1480_vm3, %v4223_v17 }
 0x206   : > { %1909 = vmatpush.msra.mxu1 %v1891_v12  ;;  %v3214_v12 = vld [vmem:[%s4501_s29 + $0x128] sm:$0xff] }
 0x208   : > { %1910 = vmatpush.msra.mxu1 %v1890_v15  ;;  %v3213_v15 = vld [vmem:[%s4501_s29 + $0x120] sm:$0xff] }
 0x20c   : > { %v1592_v18 = vld [vmem:[#allocation2] ss:$2 sm:$0xff]  ;;  %v1594_v19 = vld [vmem:[#allocation2 + $0x1] ss:$2 sm:$0xff] }
 0x20d   : > { %v1595_v20 = vmax.f32 %v1592_v18, %v1594_v19  ;;  %v1822_v18 = vld [vmem:[#allocation11 + $0x10] sm:$0xff] }
 0x20e   : > { %v1889_v19 = vld [vmem:[#allocation11 + $0x90] sm:$0xff]  ;;  %1875 = vmatpush.msrb.mxu0 %v1822_v18  ;;  %v1937_v18 = vld [vmem:[%s4501_s29 + $0x18] sm:$0xff] }
 0x20f   : > { %3166 = vmatmul.msk.f32.vlgmr.msrb.gmra.mxu2 %vm1480_vm3, %v1595_v20  ;;  %v1597_v21 = vrot.slane %v1595_v20, 7  ;;  %v1654_v23 = vrot.slane %v1595_v20, 1  ;;  %v1829_v20 = vld [vmem:[#allocation11 + $0x40] sm:$0xff]  ;;  %1911 = vmatpush.msra.mxu1 %v1889_v19 }
 0x210   : > { %1847 = vmatpush.msrb.mxu2 %v1836_v63  ;;  %v3212_v19 = vld [vmem:[%s4501_s29 + $0x118] sm:$0xff] }
 0x211   : > { %v1599_v22 = vsel %vm1338_vm0, 0.0, %v1597_v21  ;;  %v1656_v24 = vsel %vm1409_vm2, %v1654_v23, 0.0  ;;  %v1821_v21 = vld [vmem:[#allocation11 + $0x8] sm:$0xff]  ;;  %v1820_v23 = vld [vmem:[#allocation11] sm:$0xff] }
 0x212   : > { %3167 = vmatmul.msk.f32.vlgmr.msrb.gmra.mxu3 %vm1480_vm3, %v1599_v22  ;;  %1848 = vmatpush.msrb.mxu2 %v1835_v0  ;;  %v1888_v22 = vld [vmem:[#allocation11 + $0x88] sm:$0xff] }
 0x213   : > { %1876 = vmatpush.msrb.mxu0 %v1821_v21  ;;  %1912 = vmatpush.msra.mxu1 %v1888_v22  ;;  %v1936_v21 = vld [vmem:[%s4501_s29 + $0x10] sm:$0xff] }
 0x214   : > { %1849 = vmatpush.msrb.mxu2 %v1834_v3  ;;  %1967 = vmatpush.msrb.mxu3 %v3206_v25  ;;  %v3197_v3 = vld [vmem:[%s4501_s29 + $0xb0] sm:$0xff]  ;;  %v3210_v25 = vld [vmem:[%s4501_s29 + $0x108] sm:$0xff] }
 0x215   : > { %1877 = vmatpush.msrb.mxu0 %v1820_v23  ;;  %v3211_v22 = vld [vmem:[%s4501_s29 + $0x110] sm:$0xff]  ;;  %v3191_v23 = vld [vmem:[%s4501_s29 + $0x80] sm:$0xff] }
 0x216   : > { %1850 = vmatpush.msrb.mxu2 %v1833_v6  ;;  %1968 = vmatpush.msrb.mxu3 %v3205_v26  ;;  %v3196_v6 = vld [vmem:[%s4501_s29 + $0xa8] sm:$0xff]  ;;  %v1934_v26 = vld [vmem:[%s4501_s29] sm:$0xff] }
 0x217   : > { %3168 = vmatmul.msk.f32.vlgmr.msra.gmra.mxu2 %vm1480_vm3, %v1656_v24  ;;  %v1887_v24 = vld [vmem:[#allocation11 + $0x80] sm:$0xff] }
 0x218   : > { %1851 = vmatpush.msrb.mxu2 %v1832_v9  ;;  %1913 = vmatpush.msra.mxu1 %v1887_v24  ;;  %v3195_v9 = vld [vmem:[%s4501_s29 + $0xa0] sm:$0xff]  ;;  %v1935_v24 = vld [vmem:[%s4501_s29 + $0x8] sm:$0xff] }
 0x219   : > { %1969 = vmatpush.msrb.mxu3 %v3204_v30  ;;  %v2074_v30 = vld [vmem:[%s4504_s15 + $0x70] sm:$0xff] }
 0x21a   : > { %1852 = vmatpush.msrb.mxu2 %v1831_v13  ;;  %v3194_v13 = vld [vmem:[%s4501_s29 + $0x98] sm:$0xff] }
 0x21b   : > { %1970 = vmatpush.msrb.mxu3 %v3203_v34  ;;  %v2072_v34 = vld [vmem:[%s4504_s15 + $0x60] sm:$0xff] }
 0x21c   : > { %1853 = vmatpush.msrb.mxu2 %v1830_v16  ;;  %v3193_v16 = vld [vmem:[%s4501_s29 + $0x90] sm:$0xff] }
 0x21d   : > { %1971 = vmatpush.msrb.mxu3 %v3202_v38  ;;  %v2070_v38 = vld [vmem:[%s4504_s15 + $0x50] sm:$0xff] }
 0x21e   : > { %1854 = vmatpush.msrb.mxu2 %v1829_v20  ;;  %v3192_v20 = vld [vmem:[%s4501_s29 + $0x88] sm:$0xff] }
 0x21f   : > { %1972 = vmatpush.msrb.mxu3 %v3201_v42 }
 0x220   : > { %1987 = vmatpush.msra.mxu2 %v1949_v27  ;;  %v3209_v27 = vld [vmem:[%s4501_s29 + $0x100] sm:$0xff] }
 0x221   : > { %1973 = vmatpush.msrb.mxu3 %v3200_v48  ;;  %v3435_v48 = vld [vmem:[%s4506_s1] ss:$0 sm:$0xff]  ;;  %s4516_s1 = sld [smem:[#allocation47_spill]] }
 0x222   : > { %1988 = vmatpush.msra.mxu2 %v1948_v29  ;;  %v3241_v29 = vld [vmem:[%s4504_s15 + $0xf8] sm:$0xff] }
 0x224   : > { %1989 = vmatpush.msra.mxu2 %v1947_v32  ;;  %v2073_v32 = vld [vmem:[%s4504_s15 + $0x68] sm:$0xff] }
 0x226   : > { %1990 = vmatpush.msra.mxu2 %v1946_v35  ;;  %v3238_v35 = vld [vmem:[%s4504_s15 + $0xe0] sm:$0xff] }
 0x228   : > { %1991 = vmatpush.msra.mxu2 %v1945_v39  ;;  %v3236_v39 = vld [vmem:[%s4504_s15 + $0xd0] sm:$0xff] }
 0x22a   : > { %1992 = vmatpush.msra.mxu2 %v1944_v43 }
 0x292   : > { %v1628_v49 = vpop.f32.mrf.mxu2 }
 0x295   : > { %v1651_v50 = vpop.f32.mrf.mxu3 }
 0x296   : > { %v1652_v51 = vadd.f32 %v1651_v50, %v1628_v49  ;;  %v1943_v49 = vld [vmem:[%s4501_s29 + $0x48] sm:$0xff] }
 0x297   : > { %1993 = vmatpush.msra.mxu2 %v1943_v49 }
 0x29a   : > { %v1682_v53 = vpop.f32.mrf.mxu2 }
 0x29b   : > { %v1685_v54 = vadd.f32 %v1682_v53, %v1652_v51  ;;  %v3433_v51 = vld [vmem:[%s4503_s28] ss:$0 sm:$0xff]  ;;  %s4514_s28 = sld [smem:[#allocation44_spill]] }
 0x29c   : > { %v3199_v53 = vld [vmem:[%s4501_s29 + $0xc0] sm:$0xff] }
 0x29d   : > { %v1690_v56 = vmul.f32 %v3430_v52, %v1685_v54  ;;  %v3218_v52 = vld [vmem:[%s4501_s29 + $0x148] sm:$0xff]  ;;  %v1942_v54 = vld [vmem:[%s4501_s29 + $0x40] sm:$0xff]  ;;  %1974 = vmatpush.msrb.mxu3 %v3199_v53 }
 0x29e   : > { %1994 = vmatpush.msra.mxu2 %v1942_v54  ;;  %v2068_v54 = vld [vmem:[%s4504_s15 + $0x40] sm:$0xff] }
 0x29f   : > { %v1695_v57 = vadd.f32 %v3431_v55, %v1690_v56  ;;  %v3217_v56 = vld [vmem:[%s4501_s29 + $0x140] sm:$0xff] }
 0x2a0   : > { %1995 = vmatpush.msra.mxu2 %v1941_v4  ;;  %v3228_v4 = vld [vmem:[%s4504_s15 + $0x90] sm:$0xff] }
 0x2a1   : > { %v1696_v58 = vmax.f32 %v1695_v57, 0.0  ;;  %v3198_v57 = vld [vmem:[%s4501_s29 + $0xb8] sm:$0xff] }
 0x2a2   : > { %1975 = vmatpush.msrb.mxu3 %v3198_v57  ;;  %1996 = vmatpush.msra.mxu2 %v1940_v7  ;;  %v3233_v57 = vld [vmem:[%s4504_s15 + $0xb8] sm:$0xff]  ;;  %v2060_v7 = vld [vmem:[%s4504_s15] sm:$0xff] }
 0x2a3   : > { %3177 = vmatmul.msk.f32.vlgmr.msra.gmra.mxu0 %vm1718_vm4, %v1696_v58  ;;  %v1698_v59 = vrot.slane %v1696_v58, 7  ;;  %v1764_v60 = vrot.slane %v1696_v58, 1 }
 0x2a4   : > { %2027 = vmatpush.msra.mxu0 %v3224_v28  ;;  %1976 = vmatpush.msrb.mxu3 %v3197_v3  ;;  %v2075_v28 = vld [vmem:[%s4504_s15 + $0x78] sm:$0xff]  ;;  %v2062_v3 = vld [vmem:[%s4504_s15 + $0x10] sm:$0xff] }
 0x2a5   : > { %v1700_v61 = vsel %vm1338_vm0, 0.0, %v1698_v59  ;;  %v1766_v62 = vsel %vm1409_vm2, %v1764_v60, 0.0  ;;  %1997 = vmatpush.msra.mxu2 %v1939_v10  ;;  %v2159_v10 = vld [vmem:[#allocation12 + $0x70] sm:$0xff] }
 0x2a6   : > { %3178 = vmatmul.msk.f32.vlgmr.msrb.gmra.mxu1 %vm1718_vm4, %v1700_v61  ;;  %3187 = vmatmul.msk.f32.vlgmr.msra.gmra.mxu3 %vm1718_vm4, %v1766_v62 }
 0x2a7   : > { %2028 = vmatpush.msra.mxu0 %v3223_v31  ;;  %1977 = vmatpush.msrb.mxu3 %v3196_v6  ;;  %v3240_v31 = vld [vmem:[%s4504_s15 + $0xf0] sm:$0xff]  ;;  %v3227_v6 = vld [vmem:[%s4504_s15 + $0x88] sm:$0xff] }
 0x2a8   : > { %1998 = vmatpush.msra.mxu2 %v1938_v14  ;;  %2079 = vmatpush.msrb.mxu1 %v2075_v28  ;;  %v2158_v14 = vld [vmem:[#allocation12 + $0x68] sm:$0xff]  ;;  %v2157_v28 = vld [vmem:[#allocation12 + $0x60] sm:$0xff] }
 0x2a9   : > { %2029 = vmatpush.msra.mxu0 %v3222_v33  ;;  %1978 = vmatpush.msrb.mxu3 %v3195_v9  ;;  %v3239_v33 = vld [vmem:[%s4504_s15 + $0xe8] sm:$0xff] }
 0x2aa   : > { %1999 = vmatpush.msra.mxu2 %v1937_v18  ;;  %2080 = vmatpush.msrb.mxu1 %v2074_v30  ;;  %v2160_v9 = vld [vmem:[#allocation12 + $0x78] sm:$0xff]  ;;  %v2215_v30 = vld [vmem:[#allocation12 + $0xa8] sm:$0xff] }
 0x2ab   : > { %2030 = vmatpush.msra.mxu0 %v3221_v36  ;;  %1979 = vmatpush.msrb.mxu3 %v3194_v13  ;;  %v2071_v36 = vld [vmem:[%s4504_s15 + $0x58] sm:$0xff]  ;;  %v2217_v13 = vld [vmem:[#allocation12 + $0xb8] sm:$0xff] }
 0x2ac   : > { %2000 = vmatpush.msra.mxu2 %v1936_v21  ;;  %2081 = vmatpush.msrb.mxu1 %v2073_v32  ;;  %v2148_v32 = vld [vmem:[#allocation12 + $0x20] sm:$0xff] }
 0x2ad   : > { %2031 = vmatpush.msra.mxu0 %v3220_v40  ;;  %1980 = vmatpush.msrb.mxu3 %v3193_v16  ;;  %v2069_v40 = vld [vmem:[%s4504_s15 + $0x48] sm:$0xff] }
 0x2ae   : > { %2001 = vmatpush.msra.mxu2 %v1935_v24  ;;  %2082 = vmatpush.msrb.mxu1 %v2072_v34  ;;  %v2155_v34 = vld [vmem:[#allocation12 + $0x50] sm:$0xff] }
 0x2af   : > { %2032 = vmatpush.msra.mxu0 %v3219_v46  ;;  %1981 = vmatpush.msrb.mxu3 %v3192_v20 }
 0x2b0   : > { %2002 = vmatpush.msra.mxu2 %v1934_v26  ;;  %2083 = vmatpush.msrb.mxu1 %v2071_v36  ;;  %v2150_v26 = vld [vmem:[#allocation12 + $0x30] sm:$0xff]  ;;  %v2213_v36 = vld [vmem:[#allocation12 + $0x98] sm:$0xff] }
 0x2b1   : > { %2033 = vmatpush.msra.mxu0 %v3218_v52  ;;  %1982 = vmatpush.msrb.mxu3 %v3191_v23 }
 0x2b2   : > { %2084 = vmatpush.msrb.mxu1 %v2070_v38  ;;  %v2146_v38 = vld [vmem:[#allocation12 + $0x10] sm:$0xff] }
 0x2b3   : > { %2034 = vmatpush.msra.mxu0 %v3217_v56  ;;  %2117 = vmatpush.msra.mxu3 %v3241_v29  ;;  %v2067_v56 = vld [vmem:[%s4504_s15 + $0x38] sm:$0xff] }
 0x2b4   : > { %2085 = vmatpush.msrb.mxu1 %v2069_v40  ;;  %v2149_v29 = vld [vmem:[#allocation12 + $0x28] sm:$0xff]  ;;  %v2153_v40 = vld [vmem:[#allocation12 + $0x40] sm:$0xff] }
 0x2b5   : > { %2035 = vmatpush.msra.mxu0 %v3216_v5  ;;  %2118 = vmatpush.msra.mxu3 %v3240_v31  ;;  %v2061_v5 = vld [vmem:[%s4504_s15 + $0x8] sm:$0xff] }
 0x2b6   : > { %2086 = vmatpush.msrb.mxu1 %v2068_v54  ;;  %v2156_v31 = vld [vmem:[#allocation12 + $0x58] sm:$0xff]  ;;  %v2317_v54 = vld [vmem:[#allocation14 + $0xa8] sm:$0xff] }
 0x2b7   : > { %2036 = vmatpush.msra.mxu0 %v3215_v8  ;;  %2119 = vmatpush.msra.mxu3 %v3239_v33  ;;  %v3226_v8 = vld [vmem:[%s4504_s15 + $0x80] sm:$0xff]  ;;  %v2214_v33 = vld [vmem:[#allocation12 + $0xa0] sm:$0xff] }
 0x2b8   : > { %2087 = vmatpush.msrb.mxu1 %v2067_v56  ;;  %v2250_v56 = vld [vmem:[#allocation14 + $0x20] sm:$0xff] }
 0x2b9   : > { %2037 = vmatpush.msra.mxu0 %v3214_v12  ;;  %2120 = vmatpush.msra.mxu3 %v3238_v35  ;;  %v2151_v12 = vld [vmem:[#allocation12 + $0x38] sm:$0xff] }
 0x2ba   : > { %v2147_v35 = vld [vmem:[#allocation12 + $0x18] sm:$0xff] }
 0x2bb   : > { %2038 = vmatpush.msra.mxu0 %v3213_v15 }
 0x2bd   : > { %2039 = vmatpush.msra.mxu0 %v3212_v19  ;;  %v3436_v19 = vld [vmem:[%s4507_s3] ss:$0 sm:$0xff]  ;;  %s4517_s3 = sld [smem:[#allocation48_spill]] }
 0x2bf   : > { %2040 = vmatpush.msra.mxu0 %v3211_v22  ;;  %v3437_v22 = vld [vmem:[%s4508_s4] ss:$0 sm:$0xff]  ;;  %s4518_s4 = sld [smem:[#allocation49_spill]] }
 0x2c1   : > { %2041 = vmatpush.msra.mxu0 %v3210_v25 }
 0x2c3   : > { %2042 = vmatpush.msra.mxu0 %v3209_v27  ;;  %v2216_v27 = vld [vmem:[#allocation12 + $0xb0] sm:$0xff] }
 0x320   : > { %v1738_v41 = vpop.f32.mrf.mxu0 }
 0x323   : > { %v1761_v37 = vpop.f32.mrf.mxu1 }
 0x324   : > { %v1762_v44 = vadd.f32 %v1761_v37, %v1738_v41  ;;  %v3237_v37 = vld [vmem:[%s4504_s15 + $0xd8] sm:$0xff]  ;;  %v3235_v41 = vld [vmem:[%s4504_s15 + $0xc8] sm:$0xff] }
 0x325   : > { %2121 = vmatpush.msra.mxu3 %v3237_v37  ;;  %v2154_v37 = vld [vmem:[#allocation12 + $0x48] sm:$0xff] }
 0x327   : > { %2122 = vmatpush.msra.mxu3 %v3236_v39  ;;  %v2212_v39 = vld [vmem:[#allocation12 + $0x90] sm:$0xff] }
 0x329   : > { %v1796_v47 = vpop.f32.mrf.mxu3  ;;  %2123 = vmatpush.msra.mxu3 %v3235_v41  ;;  %v2145_v41 = vld [vmem:[#allocation12 + $0x8] sm:$0xff] }
 0x32a   : > { %v1799_v50 = vadd.f32 %v1796_v47, %v1762_v44 }
 0x32c   : > { %v1804_v55 = vmul.f32 %v3432_v45, %v1799_v50  ;;  %v3434_v45 = vld [vmem:[%s4505_s16] ss:$0 sm:$0xff]  ;;  %s4515_s16 = sld [smem:[#allocation46_spill]] }
 0x32e   : > { %v1809_v58 = vadd.f32 %v3433_v51, %v1804_v55  ;;  %v3234_v55 = vld [vmem:[%s4504_s15 + $0xc0] sm:$0xff] }
 0x32f   : > { %2124 = vmatpush.msra.mxu3 %v3234_v55  ;;  %v2258_v55 = vld [vmem:[#allocation14 + $0x58] sm:$0xff] }
 0x330   : > { %v4290_v59 = vmax.f32 %v1809_v58, 0.0  ;;  %v2066_v58 = vld [vmem:[%s4504_s15 + $0x30] sm:$0xff] }
 0x331   : > { %2125 = vmatpush.msra.mxu3 %v3233_v57  ;;  %2088 = vmatpush.msrb.mxu1 %v2066_v58  ;;  %v2316_v57 = vld [vmem:[#allocation14 + $0xa0] sm:$0xff]  ;;  %v2257_v58 = vld [vmem:[#allocation14 + $0x50] sm:$0xff] }
 0x332   : > { %1811 = vst.msk [vmem:[#allocation3] sm:$0xff] %vm1718_vm4, %v4290_v59 }
 0x339   : > { %v1812_v60 = vld [vmem:[#allocation3] ss:$2 sm:$0xf]  ;;  %v1814_v61 = vld [vmem:[#allocation3 + $0x1] ss:$2 sm:$0xf] }
 0x33a   : > { %v1815_v62 = vmax.f32 %v1812_v60, %v1814_v61  ;;  %v3232_v60 = vld [vmem:[%s4504_s15 + $0xb0] sm:$0xff]  ;;  %v2065_v61 = vld [vmem:[%s4504_s15 + $0x28] sm:$0xff] }
 0x33b   : > { %2126 = vmatpush.msra.mxu3 %v3232_v60  ;;  %2089 = vmatpush.msrb.mxu1 %v2065_v61  ;;  %v2249_v60 = vld [vmem:[#allocation14 + $0x18] sm:$0xff] }
 0x33c   : > { %3188 = vmatmul.msk.f32.vlgmr.msrb.gmra.mxu2 %vm1718_vm4, %v1815_v62  ;;  %v1817_v63 = vrot.slane %v1815_v62, 7  ;;  %v1882_v0 = vrot.slane %v1815_v62, 1  ;;  %v3231_v62 = vld [vmem:[%s4504_s15 + $0xa8] sm:$0xff] }
 0x33d   : > { %2127 = vmatpush.msra.mxu3 %v3231_v62  ;;  %2171 = vmatpush.msrb.mxu2 %v2160_v9  ;;  %v2315_v61 = vld [vmem:[#allocation14 + $0x98] sm:$0xff]  ;;  %v2256_v62 = vld [vmem:[#allocation14 + $0x48] sm:$0xff] }
 0x33e   : > { %v1819_v1 = vsel %vm1338_vm0, 0.0, %v1817_v63  ;;  %v1885_v2 = vsel %vm1884_vm5, %v1882_v0, 0.0  ;;  %v2064_v63 = vld [vmem:[%s4504_s15 + $0x20] sm:$0xff] }
 0x33f   : > { %3189 = vmatmul.msk.f32.vlgmr.msrb.gmra.mxu0 %vm1718_vm4, %v1819_v1  ;;  %3190 = vmatmul.msk.f32.vlgmr.msra.gmra.mxu1 %vm1718_vm4, %v1885_v2  ;;  %v3230_v0 = vld [vmem:[%s4504_s15 + $0xa0] sm:$0xff]  ;;  %v2063_v1 = vld [vmem:[%s4504_s15 + $0x18] sm:$0xff] }
 0x340   : > { %2090 = vmatpush.msrb.mxu1 %v2064_v63  ;;  %2128 = vmatpush.msra.mxu3 %v3230_v0  ;;  %v3229_v2 = vld [vmem:[%s4504_s15 + $0x98] sm:$0xff]  ;;  %v2248_v63 = vld [vmem:[#allocation14 + $0x10] sm:$0xff] }
 0x341   : > { %2194 = vmatpush.msrb.mxu0 %v2151_v12  ;;  %2172 = vmatpush.msrb.mxu2 %v2159_v10  ;;  %v2314_v0 = vld [vmem:[#allocation14 + $0x90] sm:$0xff] }
 0x342   : > { %2091 = vmatpush.msrb.mxu1 %v2063_v1  ;;  %2129 = vmatpush.msra.mxu3 %v3229_v2  ;;  %v2255_v1 = vld [vmem:[#allocation14 + $0x40] sm:$0xff]  ;;  %v2247_v2 = vld [vmem:[#allocation14 + $0x8] sm:$0xff] }
 0x343   : > { %2173 = vmatpush.msrb.mxu2 %v2158_v14  ;;  %2195 = vmatpush.msrb.mxu0 %v2150_v26  ;;  %v2374_v26 = vld [vmem:[#allocation15 + $0x68] sm:$0xff] }
 0x344   : > { %2092 = vmatpush.msrb.mxu1 %v2062_v3  ;;  %2130 = vmatpush.msra.mxu3 %v3228_v4  ;;  %v2313_v3 = vld [vmem:[#allocation14 + $0x88] sm:$0xff]  ;;  %v2246_v4 = vld [vmem:[#allocation14] sm:$0xff] }
 0x345   : > { %2174 = vmatpush.msrb.mxu2 %v2157_v28  ;;  %2196 = vmatpush.msrb.mxu0 %v2149_v29  ;;  %v2373_v28 = vld [vmem:[#allocation15 + $0x60] sm:$0xff]  ;;  %v2365_v29 = vld [vmem:[#allocation15 + $0x28] sm:$0xff] }
 0x346   : > { %2093 = vmatpush.msrb.mxu1 %v2061_v5  ;;  %2131 = vmatpush.msra.mxu3 %v3227_v6  ;;  %v2312_v5 = vld [vmem:[#allocation14 + $0x80] sm:$0xff]  ;;  %v3438_v6 = vld [vmem:[%s4509_s2] ss:$0 sm:$0xff]  ;;  %s1333_s2 = scalar_lea.vmem %s3998_s19, %s3283_s23 }
 0x347   : > { %2175 = vmatpush.msrb.mxu2 %v2156_v31  ;;  %2197 = vmatpush.msrb.mxu0 %v2148_v32  ;;  %v2372_v31 = vld [vmem:[#allocation15 + $0x58] sm:$0xff]  ;;  %v2364_v32 = vld [vmem:[#allocation15 + $0x20] sm:$0xff] }
 0x348   : > { %2094 = vmatpush.msrb.mxu1 %v2060_v7  ;;  %2132 = vmatpush.msra.mxu3 %v3226_v8 }
 0x349   : > { %2176 = vmatpush.msrb.mxu2 %v2155_v34  ;;  %2198 = vmatpush.msrb.mxu0 %v2147_v35  ;;  %v2371_v34 = vld [vmem:[#allocation15 + $0x50] sm:$0xff]  ;;  %v2363_v35 = vld [vmem:[#allocation15 + $0x18] sm:$0xff] }
 0x34a   : > { %2229 = vmatpush.msra.mxu1 %v2217_v13 }
 0x34b   : > { %2177 = vmatpush.msrb.mxu2 %v2154_v37  ;;  %2199 = vmatpush.msrb.mxu0 %v2146_v38  ;;  %v2370_v37 = vld [vmem:[#allocation15 + $0x48] sm:$0xff]  ;;  %v2362_v38 = vld [vmem:[#allocation15 + $0x10] sm:$0xff] }
 0x34c   : > { %2230 = vmatpush.msra.mxu1 %v2216_v27  ;;  %v2366_v27 = vld [vmem:[#allocation15 + $0x30] sm:$0xff] }
 0x34d   : > { %2178 = vmatpush.msrb.mxu2 %v2153_v40  ;;  %2200 = vmatpush.msrb.mxu0 %v2145_v41  ;;  %v2369_v40 = vld [vmem:[#allocation15 + $0x40] sm:$0xff]  ;;  %v2361_v41 = vld [vmem:[#allocation15 + $0x8] sm:$0xff] }
 0x34e   : > { %2231 = vmatpush.msra.mxu1 %v2215_v30  ;;  %v2431_v30 = vld [vmem:[#allocation15 + $0xa8] sm:$0xff] }
 0x350   : > { %2232 = vmatpush.msra.mxu1 %v2214_v33  ;;  %v2430_v33 = vld [vmem:[#allocation15 + $0xa0] sm:$0xff] }
 0x352   : > { %2233 = vmatpush.msra.mxu1 %v2213_v36  ;;  %v2429_v36 = vld [vmem:[#allocation15 + $0x98] sm:$0xff] }
 0x354   : > { %2234 = vmatpush.msra.mxu1 %v2212_v39  ;;  %v2428_v39 = vld [vmem:[#allocation15 + $0x90] sm:$0xff] }
 0x3bc   : > { %v1879_v42 = vpop.f32.mrf.mxu0  ;;  %v1915_v46 = vpop.f32.mrf.mxu1 }
 0x3bf   : > { %v1856_v43 = vpop.f32.mrf.mxu2 }
 0x3c0   : > { %v1880_v44 = vadd.f32 %v1879_v42, %v1856_v43  ;;  %v2211_v42 = vld [vmem:[#allocation12 + $0x88] sm:$0xff]  ;;  %v2262_v43 = vld [vmem:[#allocation14 + $0x78] sm:$0xff] }
 0x3c1   : > { %2235 = vmatpush.msra.mxu1 %v2211_v42  ;;  %v2427_v42 = vld [vmem:[#allocation15 + $0x88] sm:$0xff] }
 0x3c2   : > { %v1918_v47 = vadd.f32 %v1915_v46, %v1880_v44  ;;  %v2144_v44 = vld [vmem:[#allocation12] sm:$0xff]  ;;  %v2261_v46 = vld [vmem:[#allocation14 + $0x70] sm:$0xff] }
 0x3c3   : > { %2201 = vmatpush.msrb.mxu0 %v2144_v44  ;;  %v2426_v44 = vld [vmem:[#allocation15 + $0x80] sm:$0xff] }
 0x3c4   : > { %v1923_v49 = vmul.f32 %v3434_v45, %v1918_v47  ;;  %v2210_v45 = vld [vmem:[#allocation12 + $0x80] sm:$0xff]  ;;  %v2253_v47 = vld [vmem:[#allocation14 + $0x38] sm:$0xff] }
 0x3c5   : > { %2236 = vmatpush.msra.mxu1 %v2210_v45 }
 0x3c6   : > { %v1928_v50 = vadd.f32 %v3435_v48, %v1923_v49  ;;  %v2319_v48 = vld [vmem:[#allocation14 + $0xb8] sm:$0xff]  ;;  %v2260_v49 = vld [vmem:[#allocation14 + $0x68] sm:$0xff] }
 0x3c8   : > { %v1929_v51 = vmax.f32 %v1928_v50, 0.0  ;;  %v2252_v50 = vld [vmem:[#allocation14 + $0x30] sm:$0xff] }
 0x3ca   : > { %v1931_v52 = vrot.slane %v1929_v51, 7  ;;  %v2007_v53 = vrot.slane %v1929_v51, 1  ;;  %1983 = vmatmul.f32.vlgmr.msrb.gmra.mxu3 %v1929_v51  ;;  %v2318_v51 = vld [vmem:[#allocation14 + $0xb0] sm:$0xff] }
 0x3cc   : > { %3208 = vmatmul.msk.f32.vlgmr.msra.gmra.mxu2 %vm3207_vm6, %v1931_v52  ;;  %3225 = vmatmul.msk.f32.vlgmr.msra.gmra.mxu0 %vm1884_vm5, %v2007_v53  ;;  %v2259_v52 = vld [vmem:[#allocation14 + $0x60] sm:$0xff]  ;;  %v2251_v53 = vld [vmem:[#allocation14 + $0x28] sm:$0xff] }
 0x3cd   : > { %2273 = vmatpush.msra.mxu2 %v2262_v43  ;;  %2296 = vmatpush.msra.mxu0 %v2253_v47  ;;  %v2360_v43 = vld [vmem:[#allocation15] sm:$0xff] }
 0x3cf   : > { %2274 = vmatpush.msra.mxu2 %v2261_v46  ;;  %2297 = vmatpush.msra.mxu0 %v2252_v50 }
 0x3d1   : > { %2275 = vmatpush.msra.mxu2 %v2260_v49  ;;  %2298 = vmatpush.msra.mxu0 %v2251_v53 }
 0x3d3   : > { %2276 = vmatpush.msra.mxu2 %v2259_v52  ;;  %2299 = vmatpush.msra.mxu0 %v2250_v56 }
 0x3d5   : > { %2277 = vmatpush.msra.mxu2 %v2258_v55  ;;  %2300 = vmatpush.msra.mxu0 %v2249_v60  ;;  %v3439_v55 = vld [vmem:[%s4510_s11] ss:$0 sm:$0xff] }
 0x3d7   : > { %2278 = vmatpush.msra.mxu2 %v2257_v58  ;;  %2301 = vmatpush.msra.mxu0 %v2248_v63 }
 0x3d9   : > { %2279 = vmatpush.msra.mxu2 %v2256_v62  ;;  %2302 = vmatpush.msra.mxu0 %v2247_v2  ;;  %v2477_v2 = vld [vmem:[%s4512_s10 + $0x38] sm:$0xff] }
 0x3db   : > { %2280 = vmatpush.msra.mxu2 %v2255_v1  ;;  %2303 = vmatpush.msra.mxu0 %v2246_v4  ;;  %v2476_v4 = vld [vmem:[%s4512_s10 + $0x30] sm:$0xff] }
 0x449   : > { %v2044_v20 = vpop.f32.mrf.mxu0 }
 0x44d   : > { %v1984_v15 = vpop.f32.mrf.mxu3 }
 0x44f   : > { %v2004_v16 = vpop.f32.mrf.mxu2 }
 0x450   : > { %v2005_v18 = vadd.f32 %v2004_v16, %v1984_v15 }
 0x452   : > { %v2047_v21 = vadd.f32 %v2044_v20, %v2005_v18  ;;  %v2243_v18 = vrot.slane %v4290_v59, 7 }
 0x454   : > { %v2052_v23 = vmul.f32 %v3436_v19, %v2047_v21  ;;  %v2308_v19 = vrot.slane %v4290_v59, 1  ;;  %v2245_v20 = vsel %vm1338_vm0, 0.0, %v2243_v18  ;;  %v2470_v18 = vld [vmem:[%s4512_s10] sm:$0xff] }
 0x456   : > { %v2057_v24 = vadd.f32 %v3437_v22, %v2052_v23  ;;  %v2310_v21 = vsel %vm1409_vm2, %v2308_v19, 0.0  ;;  %v2376_v22 = vld [vmem:[#allocation15 + $0x78] sm:$0xff]  ;;  %v2375_v23 = vld [vmem:[#allocation15 + $0x70] sm:$0xff] }
 0x457   : > { %2387 = vmatpush.msrb.mxu3 %v2376_v22  ;;  %v3252_v19 = vld [vmem:[%s4512_s10 + $0x40] sm:$0xff] }
 0x458   : > { %v2058_v25 = vmax.f32 %v2057_v24, 0.0  ;;  %v2367_v24 = vld [vmem:[#allocation15 + $0x38] sm:$0xff]  ;;  %v2662_v22 = vld [vmem:[#allocation18 + $0x28] sm:$0xff] }
 0x459   : > { %2388 = vmatpush.msrb.mxu3 %v2375_v23  ;;  %v2661_v23 = vld [vmem:[#allocation18 + $0x20] sm:$0xff] }
 0x45a   : > { %2095 = vmatmul.f32.vlgmr.msrb.gmra.mxu1 %v2058_v25  ;;  %2133 = vmatmul.f32.vlgmr.msra.gmra.mxu3 %v2058_v25  ;;  %v2433_v25 = vld [vmem:[#allocation15 + $0xb8] sm:$0xff] }
 0x45b   : > { %2331 = vmatpush.msrb.mxu1 %v2319_v48  ;;  %2389 = vmatpush.msrb.mxu3 %v2374_v26 }
 0x45d   : > { %2332 = vmatpush.msrb.mxu1 %v2318_v51  ;;  %2390 = vmatpush.msrb.mxu3 %v2373_v28 }
 0x45f   : > { %2333 = vmatpush.msrb.mxu1 %v2317_v54  ;;  %2391 = vmatpush.msrb.mxu3 %v2372_v31 }
 0x461   : > { %2334 = vmatpush.msrb.mxu1 %v2316_v57  ;;  %2392 = vmatpush.msrb.mxu3 %v2371_v34  ;;  %v3440_v57 = vld [vmem:[%s4511_s7] ss:$0 sm:$0xff]  ;;  %v2552_v34 = vld [vmem:[#allocation17 + $0x30] sm:$0xff] }
 0x463   : > { %2335 = vmatpush.msrb.mxu1 %v2315_v61  ;;  %2393 = vmatpush.msrb.mxu3 %v2370_v37  ;;  %v2551_v37 = vld [vmem:[#allocation17 + $0x28] sm:$0xff] }
 0x465   : > { %2336 = vmatpush.msrb.mxu1 %v2314_v0  ;;  %2394 = vmatpush.msrb.mxu3 %v2369_v40  ;;  %v2617_v40 = vld [vmem:[#allocation17 + $0x50] sm:$0xff] }
 0x467   : > { %2337 = vmatpush.msrb.mxu1 %v2313_v3  ;;  %v3259_v3 = vld [vmem:[%s4512_s10 + $0x78] sm:$0xff] }
 0x468   : > { %2522 = vmatpush.msra.mxu3 %v3259_v3 }
 0x469   : > { %2338 = vmatpush.msrb.mxu1 %v2312_v5  ;;  %v3258_v5 = vld [vmem:[%s4512_s10 + $0x70] sm:$0xff] }
 0x46a   : > { %2523 = vmatpush.msra.mxu3 %v3258_v5  ;;  %v2651_v5 = vrot.slane %v4219_v11, 7 }
 0x4d7   : > { %v2096_v7 = vpop.f32.mrf.mxu1 }
 0x4d8   : > { %v2097_v8 = vadd.f32 %v3438_v6, %v2096_v7  ;;  %v3257_v7 = vld [vmem:[%s4512_s10 + $0x68] sm:$0xff] }
 0x4d9   : > { %2524 = vmatpush.msra.mxu3 %v3257_v7  ;;  %v2655_v7 = vsel %vm1338_vm0, 0.0, %v2651_v5 }
 0x4da   : > { %2099 = vst [vmem:[#allocation4] ss:$2 sm:$0xf] %v2097_v8  ;;  %v2474_v8 = vld [vmem:[%s4512_s10 + $0x20] sm:$0xff] }
 0x4dd   : > { %v2134_v9 = vpop.f32.mrf.mxu3 }
 0x4de   : > { %v2135_v10 = vadd.f32 %v3438_v6, %v2134_v9  ;;  %v2475_v6 = vld [vmem:[%s4512_s10 + $0x28] sm:$0xff]  ;;  %v3256_v9 = vld [vmem:[%s4512_s10 + $0x60] sm:$0xff] }
 0x4df   : > { %2525 = vmatpush.msra.mxu3 %v3256_v9 }
 0x4e0   : > { %2138 = vst [vmem:[#allocation4 + $0x1] ss:$2 sm:$0xf] %v2135_v10  ;;  %v2473_v10 = vld [vmem:[%s4512_s10 + $0x18] sm:$0xff] }
 0x4e7   : > { %v2139_v12 = vld [vmem:[#allocation4] sm:$0xff] }
 0x4e8   : > { %3242 = vmatmul.msk.f32.vlgmr.msrb.gmra.mxu2 %vm1718_vm4, %v2139_v12  ;;  %v2141_v13 = vrot.slane %v2139_v12, 7  ;;  %v2206_v14 = vrot.slane %v2139_v12, 1  ;;  %v3255_v12 = vld [vmem:[%s4512_s10 + $0x58] sm:$0xff] }
 0x4e9   : > { %2410 = vmatpush.msrb.mxu2 %v2367_v24  ;;  %2526 = vmatpush.msra.mxu3 %v3255_v12 }
 0x4ea   : > { %v2143_v15 = vsel %vm1338_vm0, 0.0, %v2141_v13  ;;  %v2208_v16 = vsel %vm1409_vm2, %v2206_v14, 0.0  ;;  %v2472_v13 = vld [vmem:[%s4512_s10 + $0x10] sm:$0xff] }
 0x4eb   : > { %3243 = vmatmul.msk.f32.vlgmr.msrb.gmra.mxu0 %vm1718_vm4, %v2143_v15  ;;  %3244 = vmatmul.msk.f32.vlgmr.msra.gmra.mxu1 %vm1718_vm4, %v2208_v16  ;;  %v3254_v14 = vld [vmem:[%s4512_s10 + $0x50] sm:$0xff]  ;;  %v2471_v15 = vld [vmem:[%s4512_s10 + $0x8] sm:$0xff] }
 0x4ec   : > { %2445 = vmatpush.msrb.mxu0 %v2433_v25  ;;  %2411 = vmatpush.msrb.mxu2 %v2366_v27  ;;  %v3253_v16 = vld [vmem:[%s4512_s10 + $0x48] sm:$0xff]  ;;  %v3441_v27 = vld [vmem:[%s4513_s26] ss:$0 sm:$0xff] }
 0x4ed   : > { %2492 = vmatpush.msra.mxu1 %v2477_v2  ;;  %2527 = vmatpush.msra.mxu3 %v3254_v14  ;;  %v2791_v14 = vld [vmem:[#allocation20 + $0x38] sm:$0xff] }
 0x4ee   : > { %2412 = vmatpush.msrb.mxu2 %v2365_v29  ;;  %v3442_v29 = vld [vmem:[%s4514_s28] ss:$0 sm:$0xff] }
 0x4ef   : > { %2493 = vmatpush.msra.mxu1 %v2476_v4  ;;  %2528 = vmatpush.msra.mxu3 %v3253_v16  ;;  %v2786_v16 = vld [vmem:[#allocation20 + $0x18] sm:$0xff] }
 0x4f0   : > { %3245 = vmatmul.msk.f32.vlgmr.msra.gmra.mxu2 %vm1718_vm4, %v4290_v59  ;;  %v2432_v59 = vld [vmem:[#allocation15 + $0xb0] sm:$0xff] }
 0x4f1   : > { %2446 = vmatpush.msrb.mxu0 %v2432_v59  ;;  %2413 = vmatpush.msrb.mxu2 %v2364_v32 }
 0x4f2   : > { %2494 = vmatpush.msra.mxu1 %v2475_v6  ;;  %2529 = vmatpush.msra.mxu3 %v3252_v19  ;;  %v2721_v6 = vrot.slane %v4223_v17, 1  ;;  %v2788_v19 = vld [vmem:[#allocation20 + $0x20] sm:$0xff] }
 0x4f3   : > { %3246 = vmatmul.msk.f32.vlgmr.msra.gmra.mxu0 %vm1718_vm4, %v2245_v20  ;;  %3247 = vmatmul.msk.f32.vlgmr.msrb.gmra.mxu1 %vm1718_vm4, %v2310_v21  ;;  %v2664_v20 = vld [vmem:[#allocation18 + $0x38] sm:$0xff]  ;;  %v2663_v21 = vld [vmem:[#allocation18 + $0x30] sm:$0xff] }
 0x4f4   : > { %2447 = vmatpush.msrb.mxu0 %v2431_v30  ;;  %2414 = vmatpush.msrb.mxu2 %v2363_v35  ;;  %v2548_v35 = vld [vmem:[#allocation17 + $0x18] sm:$0xff] }
 0x4f5   : > { %2495 = vmatpush.msra.mxu1 %v2474_v8  ;;  %v2720_v8 = vrot.slane %v4219_v11, 1 }
 0x4f6   : > { %2448 = vmatpush.msrb.mxu0 %v2430_v33  ;;  %2415 = vmatpush.msrb.mxu2 %v2362_v38  ;;  %v2553_v33 = vld [vmem:[#allocation17 + $0x38] sm:$0xff]  ;;  %v2550_v38 = vld [vmem:[#allocation17 + $0x20] sm:$0xff] }
 0x4f7   : > { %2496 = vmatpush.msra.mxu1 %v2473_v10  ;;  %v2722_v9 = vsel %vm1409_vm2, %v2720_v8, %v2721_v6  ;;  %v2652_v10 = vrot.slane %v4223_v17, 7 }
 0x4f8   : > { %2449 = vmatpush.msrb.mxu0 %v2429_v36  ;;  %2416 = vmatpush.msrb.mxu2 %v2361_v41  ;;  %v2618_v36 = vld [vmem:[#allocation17 + $0x58] sm:$0xff]  ;;  %v2546_v41 = vld [vmem:[#allocation17 + $0x8] sm:$0xff] }
 0x4f9   : > { %2497 = vmatpush.msra.mxu1 %v2472_v13  ;;  %v2653_v12 = vsel %vm1338_vm0, %v2651_v5, %v2652_v10  ;;  %v2724_v13 = vsel %vm1409_vm2, %v2721_v6, 0.0  ;;  %v3446_v6 = vld [vmem:[%s4518_s4] ss:$0 sm:$0xff] }
 0x4fa   : > { %2450 = vmatpush.msrb.mxu0 %v2428_v39  ;;  %2417 = vmatpush.msrb.mxu2 %v2360_v43  ;;  %v2547_v39 = vld [vmem:[#allocation17 + $0x10] sm:$0xff]  ;;  %v2659_v43 = vld [vmem:[#allocation18 + $0x18] sm:$0xff] }
 0x4fb   : > { %2498 = vmatpush.msra.mxu1 %v2471_v15  ;;  %v2790_v15 = vld [vmem:[#allocation20 + $0x30] sm:$0xff] }
 0x4fc   : > { %2451 = vmatpush.msrb.mxu0 %v2427_v42  ;;  %2570 = vmatpush.msra.mxu2 %v2553_v33  ;;  %v2616_v42 = vld [vmem:[#allocation17 + $0x48] sm:$0xff] }
 0x4fd   : > { %2499 = vmatpush.msra.mxu1 %v2470_v18  ;;  %v2785_v18 = vld [vmem:[#allocation20 + $0x10] sm:$0xff] }
 0x4fe   : > { %2452 = vmatpush.msrb.mxu0 %v2426_v44  ;;  %2571 = vmatpush.msra.mxu2 %v2552_v34  ;;  %v2545_v44 = vld [vmem:[#allocation17] sm:$0xff] }
 0x4ff   : > { %2636 = vmatpush.msrb.mxu1 %v2618_v36  ;;  %v3444_v36 = vld [vmem:[%s4516_s1] ss:$0 sm:$0xff] }
 0x500   : > { %2598 = vmatpush.msra.mxu0 %v2548_v35  ;;  %2572 = vmatpush.msra.mxu2 %v2551_v37 }
 0x501   : > { %2637 = vmatpush.msrb.mxu1 %v2617_v40 }
 0x502   : > { %2599 = vmatpush.msra.mxu0 %v2547_v39  ;;  %2573 = vmatpush.msra.mxu2 %v2550_v38  ;;  %v3445_v38 = vld [vmem:[%s4517_s3] ss:$0 sm:$0xff] }
 0x503   : > { %2638 = vmatpush.msrb.mxu1 %v2616_v42 }
 0x504   : > { %2600 = vmatpush.msra.mxu0 %v2546_v41 }
 0x506   : > { %2601 = vmatpush.msra.mxu0 %v2545_v44 }
 0x568   : > { %v2203_v45 = vpop.f32.mrf.mxu0  ;;  %v2238_v46 = vpop.f32.mrf.mxu1 }
 0x56b   : > { %v2180_v47 = vpop.f32.mrf.mxu2 }
 0x56c   : > { %v2204_v48 = vadd.f32 %v2203_v45, %v2180_v47  ;;  %v2615_v45 = vld [vmem:[#allocation17 + $0x40] sm:$0xff]  ;;  %v2657_v47 = vld [vmem:[#allocation18 + $0x8] sm:$0xff] }
 0x56d   : > { %2639 = vmatpush.msrb.mxu1 %v2615_v45 }
 0x56e   : > { %v2241_v53 = vadd.f32 %v2238_v46, %v2204_v48  ;;  %v2658_v46 = vld [vmem:[#allocation18 + $0x10] sm:$0xff]  ;;  %v2729_v48 = vld [vmem:[#allocation18 + $0x58] sm:$0xff] }
 0x570   : > { %v2305_v49 = vpop.f32.mrf.mxu0  ;;  %v2340_v52 = vpop.f32.mrf.mxu1 }
 0x573   : > { %v2282_v50 = vpop.f32.mrf.mxu2 }
 0x574   : > { %v2306_v51 = vadd.f32 %v2305_v49, %v2282_v50  ;;  %v2656_v49 = vld [vmem:[#allocation18] sm:$0xff]  ;;  %v2728_v50 = vld [vmem:[#allocation18 + $0x50] sm:$0xff] }
 0x576   : > { %v2343_v54 = vadd.f32 %v2340_v52, %v2306_v51  ;;  %v3443_v51 = vld [vmem:[%s4515_s16] ss:$0 sm:$0xff] }
 0x578   : > { %v2344_v56 = vadd.f32 %v2343_v54, %v2241_v53  ;;  %v2727_v53 = vld [vmem:[#allocation18 + $0x48] sm:$0xff] }
 0x57a   : > { %v2349_v58 = vmul.f32 %v3439_v55, %v2344_v56  ;;  %v2726_v55 = vld [vmem:[#allocation18 + $0x40] sm:$0xff] }
 0x57c   : > { %v2354_v60 = vadd.f32 %v3440_v57, %v2349_v58 }
 0x57e   : > { %v2355_v61 = vmax.f32 %v2354_v60, 0.0 }
 0x580   : > { %3248 = vmatmul.msk.f32.vlgmr.msrb.gmra.mxu3 %vm1718_vm4, %v2355_v61  ;;  %v2357_v62 = vrot.slane %v2355_v61, 7  ;;  %v2422_v63 = vrot.slane %v2355_v61, 1 }
 0x581   : > { %2681 = vmatpush.msrb.mxu3 %v2664_v20 }
 0x582   : > { %v2359_v0 = vsel %vm1338_vm0, 0.0, %v2357_v62  ;;  %v2424_v1 = vsel %vm1409_vm2, %v2422_v63, 0.0 }
 0x583   : > { %3249 = vmatmul.msk.f32.vlgmr.msrb.gmra.mxu2 %vm1718_vm4, %v2359_v0  ;;  %3250 = vmatmul.msk.f32.vlgmr.msrb.gmra.mxu0 %vm1718_vm4, %v2424_v1 }
 0x584   : > { %2682 = vmatpush.msrb.mxu3 %v2663_v21  ;;  %2709 = vmatpush.msrb.mxu2 %v2659_v43  ;;  %v2856_v21 = vld [vmem:[#allocation20 + $0x58] sm:$0xff] }
 0x585   : > { %2747 = vmatpush.msrb.mxu0 %v2729_v48 }
 0x586   : > { %2683 = vmatpush.msrb.mxu3 %v2662_v22  ;;  %2710 = vmatpush.msrb.mxu2 %v2658_v46  ;;  %v2855_v22 = vld [vmem:[#allocation20 + $0x50] sm:$0xff] }
 0x587   : > { %2748 = vmatpush.msrb.mxu0 %v2728_v50 }
 0x588   : > { %2684 = vmatpush.msrb.mxu3 %v2661_v23  ;;  %2711 = vmatpush.msrb.mxu2 %v2657_v47  ;;  %v2783_v23 = vld [vmem:[#allocation20] sm:$0xff] }
 0x589   : > { %2749 = vmatpush.msrb.mxu0 %v2727_v53 }
 0x58a   : > { %2712 = vmatpush.msrb.mxu2 %v2656_v49 }
 0x58b   : > { %2750 = vmatpush.msrb.mxu0 %v2726_v55 }
 0x600   : > { %v2454_v59 = vpop.f32.mrf.mxu0 }
 0x603   : > { %v2396_v24 = vpop.f32.mrf.mxu3 }
 0x606   : > { %v2419_v25 = vpop.f32.mrf.mxu2 }
 0x607   : > { %v2420_v26 = vadd.f32 %v2419_v25, %v2396_v24  ;;  %v2854_v25 = vld [vmem:[#allocation20 + $0x48] sm:$0xff] }
 0x609   : > { %v2457_v28 = vadd.f32 %v2454_v59, %v2420_v26  ;;  %v2853_v26 = vld [vmem:[#allocation20 + $0x40] sm:$0xff] }
 0x60b   : > { %v2462_v30 = vmul.f32 %v3441_v27, %v2457_v28 }
 0x60d   : > { %v2467_v31 = vadd.f32 %v3442_v29, %v2462_v30 }
 0x60f   : > { %v2468_v32 = vmax.f32 %v2467_v31, 0.0 }
 0x611   : > { %3251 = vmatmul.msk.f32.vlgmr.msra.gmra.mxu1 %vm1718_vm4, %v2468_v32  ;;  %3260 = vmatmul.msk.f32.vlgmr.msra.gmra.mxu3 %vm1718_vm4, %v2468_v32 }
 0x612   : > { %2808 = vmatpush.msra.mxu1 %v2791_v14  ;;  %2836 = vmatpush.msra.mxu3 %v2786_v16 }
 0x614   : > { %2809 = vmatpush.msra.mxu1 %v2790_v15  ;;  %2837 = vmatpush.msra.mxu3 %v2785_v18 }
 0x619   : > { %3267 = vmatmul.msk.f32.vlgmr.msrb.gmra.mxu3 %vm1480_vm3, %v4219_v11  ;;  %v2789_v11 = vld [vmem:[#allocation20 + $0x28] sm:$0xff] }
 0x61a   : > { %2810 = vmatpush.msra.mxu1 %v2789_v11 }
 0x61c   : > { %2811 = vmatpush.msra.mxu1 %v2788_v19 }
 0x621   : > { %3268 = vmatmul.msk.f32.gmra.mxu3 %vm1480_vm3, %v4223_v17  ;;  %v2784_v17 = vld [vmem:[#allocation20 + $0x8] sm:$0xff] }
 0x622   : > { %2838 = vmatpush.msra.mxu3 %v2784_v17 }
 0x624   : > { %2839 = vmatpush.msra.mxu3 %v2783_v23 }
 0x68e   : > { %v2501_v52 = vpop.f32.mrf.mxu1 }
 0x68f   : > { %v2502_v54 = vadd.f32 %v3443_v51, %v2501_v52 }
 0x691   : > { %2504 = vst [vmem:[#allocation5] ss:$2 sm:$0xff] %v2502_v54 }
 0x694   : > { %v2531_v56 = vpop.f32.mrf.mxu3 }
 0x695   : > { %v2532_v57 = vadd.f32 %v3443_v51, %v2531_v56 }
 0x697   : > { %2535 = vst [vmem:[#allocation5 + $0x1] ss:$2 sm:$0xff] %v2532_v57 }
 0x69c   : > { %v2686_v28 = vpop.f32.mrf.mxu3 }
 0x69e   : > { %v2536_v58 = vld [vmem:[#allocation5] sm:$0xff]  ;;  %v2537_v60 = vld [vmem:[#allocation5 + $0x8] sm:$0xff] }
 0x69f   : > { %3261 = vmatmul.msk.f32.vlgmr.msra.gmra.mxu2 %vm1480_vm3, %v2536_v58  ;;  %v2609_v61 = vrot.slane %v2536_v58, 1  ;;  %v2540_v62 = vrot.slane %v2536_v58, 7  ;;  %v2610_v63 = vrot.slane %v2537_v60, 1  ;;  %v2541_v2 = vrot.slane %v2537_v60, 7 }
 0x6a0   : > { %2874 = vmatpush.msra.mxu2 %v2856_v21  ;;  %v3448_v21 = vld [vmem:[#allocation6] ss:$0 sm:$0xff] }
 0x6a1   : > { %v2544_v0 = vsel %vm1338_vm0, 0.0, %v2540_v62  ;;  %v2611_v1 = vsel %vm1409_vm2, %v2609_v61, %v2610_v63  ;;  %v2542_v3 = vsel %vm1338_vm0, %v2540_v62, %v2541_v2  ;;  %v2613_v4 = vsel %vm1409_vm2, %v2610_v63, 0.0  ;;  %v2904_v63 = vld [vmem:[%s3990_s14 + $0x18] sm:$0xff]  ;;  %v2901_v2 = vld [vmem:[%s3990_s14] sm:$0xff] }
 0x6a2   : > { %3263 = vmatmul.msk.f32.vlgmr.msra.gmra.mxu0 %vm1480_vm3, %v2544_v0  ;;  %3265 = vmatmul.msk.f32.vlgmr.msrb.gmra.mxu1 %vm1480_vm3, %v2611_v1  ;;  %v2903_v0 = vld [vmem:[%s3990_s14 + $0x10] sm:$0xff]  ;;  %v2902_v1 = vld [vmem:[%s3990_s14 + $0x8] sm:$0xff] }
 0x6a3   : > { %2875 = vmatpush.msra.mxu2 %v2855_v22  ;;  %2927 = vmatpush.msra.mxu0 %v2904_v63 }
 0x6a4   : > { %v2689_v41 = vpop.f32.mrf.mxu3 }
 0x6a5   : > { %2876 = vmatpush.msra.mxu2 %v2854_v25  ;;  %2928 = vmatpush.msra.mxu0 %v2903_v0 }
 0x6a7   : > { %3262 = vmatmul.msk.f32.gmra.mxu2 %vm1480_vm3, %v2537_v60  ;;  %2929 = vmatpush.msra.mxu0 %v2902_v1 }
 0x6a8   : > { %2877 = vmatpush.msra.mxu2 %v2853_v26 }
 0x6a9   : > { %2930 = vmatpush.msra.mxu0 %v2901_v2 }
 0x6aa   : > { %3264 = vmatmul.msk.f32.gmra.mxu0 %vm1480_vm3, %v2542_v3  ;;  %3266 = vmatmul.msk.f32.gmra.mxu1 %vm1480_vm3, %v2613_v4 }
 0x6af   : > { %3269 = vmatmul.msk.f32.vlgmr.msrb.gmra.mxu2 %vm1480_vm3, %v2655_v7 }
 0x6b2   : > { %3271 = vmatmul.msk.f32.vlgmr.msrb.gmra.mxu0 %vm1480_vm3, %v2722_v9  ;;  %v3447_v9 = vld [vmem:[%s3985_s30] ss:$0 sm:$0xff] }
 0x6b7   : > { %3270 = vmatmul.msk.f32.gmra.mxu2 %vm1480_vm3, %v2653_v12 }
 0x6ba   : > { %3272 = vmatmul.msk.f32.gmra.mxu0 %vm1480_vm3, %v2724_v13 }
 0x71f   : > { %v2603_v20 = vpop.f32.mrf.mxu0  ;;  %v2641_v29 = vpop.f32.mrf.mxu1 }
 0x722   : > { %v2575_v24 = vpop.f32.mrf.mxu2 }
 0x723   : > { %v2604_v30 = vadd.f32 %v2603_v20, %v2575_v24 }
 0x725   : > { %v2647_v34 = vadd.f32 %v2641_v29, %v2604_v30 }
 0x727   : > { %v2606_v27 = vpop.f32.mrf.mxu0  ;;  %v2644_v45 = vpop.f32.mrf.mxu1 }
 0x72a   : > { %v2578_v59 = vpop.f32.mrf.mxu2 }
 0x72b   : > { %v2607_v39 = vadd.f32 %v2606_v27, %v2578_v59 }
 0x72d   : > { %v2648_v47 = vadd.f32 %v2644_v45, %v2607_v39 }
 0x72f   : > { %v2752_v31 = vpop.f32.mrf.mxu0 }
 0x732   : > { %v2714_v32 = vpop.f32.mrf.mxu2 }
 0x733   : > { %v2715_v33 = vadd.f32 %v2714_v32, %v2686_v28 }
 0x735   : > { %v2758_v35 = vadd.f32 %v2752_v31, %v2715_v33 }
 0x737   : > { %v2760_v37 = vadd.f32 %v2758_v35, %v2647_v34  ;;  %v2755_v46 = vpop.f32.mrf.mxu0 }
 0x739   : > { %v2766_v40 = vmul.f32 %v3444_v36, %v2760_v37 }
 0x73a   : > { %v2717_v42 = vpop.f32.mrf.mxu2 }
 0x73b   : > { %v2772_v43 = vadd.f32 %v3445_v38, %v2766_v40  ;;  %v2718_v44 = vadd.f32 %v2717_v42, %v2689_v41 }
 0x73d   : > { %v2774_v48 = vmax.f32 %v2772_v43, 0.0  ;;  %v2759_v49 = vadd.f32 %v2755_v46, %v2718_v44 }
 0x73f   : > { %v2761_v50 = vadd.f32 %v2759_v49, %v2648_v47  ;;  %3273 = vmatmul.msk.f32.vlgmr.msra.gmra.mxu1 %vm1480_vm3, %v2774_v48  ;;  %v2778_v51 = vrot.slane %v2774_v48, 7  ;;  %v2847_v58 = vrot.slane %v2774_v48, 1 }
 0x741   : > { %v2782_v52 = vsel %vm1338_vm0, 0.0, %v2778_v51  ;;  %v2767_v53 = vmul.f32 %v3444_v36, %v2761_v50 }
 0x742   : > { %3275 = vmatmul.msk.f32.vlgmr.msra.gmra.mxu3 %vm1480_vm3, %v2782_v52 }
 0x743   : > { %v2773_v54 = vadd.f32 %v3445_v38, %v2767_v53 }
 0x745   : > { %v2775_v55 = vmax.f32 %v2773_v54, 0.0 }
 0x747   : > { %3274 = vmatmul.msk.f32.gmra.mxu1 %vm1480_vm3, %v2775_v55  ;;  %v2848_v56 = vrot.slane %v2775_v55, 1  ;;  %v2779_v57 = vrot.slane %v2775_v55, 7 }
 0x749   : > { %v2780_v60 = vsel %vm1338_vm0, %v2778_v51, %v2779_v57  ;;  %v2849_v61 = vsel %vm1409_vm2, %v2847_v58, %v2848_v56  ;;  %v2851_v62 = vsel %vm1409_vm2, %v2848_v56, 0.0 }
 0x74a   : > { %3276 = vmatmul.msk.f32.gmra.mxu3 %vm1480_vm3, %v2780_v60  ;;  %3277 = vmatmul.msk.f32.vlgmr.msra.gmra.mxu2 %vm1480_vm3, %v2849_v61 }
 0x752   : > { %3278 = vmatmul.msk.f32.gmra.mxu2 %vm1480_vm3, %v2851_v62 }
 0x7bc   : > { %v2813_v4 = vpop.f32.mrf.mxu1 }
 0x7c4   : > { %v2816_v14 = vpop.f32.mrf.mxu1 }
 0x7c5   : > { %v2841_v3 = vpop.f32.mrf.mxu3 }
 0x7c6   : > { %v2842_v5 = vadd.f32 %v2841_v3, %v2813_v4 }
 0x7cd   : > { %v2879_v7 = vpop.f32.mrf.mxu2  ;;  %v2844_v12 = vpop.f32.mrf.mxu3 }
 0x7ce   : > { %v2885_v8 = vadd.f32 %v2879_v7, %v2842_v5  ;;  %v2845_v15 = vadd.f32 %v2844_v12, %v2816_v14 }
 0x7d0   : > { %v2891_v10 = vmul.f32 %v3446_v6, %v2885_v8 }
 0x7d2   : > { %v2897_v13 = vadd.f32 %v3447_v9, %v2891_v10 }
 0x7d4   : > { %v2899_v16 = vmax.f32 %v2897_v13, 0.0 }
 0x7d5   : > { %v2882_v11 = vpop.f32.mrf.mxu2 }
 0x7d6   : > { %v2886_v18 = vadd.f32 %v2882_v11, %v2845_v15  ;;  %3279 = vmatmul.msk.f32.vlgmr.msra.gmra.mxu0 %vm1480_vm3, %v2899_v16 }
 0x7d8   : > { %v2892_v19 = vmul.f32 %v3446_v6, %v2886_v18 }
 0x7da   : > { %v2898_v17 = vadd.f32 %v3447_v9, %v2892_v19 }
 0x7dc   : > { %v2900_v20 = vmax.f32 %v2898_v17, 0.0 }
 0x7de   : > { %3280 = vmatmul.msk.f32.gmra.mxu0 %vm1480_vm3, %v2900_v20 }
 0x853   : > { %v2932_v22 = vpop.f32.mrf.mxu0 }
 0x854   : > { %v2933_v23 = vadd.f32 %v3448_v21, %v2932_v22 }
 0x856   : > { %2938 = vst.msk [vmem:[%s1333_s2] sm:$0xff] %vm1347_vm1, %v2933_v23 }
 0x85b   : > { %v2935_v24 = vpop.f32.mrf.mxu0 }
 0x85c   : > { %v2936_v25 = vadd.f32 %v3448_v21, %v2935_v24 }
 0x85e   : > { %2939 = vst.msk [vmem:[%s1333_s2 + $0x8] sm:$0xff] %vm1347_vm1, %v2936_v25 }
 0x85f PF: > { %s96_s22 = sadd.s32 1, %s3745_s22  }
 0x860   : > { %p93_p2 = scmp.ge.s32.totalorder %s96_s22, 4  }
 0x862   :  { %95 = sbr.rel (!%p93_p2) target bundleno = 74 (0x4a), region = 312 }
 0x867   :  { %2961 = vsyncpa [#allocation8], 1 }
 0x868   :  { %2963 = vsyncpa [#allocation8 + $0x1], 1 }
 0x869   :  { %2964 = vsyncpa [#allocation10], 1 }
 0x86a   :  { %2965 = vsyncpa [#allocation13], 1 }
 0x86b   :  { %2966 = vsyncpa [#allocation16], 1 }
 0x86c   :  { %2967 = vsyncpa [#allocation19], 1 }

</bundles_post_ra>
